<compile_context>
chip_gen: v7x
topology: tpu7x:2x2x1
jax: 0.10.0
libtpu: 0.0.40
codegen_flags: <defaults>
</compile_context>

<pallas_src>
import jax
import jax.numpy as jnp
from jax.experimental import pallas as pl
from jax.experimental.pallas import tpu as pltpu

TOPK_CLASSES = 5
BN_EPS = 1e-5


# --------------------------------------------------------------------------------------
# Kernel A: projection + BN, hoisted input-gate matmul, GRU recurrence, batched attention
# --------------------------------------------------------------------------------------
def decoder_core_kernel(class_emb_ref, teacher_ref, mask_ref,
                        w_proj_ref, b_proj_ref, gamma_ref, beta_ref,
                        w_ih_ref, w_hh_ref, b_ih_ref, b_hh_ref,
                        w_attn_ref,
                        co_ref,
                        gi_seq, out_seq):
    B, T, H = out_seq.shape
    E = class_emb_ref.shape[1]

    # ---- image-class embedding projection + BatchNorm1d (training-mode batch stats) ----
    x = class_emb_ref[...]                                                     # (B, E)
    proj = jnp.dot(x, w_proj_ref[...], preferred_element_type=jnp.float32) + b_proj_ref[...]
    mu = jnp.mean(proj, axis=0, keepdims=True)
    var = jnp.mean((proj - mu) ** 2, axis=0, keepdims=True)
    x_bn = gamma_ref[...] * (proj - mu) * jax.lax.rsqrt(var + BN_EPS) + beta_ref[...]

    # ---- ALL input-gate matmuls hoisted out of the recurrence as a single MXU matmul ----
    # rows: [start-token (BN'ed image projection), teacher steps 1..T-1], time-major.
    if T > 1:
        x_all = jnp.concatenate([x_bn.reshape(1, B, E), teacher_ref[...]], axis=0)  # (T, B, E)
    else:
        x_all = x_bn.reshape(1, B, E)
    gi_all = (jnp.dot(x_all.reshape(T * B, E), w_ih_ref[...],
                      preferred_element_type=jnp.float32)
              + b_ih_ref[...])                                                 # (T*B, 3H)
    gi_seq[...] = gi_all.reshape(T, B, 3 * H)

    # ---- GRU recurrence, fully unrolled; only the h-dependent matmul stays serial ----
    # pack_padded_sequence semantics: padded steps output 0, hidden state frozen.
    h = jnp.zeros((B, H), jnp.float32)
    for t in range(T):                                                         # T is static
        gi = gi_seq[t]                                                         # (B, 3H)
        gh = (jnp.dot(h, w_hh_ref[...], preferred_element_type=jnp.float32)
              + b_hh_ref[...])                                                 # (B, 3H)
        r = jax.nn.sigmoid(gi[:, :H] + gh[:, :H])
        z = jax.nn.sigmoid(gi[:, H:2 * H] + gh[:, H:2 * H])
        n = jnp.tanh(gi[:, 2 * H:] + r * gh[:, 2 * H:])
        h_new = (1.0 - z) * n + z * h
        m = mask_ref[t]                                                        # (B, 1)
        mh = m * h_new
        out_seq[:, t, :] = mh                                                  # batch-major store
        h = mh + (1.0 - m) * h

    # ---- batched intra-temporal attention (MXU batched matmuls, no per-t loop) ----
    out_bt = out_seq[...]                                                      # (B, T, H)
    q = jnp.dot(out_bt.reshape(B * T, H), w_attn_ref[...],
                preferred_element_type=jnp.float32).reshape(B, T, H)
    scores = jax.lax.dot_general(q, out_bt,
                                 (((2,), (2,)), ((0,), (0,))),
                                 preferred_element_type=jnp.float32)           # (B, T, T)
    t_idx = jax.lax.broadcasted_iota(jnp.int32, scores.shape, 1)
    s_idx = jax.lax.broadcasted_iota(jnp.int32, scores.shape, 2)
    valid = s_idx < t_idx                                                      # strictly previous
    masked = jnp.where(valid, scores, jnp.float32(-1e30))
    mx = jnp.max(masked, axis=2, keepdims=True)
    es = jnp.where(valid, jnp.exp(masked - mx), 0.0)
    den = jnp.sum(es, axis=2, keepdims=True)
    inv_den = pl.reciprocal(jnp.where(den > 0.0, den, 1.0), approx=True)       # t==0 -> alpha=0
    alpha = es * inv_den
    ct = jax.lax.dot_general(alpha, out_bt,
                             (((2,), (1,)), ((0,), (0,))),
                             preferred_element_type=jnp.float32)               # (B, T, H)

    co = jnp.concatenate([out_bt, ct], axis=-1).reshape(B * T, 2 * H)          # batch-major rows
    co_ref[...] = co.astype(co_ref.dtype)                                      # bf16 for MXU


# --------------------------------------------------------------------------------------
# Kernel B: vocab projection, grid over V tiles (parallel), batch-major lane-dense output
# --------------------------------------------------------------------------------------
def vocab_proj_kernel(co_ref, w_ref, b_ref, out_ref):
    logits = (jnp.dot(co_ref[...], w_ref[...], preferred_element_type=jnp.float32)
              + b_ref[...])                                                    # (B*T, Vt) f32
    B, T, Vt = out_ref.shape
    out_ref[...] = logits.reshape(B, T, Vt)


# --------------------------------------------------------------------------------------
# Wrapper (glue in plain JAX)
# --------------------------------------------------------------------------------------
def attention_decoder_forward(params, img_rep, targets, real_lens, *, v_tile=128):
    B, T = targets.shape
    E = params['emb'].shape[1]
    H = params['w_hh'].shape[1]
    V = params['w_vocab'].shape[0]

    # topk classes -> class embedding mean (gathers stay in JAX)
    _, top_idx = jax.lax.top_k(img_rep, TOPK_CLASSES)
    class_emb = jnp.mean(params['class_emb'][top_idx], axis=1)                 # (B, E)

    teacher = params['emb'][targets[:, :-1]]                                   # (B, T-1, E)
    teacher_t = jnp.transpose(teacher, (1, 0, 2)).astype(jnp.float32)          # (T-1, B, E) tiny

    # per-step validity mask (emulates pack_padded / pad_packed)
    mask = (jnp.arange(T)[:, None] < real_lens[None, :]).astype(jnp.float32)[:, :, None]  # (T,B,1)

    n_inputs = 12
    co = pl.pallas_call(
        decoder_core_kernel,
        out_shape=jax.ShapeDtypeStruct((B * T, 2 * H), jnp.bfloat16),
        in_specs=[pl.BlockSpec(memory_space=pltpu.MemorySpace.VMEM)] * n_inputs,
        out_specs=pl.BlockSpec(memory_space=pltpu.MemorySpace.VMEM),
        scratch_shapes=[
            pltpu.VMEM((T, B, 3 * H), jnp.float32),   # precomputed input-gate activations
            pltpu.VMEM((B, T, H), jnp.float32),       # GRU outputs, batch-major
        ],
        compiler_params=pltpu.CompilerParams(vmem_limit_bytes=32 * 1024 * 1024),
    )(
        class_emb.astype(jnp.float32),
        teacher_t,
        mask,
        params['w_proj'].T, params['b_proj'][None, :],
        params['gamma'][None, :], params['beta'][None, :],
        params['w_ih'].T, params['w_hh'].T,
        params['b_ih'][None, :], params['b_hh'][None, :],
        params['w_attn'],
    )

    # vocab projection: bf16 MXU inputs, f32 accumulation, V-tiled parallel grid
    w_vocab_t = params['w_vocab'].T.astype(jnp.bfloat16)                       # (2H, V)
    b_vocab = params['b_vocab'][None, :].astype(jnp.float32)                   # (1, V)
    vt = v_tile if (V % v_tile == 0) else V

    logits = pl.pallas_call(
        vocab_proj_kernel,
        out_shape=jax.ShapeDtypeStruct((B, T, V), jnp.float32),
        grid=(V // vt,),
        in_specs=[
            pl.BlockSpec((B * T, 2 * H), lambda j: (0, 0)),
            pl.BlockSpec((2 * H, vt), lambda j: (0, j)),
            pl.BlockSpec((1, vt), lambda j: (0, j)),
        ],
        out_specs=pl.BlockSpec((B, T, vt), lambda j: (0, 0, j)),
        compiler_params=pltpu.CompilerParams(
            dimension_semantics=("parallel",),
            vmem_limit_bytes=32 * 1024 * 1024),
    )(co, w_vocab_t, b_vocab)
    return logits                                                              # (B, T, V)


# --------------------------------------------------------------------------------------
# Pure-JAX reference (same math, batch-major) for a correctness check
# --------------------------------------------------------------------------------------
def reference_forward(params, img_rep, targets, real_lens):
    B, T = targets.shape
    H = params['w_hh'].shape[1]
    _, top_idx = jax.lax.top_k(img_rep, TOPK_CLASSES)
    class_emb = jnp.mean(params['class_emb'][top_idx], axis=1)
    proj = class_emb @ params['w_proj'].T + params['b_proj']
    mu = proj.mean(0, keepdims=True)
    var = ((proj - mu) ** 2).mean(0, keepdims=True)
    x_bn = params['gamma'] * (proj - mu) / jnp.sqrt(var + BN_EPS) + params['beta']
    emb_inps = jnp.concatenate([x_bn[:, None, :], params['emb'][targets[:, :-1]]], axis=1)
    mask = (jnp.arange(T)[None, :] < real_lens[:, None]).astype(jnp.float32)

    h = jnp.zeros((B, H), jnp.float32)
    outs = []
    for t in range(T):
        x = emb_inps[:, t]
        gi = x @ params['w_ih'].T + params['b_ih']
        gh = h @ params['w_hh'].T + params['b_hh']
        r = jax.nn.sigmoid(gi[:, :H] + gh[:, :H])
        z = jax.nn.sigmoid(gi[:, H:2 * H] + gh[:, H:2 * H])
        n = jnp.tanh(gi[:, 2 * H:] + r * gh[:, 2 * H:])
        hn = (1.0 - z) * n + z * h
        m = mask[:, t:t + 1]
        outs.append(m * hn)
        h = m * hn + (1.0 - m) * h
    out = jnp.stack(outs, axis=1)                                              # (B, T, H)

    ctxs = []
    for t in range(T):
        if t == 0:
            ct = jnp.zeros((B, H), jnp.float32)
        else:
            ht = out[:, t]
            q = ht @ params['w_attn']
            sc = jnp.einsum('bh,bjh->bj', q, out[:, :t])
            alpha = jax.nn.softmax(sc, axis=1)
            ct = jnp.einsum('bj,bjh->bh', alpha, out[:, :t])
        ctxs.append(ct)
    ctx = jnp.stack(ctxs, axis=1)
    co = jnp.concatenate([out, ctx], axis=2)
    return co @ params['w_vocab'].T + params['b_vocab']


# --------------------------------------------------------------------------------------
def init_params(key, num_classes, vocab_size, word_vec_size, output_size):
    E, H, V = word_vec_size, output_size, vocab_size
    ks = jax.random.split(key, 10)
    u = lambda k, shape, lim: jax.random.uniform(k, shape, jnp.float32, -lim, lim)
    return {
        'class_emb': jax.random.normal(ks[0], (num_classes, E), jnp.float32),
        'emb':       jax.random.normal(ks[1], (V, E), jnp.float32),
        'w_proj':    u(ks[2], (E, E), 1.0 / jnp.sqrt(E)),
        'b_proj':    u(ks[3], (E,), 1.0 / jnp.sqrt(E)),
        'gamma':     jnp.ones((E,), jnp.float32),
        'beta':      jnp.zeros((E,), jnp.float32),
        'w_ih':      u(ks[4], (3 * H, E), 1.0 / jnp.sqrt(H)),
        'w_hh':      u(ks[5], (3 * H, H), 1.0 / jnp.sqrt(H)),
        'b_ih':      u(ks[6], (3 * H,), 1.0 / jnp.sqrt(H)),
        'b_hh':      u(ks[7], (3 * H,), 1.0 / jnp.sqrt(H)),
        'w_attn':    jax.random.uniform(ks[8], (H, H), jnp.float32, 0.0, 1.0),  # torch.rand init
        'w_vocab':   u(ks[9], (V, 2 * H), 1.0 / jnp.sqrt(2 * H)),
        'b_vocab':   jnp.zeros((V,), jnp.float32),
    }


if __name__ == "__main__":
    # small but sublane/lane aligned demo shapes (B mult of 8, E/H/V mult of 128)
    B, T = 8, 8
    NUM_CLASSES = 1000          # image-logit classes (topk source, mirrors nn.Embedding(1000, E))
    VOCAB = 256
    E = 128                     # word_vec_size
    H = 128                     # output_size (GRU hidden)

    key = jax.random.PRNGKey(0)
    kp, ki, kt = jax.random.split(key, 3)
    params = init_params(kp, NUM_CLASSES, VOCAB, E, H)

    img_rep = jax.random.normal(ki, (B, NUM_CLASSES), jnp.float32)
    targets = jax.random.randint(kt, (B, T), 0, VOCAB, dtype=jnp.int32)
    real_lens = jnp.array([8, 5, 7, 3, 8, 2, 6, 4], dtype=jnp.int32)

    out = attention_decoder_forward(params, img_rep, targets, real_lens)
    out = jax.block_until_ready(out)
    assert out.shape == (B, T, VOCAB), out.shape

    ref = jax.block_until_ready(reference_forward(params, img_rep, targets, real_lens))
    max_err = float(jnp.max(jnp.abs(out - ref)))
    assert max_err < 5e-2, f"max abs err {max_err}"

    print("KERNEL_OK")
</pallas_src>

<mosaic_0001>
module attributes {stable_mosaic.version = 11 : i64} {
  func.func @decoder_core_kernel(%arg0: memref<8x128xf32, #tpu.memory_space<vmem>>, %arg1: memref<7x8x128xf32, #tpu.memory_space<vmem>>, %arg2: memref<8x8x1xf32, #tpu.memory_space<vmem>>, %arg3: memref<128x128xf32, #tpu.memory_space<vmem>>, %arg4: memref<1x128xf32, #tpu.memory_space<vmem>>, %arg5: memref<1x128xf32, #tpu.memory_space<vmem>>, %arg6: memref<1x128xf32, #tpu.memory_space<vmem>>, %arg7: memref<128x384xf32, #tpu.memory_space<vmem>>, %arg8: memref<128x384xf32, #tpu.memory_space<vmem>>, %arg9: memref<1x384xf32, #tpu.memory_space<vmem>>, %arg10: memref<1x384xf32, #tpu.memory_space<vmem>>, %arg11: memref<128x128xf32, #tpu.memory_space<vmem>>, %arg12: memref<64x256xbf16, #tpu.memory_space<vmem>>, %arg13: memref<8x8x384xf32, #tpu.memory_space<vmem>>, %arg14: memref<8x8x128xf32, #tpu.memory_space<vmem>>) attributes {dimension_semantics = [], scalar_prefetch = 0 : i64, scratch_operands = 2 : i64, tpu.core_type = #tpu.core_type<tc>} {
    %c0 = arith.constant 0 : index
    %c0_0 = arith.constant 0 : index
    %0 = vector.load %arg0[%c0, %c0_0] : memref<8x128xf32, #tpu.memory_space<vmem>>, vector<8x128xf32>
    %c0_1 = arith.constant 0 : index
    %c0_2 = arith.constant 0 : index
    %1 = vector.load %arg3[%c0_1, %c0_2] : memref<128x128xf32, #tpu.memory_space<vmem>>, vector<128x128xf32>
    %cst = arith.constant dense<0.000000e+00> : vector<8x128xf32>
    %2 = tpu.matmul %0, %1, %cst {dimension_numbers = #tpu.dot_dimension_numbers<[1], [0], [0], [1], [0, 0, 1, 1], [], []>} : vector<8x128xf32>, vector<128x128xf32>, vector<8x128xf32> -> vector<8x128xf32>
    %c0_3 = arith.constant 0 : index
    %c0_4 = arith.constant 0 : index
    %3 = vector.load %arg4[%c0_3, %c0_4] : memref<1x128xf32, #tpu.memory_space<vmem>>, vector<1x128xf32>
    %4 = vector.broadcast %3 : vector<1x128xf32> to vector<8x128xf32>
    %5 = arith.addf %2, %4 : vector<8x128xf32>
    %cst_5 = arith.constant dense<0.000000e+00> : vector<128xf32>
    %6 = vector.multi_reduction <add>, %5, %cst_5 [0] : vector<8x128xf32> to vector<128xf32>
    %7 = vector.shape_cast %6 : vector<128xf32> to vector<1x128xf32>
    %cst_6 = arith.constant 8.000000e+00 : f32
    %8 = vector.broadcast %cst_6 : f32 to vector<1x128xf32>
    %9 = arith.divf %7, %8 : vector<1x128xf32>
    %10 = vector.broadcast %9 : vector<1x128xf32> to vector<8x128xf32>
    %11 = arith.subf %5, %10 : vector<8x128xf32>
    %12 = arith.mulf %11, %11 : vector<8x128xf32>
    %cst_7 = arith.constant dense<0.000000e+00> : vector<128xf32>
    %13 = vector.multi_reduction <add>, %12, %cst_7 [0] : vector<8x128xf32> to vector<128xf32>
    %14 = vector.shape_cast %13 : vector<128xf32> to vector<1x128xf32>
    %cst_8 = arith.constant 8.000000e+00 : f32
    %15 = vector.broadcast %cst_8 : f32 to vector<1x128xf32>
    %16 = arith.divf %14, %15 : vector<1x128xf32>
    %c0_9 = arith.constant 0 : index
    %c0_10 = arith.constant 0 : index
    %17 = vector.load %arg5[%c0_9, %c0_10] : memref<1x128xf32, #tpu.memory_space<vmem>>, vector<1x128xf32>
    %18 = vector.broadcast %9 : vector<1x128xf32> to vector<8x128xf32>
    %19 = arith.subf %5, %18 : vector<8x128xf32>
    %20 = vector.broadcast %17 : vector<1x128xf32> to vector<8x128xf32>
    %21 = arith.mulf %20, %19 : vector<8x128xf32>
    %cst_11 = arith.constant 9.99999974E-6 : f32
    %22 = vector.broadcast %cst_11 : f32 to vector<1x128xf32>
    %23 = arith.addf %16, %22 : vector<1x128xf32>
    %24 = math.rsqrt %23 : vector<1x128xf32>
    %25 = vector.broadcast %24 : vector<1x128xf32> to vector<8x128xf32>
    %26 = arith.mulf %21, %25 : vector<8x128xf32>
    %c0_12 = arith.constant 0 : index
    %c0_13 = arith.constant 0 : index
    %27 = vector.load %arg6[%c0_12, %c0_13] : memref<1x128xf32, #tpu.memory_space<vmem>>, vector<1x128xf32>
    %28 = vector.broadcast %27 : vector<1x128xf32> to vector<8x128xf32>
    %29 = arith.addf %26, %28 : vector<8x128xf32>
    %30 = vector.shape_cast %29 : vector<8x128xf32> to vector<1x8x128xf32>
    %c0_14 = arith.constant 0 : index
    %c0_15 = arith.constant 0 : index
    %c0_16 = arith.constant 0 : index
    %31 = vector.load %arg1[%c0_14, %c0_15, %c0_16] : memref<7x8x128xf32, #tpu.memory_space<vmem>>, vector<7x8x128xf32>
    %32 = tpu.concatenate %30, %31 in 0 : vector<1x8x128xf32>, vector<7x8x128xf32> -> vector<8x8x128xf32>
    %33 = vector.shape_cast %32 : vector<8x8x128xf32> to vector<64x128xf32>
    %c0_17 = arith.constant 0 : index
    %c0_18 = arith.constant 0 : index
    %34 = vector.load %arg7[%c0_17, %c0_18] : memref<128x384xf32, #tpu.memory_space<vmem>>, vector<128x384xf32>
    %cst_19 = arith.constant dense<0.000000e+00> : vector<64x384xf32>
    %35 = tpu.matmul %33, %34, %cst_19 {dimension_numbers = #tpu.dot_dimension_numbers<[1], [0], [0], [1], [0, 0, 1, 1], [], []>} : vector<64x128xf32>, vector<128x384xf32>, vector<64x384xf32> -> vector<64x384xf32>
    %c0_20 = arith.constant 0 : index
    %c0_21 = arith.constant 0 : index
    %36 = vector.load %arg9[%c0_20, %c0_21] : memref<1x384xf32, #tpu.memory_space<vmem>>, vector<1x384xf32>
    %37 = vector.broadcast %36 : vector<1x384xf32> to vector<64x384xf32>
    %38 = arith.addf %35, %37 : vector<64x384xf32>
    %39 = vector.shape_cast %38 : vector<64x384xf32> to vector<8x8x384xf32>
    %c0_22 = arith.constant 0 : index
    %c0_23 = arith.constant 0 : index
    %c0_24 = arith.constant 0 : index
    %40 = vector.load %arg13[%c0_22, %c0_23, %c0_24] : memref<8x8x384xf32, #tpu.memory_space<vmem>>, vector<8x8x384xf32>
    tpu.vector_store %arg13[%c0_22, %c0_23, %c0_24], %39 {strides = array<i32>} : memref<8x8x384xf32, #tpu.memory_space<vmem>>, vector<8x8x384xf32>,
    %cst_25 = arith.constant 0.000000e+00 : f32
    %41 = vector.broadcast %cst_25 : f32 to vector<8x128xf32>
    %c0_26 = arith.constant 0 : index
    %c0_27 = arith.constant 0 : index
    %c0_28 = arith.constant 0 : index
    %42 = vector.load %arg13[%c0_26, %c0_27, %c0_28] : memref<8x8x384xf32, #tpu.memory_space<vmem>>, vector<1x8x384xf32>
    %43 = vector.shape_cast %42 : vector<1x8x384xf32> to vector<8x384xf32>
    %c0_29 = arith.constant 0 : index
    %c0_30 = arith.constant 0 : index
    %44 = vector.load %arg8[%c0_29, %c0_30] : memref<128x384xf32, #tpu.memory_space<vmem>>, vector<128x384xf32>
    %cst_31 = arith.constant dense<0.000000e+00> : vector<8x384xf32>
    %45 = tpu.matmul %41, %44, %cst_31 {dimension_numbers = #tpu.dot_dimension_numbers<[1], [0], [0], [1], [0, 0, 1, 1], [], []>} : vector<8x128xf32>, vector<128x384xf32>, vector<8x384xf32> -> vector<8x384xf32>
    %c0_32 = arith.constant 0 : index
    %c0_33 = arith.constant 0 : index
    %46 = vector.load %arg10[%c0_32, %c0_33] : memref<1x384xf32, #tpu.memory_space<vmem>>, vector<1x384xf32>
    %47 = vector.broadcast %46 : vector<1x384xf32> to vector<8x384xf32>
    %48 = arith.addf %45, %47 : vector<8x384xf32>
    %49 = vector.extract_strided_slice %43 {offsets = [0, 0], sizes = [8, 128], strides = [1, 1]} : vector<8x384xf32> to vector<8x128xf32>
    %50 = vector.extract_strided_slice %48 {offsets = [0, 0], sizes = [8, 128], strides = [1, 1]} : vector<8x384xf32> to vector<8x128xf32>
    %51 = arith.addf %49, %50 : vector<8x128xf32>
    %52 = arith.negf %51 : vector<8x128xf32>
    %53 = math.exp %52 : vector<8x128xf32>
    %cst_34 = arith.constant 1.000000e+00 : f32
    %54 = vector.broadcast %cst_34 : f32 to vector<8x128xf32>
    %55 = arith.addf %54, %53 : vector<8x128xf32>
    %56 = arith.divf %54, %55 : vector<8x128xf32>
    %57 = vector.extract_strided_slice %43 {offsets = [0, 128], sizes = [8, 128], strides = [1, 1]} : vector<8x384xf32> to vector<8x128xf32>
    %58 = vector.extract_strided_slice %48 {offsets = [0, 128], sizes = [8, 128], strides = [1, 1]} : vector<8x384xf32> to vector<8x128xf32>
    %59 = arith.addf %57, %58 : vector<8x128xf32>
    %60 = arith.negf %59 : vector<8x128xf32>
    %61 = math.exp %60 : vector<8x128xf32>
    %cst_35 = arith.constant 1.000000e+00 : f32
    %62 = vector.broadcast %cst_35 : f32 to vector<8x128xf32>
    %63 = arith.addf %62, %61 : vector<8x128xf32>
    %64 = arith.divf %62, %63 : vector<8x128xf32>
    %65 = vector.extract_strided_slice %43 {offsets = [0, 256], sizes = [8, 128], strides = [1, 1]} : vector<8x384xf32> to vector<8x128xf32>
    %66 = vector.extract_strided_slice %48 {offsets = [0, 256], sizes = [8, 128], strides = [1, 1]} : vector<8x384xf32> to vector<8x128xf32>
    %67 = arith.mulf %56, %66 : vector<8x128xf32>
    %68 = arith.addf %65, %67 : vector<8x128xf32>
    %69 = math.tanh %68 : vector<8x128xf32>
    %cst_36 = arith.constant 1.000000e+00 : f32
    %70 = vector.broadcast %cst_36 : f32 to vector<8x128xf32>
    %71 = arith.subf %70, %64 : vector<8x128xf32>
    %72 = arith.mulf %71, %69 : vector<8x128xf32>
    %73 = arith.mulf %64, %41 : vector<8x128xf32>
    %74 = arith.addf %72, %73 : vector<8x128xf32>
    %c0_37 = arith.constant 0 : index
    %c0_38 = arith.constant 0 : index
    %c0_39 = arith.constant 0 : index
    %75 = vector.load %arg2[%c0_37, %c0_38, %c0_39] : memref<8x8x1xf32, #tpu.memory_space<vmem>>, vector<1x8x1xf32>
    %76 = vector.shape_cast %75 : vector<1x8x1xf32> to vector<8x1xf32>
    %77 = vector.broadcast %76 : vector<8x1xf32> to vector<8x128xf32>
    %78 = arith.mulf %77, %74 : vector<8x128xf32>
    %c0_40 = arith.constant 0 : index
    %c0_41 = arith.constant 0 : index
    %c0_42 = arith.constant 0 : index
    %79 = vector.load %arg14[%c0_40, %c0_41, %c0_42] : memref<8x8x128xf32, #tpu.memory_space<vmem>>, vector<8x1x128xf32>
    %80 = vector.shape_cast %79 : vector<8x1x128xf32> to vector<8x128xf32>
    %81 = vector.shape_cast %78 : vector<8x128xf32> to vector<8x1x128xf32>
    tpu.vector_store %arg14[%c0_40, %c0_41, %c0_42], %81 {strides = array<i32>} : memref<8x8x128xf32, #tpu.memory_space<vmem>>, vector<8x1x128xf32>,
    %cst_43 = arith.constant 1.000000e+00 : f32
    %82 = vector.broadcast %cst_43 : f32 to vector<8x1xf32>
    %83 = arith.subf %82, %76 : vector<8x1xf32>
    %84 = vector.broadcast %83 : vector<8x1xf32> to vector<8x128xf32>
    %85 = arith.mulf %84, %41 : vector<8x128xf32>
    %86 = arith.addf %78, %85 : vector<8x128xf32>
    %c1 = arith.constant 1 : index
    %c0_44 = arith.constant 0 : index
    %c0_45 = arith.constant 0 : index
    %87 = vector.load %arg13[%c1, %c0_44, %c0_45] : memref<8x8x384xf32, #tpu.memory_space<vmem>>, vector<1x8x384xf32>
    %88 = vector.shape_cast %87 : vector<1x8x384xf32> to vector<8x384xf32>
    %c0_46 = arith.constant 0 : index
    %c0_47 = arith.constant 0 : index
    %89 = vector.load %arg8[%c0_46, %c0_47] : memref<128x384xf32, #tpu.memory_space<vmem>>, vector<128x384xf32>
    %cst_48 = arith.constant dense<0.000000e+00> : vector<8x384xf32>
    %90 = tpu.matmul %86, %89, %cst_48 {dimension_numbers = #tpu.dot_dimension_numbers<[1], [0], [0], [1], [0, 0, 1, 1], [], []>} : vector<8x128xf32>, vector<128x384xf32>, vector<8x384xf32> -> vector<8x384xf32>
    %c0_49 = arith.constant 0 : index
    %c0_50 = arith.constant 0 : index
    %91 = vector.load %arg10[%c0_49, %c0_50] : memref<1x384xf32, #tpu.memory_space<vmem>>, vector<1x384xf32>
    %92 = vector.broadcast %91 : vector<1x384xf32> to vector<8x384xf32>
    %93 = arith.addf %90, %92 : vector<8x384xf32>
    %94 = vector.extract_strided_slice %88 {offsets = [0, 0], sizes = [8, 128], strides = [1, 1]} : vector<8x384xf32> to vector<8x128xf32>
    %95 = vector.extract_strided_slice %93 {offsets = [0, 0], sizes = [8, 128], strides = [1, 1]} : vector<8x384xf32> to vector<8x128xf32>
    %96 = arith.addf %94, %95 : vector<8x128xf32>
    %97 = arith.negf %96 : vector<8x128xf32>
    %98 = math.exp %97 : vector<8x128xf32>
    %cst_51 = arith.constant 1.000000e+00 : f32
    %99 = vector.broadcast %cst_51 : f32 to vector<8x128xf32>
    %100 = arith.addf %99, %98 : vector<8x128xf32>
    %101 = arith.divf %99, %100 : vector<8x128xf32>
    %102 = vector.extract_strided_slice %88 {offsets = [0, 128], sizes = [8, 128], strides = [1, 1]} : vector<8x384xf32> to vector<8x128xf32>
    %103 = vector.extract_strided_slice %93 {offsets = [0, 128], sizes = [8, 128], strides = [1, 1]} : vector<8x384xf32> to vector<8x128xf32>
    %104 = arith.addf %102, %103 : vector<8x128xf32>
    %105 = arith.negf %104 : vector<8x128xf32>
    %106 = math.exp %105 : vector<8x128xf32>
    %cst_52 = arith.constant 1.000000e+00 : f32
    %107 = vector.broadcast %cst_52 : f32 to vector<8x128xf32>
    %108 = arith.addf %107, %106 : vector<8x128xf32>
    %109 = arith.divf %107, %108 : vector<8x128xf32>
    %110 = vector.extract_strided_slice %88 {offsets = [0, 256], sizes = [8, 128], strides = [1, 1]} : vector<8x384xf32> to vector<8x128xf32>
    %111 = vector.extract_strided_slice %93 {offsets = [0, 256], sizes = [8, 128], strides = [1, 1]} : vector<8x384xf32> to vector<8x128xf32>
    %112 = arith.mulf %101, %111 : vector<8x128xf32>
    %113 = arith.addf %110, %112 : vector<8x128xf32>
    %114 = math.tanh %113 : vector<8x128xf32>
    %cst_53 = arith.constant 1.000000e+00 : f32
    %115 = vector.broadcast %cst_53 : f32 to vector<8x128xf32>
    %116 = arith.subf %115, %109 : vector<8x128xf32>
    %117 = arith.mulf %116, %114 : vector<8x128xf32>
    %118 = arith.mulf %109, %86 : vector<8x128xf32>
    %119 = arith.addf %117, %118 : vector<8x128xf32>
    %c1_54 = arith.constant 1 : index
    %c0_55 = arith.constant 0 : index
    %c0_56 = arith.constant 0 : index
    %120 = vector.load %arg2[%c1_54, %c0_55, %c0_56] : memref<8x8x1xf32, #tpu.memory_space<vmem>>, vector<1x8x1xf32>
    %121 = vector.shape_cast %120 : vector<1x8x1xf32> to vector<8x1xf32>
    %122 = vector.broadcast %121 : vector<8x1xf32> to vector<8x128xf32>
    %123 = arith.mulf %122, %119 : vector<8x128xf32>
    %c0_57 = arith.constant 0 : index
    %c1_58 = arith.constant 1 : index
    %c0_59 = arith.constant 0 : index
    %124 = vector.load %arg14[%c0_57, %c1_58, %c0_59] : memref<8x8x128xf32, #tpu.memory_space<vmem>>, vector<8x1x128xf32>
    %125 = vector.shape_cast %124 : vector<8x1x128xf32> to vector<8x128xf32>
    %126 = vector.shape_cast %123 : vector<8x128xf32> to vector<8x1x128xf32>
    tpu.vector_store %arg14[%c0_57, %c1_58, %c0_59], %126 {strides = array<i32>} : memref<8x8x128xf32, #tpu.memory_space<vmem>>, vector<8x1x128xf32>,
    %cst_60 = arith.constant 1.000000e+00 : f32
    %127 = vector.broadcast %cst_60 : f32 to vector<8x1xf32>
    %128 = arith.subf %127, %121 : vector<8x1xf32>
    %129 = vector.broadcast %128 : vector<8x1xf32> to vector<8x128xf32>
    %130 = arith.mulf %129, %86 : vector<8x128xf32>
    %131 = arith.addf %123, %130 : vector<8x128xf32>
    %c2 = arith.constant 2 : index
    %c0_61 = arith.constant 0 : index
    %c0_62 = arith.constant 0 : index
    %132 = vector.load %arg13[%c2, %c0_61, %c0_62] : memref<8x8x384xf32, #tpu.memory_space<vmem>>, vector<1x8x384xf32>
    %133 = vector.shape_cast %132 : vector<1x8x384xf32> to vector<8x384xf32>
    %c0_63 = arith.constant 0 : index
    %c0_64 = arith.constant 0 : index
    %134 = vector.load %arg8[%c0_63, %c0_64] : memref<128x384xf32, #tpu.memory_space<vmem>>, vector<128x384xf32>
    %cst_65 = arith.constant dense<0.000000e+00> : vector<8x384xf32>
    %135 = tpu.matmul %131, %134, %cst_65 {dimension_numbers = #tpu.dot_dimension_numbers<[1], [0], [0], [1], [0, 0, 1, 1], [], []>} : vector<8x128xf32>, vector<128x384xf32>, vector<8x384xf32> -> vector<8x384xf32>
    %c0_66 = arith.constant 0 : index
    %c0_67 = arith.constant 0 : index
    %136 = vector.load %arg10[%c0_66, %c0_67] : memref<1x384xf32, #tpu.memory_space<vmem>>, vector<1x384xf32>
    %137 = vector.broadcast %136 : vector<1x384xf32> to vector<8x384xf32>
    %138 = arith.addf %135, %137 : vector<8x384xf32>
    %139 = vector.extract_strided_slice %133 {offsets = [0, 0], sizes = [8, 128], strides = [1, 1]} : vector<8x384xf32> to vector<8x128xf32>
    %140 = vector.extract_strided_slice %138 {offsets = [0, 0], sizes = [8, 128], strides = [1, 1]} : vector<8x384xf32> to vector<8x128xf32>
    %141 = arith.addf %139, %140 : vector<8x128xf32>
    %142 = arith.negf %141 : vector<8x128xf32>
    %143 = math.exp %142 : vector<8x128xf32>
    %cst_68 = arith.constant 1.000000e+00 : f32
    %144 = vector.broadcast %cst_68 : f32 to vector<8x128xf32>
    %145 = arith.addf %144, %143 : vector<8x128xf32>
    %146 = arith.divf %144, %145 : vector<8x128xf32>
    %147 = vector.extract_strided_slice %133 {offsets = [0, 128], sizes = [8, 128], strides = [1, 1]} : vector<8x384xf32> to vector<8x128xf32>
    %148 = vector.extract_strided_slice %138 {offsets = [0, 128], sizes = [8, 128], strides = [1, 1]} : vector<8x384xf32> to vector<8x128xf32>
    %149 = arith.addf %147, %148 : vector<8x128xf32>
    %150 = arith.negf %149 : vector<8x128xf32>
    %151 = math.exp %150 : vector<8x128xf32>
    %cst_69 = arith.constant 1.000000e+00 : f32
    %152 = vector.broadcast %cst_69 : f32 to vector<8x128xf32>
    %153 = arith.addf %152, %151 : vector<8x128xf32>
    %154 = arith.divf %152, %153 : vector<8x128xf32>
    %155 = vector.extract_strided_slice %133 {offsets = [0, 256], sizes = [8, 128], strides = [1, 1]} : vector<8x384xf32> to vector<8x128xf32>
    %156 = vector.extract_strided_slice %138 {offsets = [0, 256], sizes = [8, 128], strides = [1, 1]} : vector<8x384xf32> to vector<8x128xf32>
    %157 = arith.mulf %146, %156 : vector<8x128xf32>
    %158 = arith.addf %155, %157 : vector<8x128xf32>
    %159 = math.tanh %158 : vector<8x128xf32>
    %cst_70 = arith.constant 1.000000e+00 : f32
    %160 = vector.broadcast %cst_70 : f32 to vector<8x128xf32>
    %161 = arith.subf %160, %154 : vector<8x128xf32>
    %162 = arith.mulf %161, %159 : vector<8x128xf32>
    %163 = arith.mulf %154, %131 : vector<8x128xf32>
    %164 = arith.addf %162, %163 : vector<8x128xf32>
    %c2_71 = arith.constant 2 : index
    %c0_72 = arith.constant 0 : index
    %c0_73 = arith.constant 0 : index
    %165 = vector.load %arg2[%c2_71, %c0_72, %c0_73] : memref<8x8x1xf32, #tpu.memory_space<vmem>>, vector<1x8x1xf32>
    %166 = vector.shape_cast %165 : vector<1x8x1xf32> to vector<8x1xf32>
    %167 = vector.broadcast %166 : vector<8x1xf32> to vector<8x128xf32>
    %168 = arith.mulf %167, %164 : vector<8x128xf32>
    %c0_74 = arith.constant 0 : index
    %c2_75 = arith.constant 2 : index
    %c0_76 = arith.constant 0 : index
    %169 = vector.load %arg14[%c0_74, %c2_75, %c0_76] : memref<8x8x128xf32, #tpu.memory_space<vmem>>, vector<8x1x128xf32>
    %170 = vector.shape_cast %169 : vector<8x1x128xf32> to vector<8x128xf32>
    %171 = vector.shape_cast %168 : vector<8x128xf32> to vector<8x1x128xf32>
    tpu.vector_store %arg14[%c0_74, %c2_75, %c0_76], %171 {strides = array<i32>} : memref<8x8x128xf32, #tpu.memory_space<vmem>>, vector<8x1x128xf32>,
    %cst_77 = arith.constant 1.000000e+00 : f32
    %172 = vector.broadcast %cst_77 : f32 to vector<8x1xf32>
    %173 = arith.subf %172, %166 : vector<8x1xf32>
    %174 = vector.broadcast %173 : vector<8x1xf32> to vector<8x128xf32>
    %175 = arith.mulf %174, %131 : vector<8x128xf32>
    %176 = arith.addf %168, %175 : vector<8x128xf32>
    %c3 = arith.constant 3 : index
    %c0_78 = arith.constant 0 : index
    %c0_79 = arith.constant 0 : index
    %177 = vector.load %arg13[%c3, %c0_78, %c0_79] : memref<8x8x384xf32, #tpu.memory_space<vmem>>, vector<1x8x384xf32>
    %178 = vector.shape_cast %177 : vector<1x8x384xf32> to vector<8x384xf32>
    %c0_80 = arith.constant 0 : index
    %c0_81 = arith.constant 0 : index
    %179 = vector.load %arg8[%c0_80, %c0_81] : memref<128x384xf32, #tpu.memory_space<vmem>>, vector<128x384xf32>
    %cst_82 = arith.constant dense<0.000000e+00> : vector<8x384xf32>
    %180 = tpu.matmul %176, %179, %cst_82 {dimension_numbers = #tpu.dot_dimension_numbers<[1], [0], [0], [1], [0, 0, 1, 1], [], []>} : vector<8x128xf32>, vector<128x384xf32>, vector<8x384xf32> -> vector<8x384xf32>
    %c0_83 = arith.constant 0 : index
    %c0_84 = arith.constant 0 : index
    %181 = vector.load %arg10[%c0_83, %c0_84] : memref<1x384xf32, #tpu.memory_space<vmem>>, vector<1x384xf32>
    %182 = vector.broadcast %181 : vector<1x384xf32> to vector<8x384xf32>
    %183 = arith.addf %180, %182 : vector<8x384xf32>
    %184 = vector.extract_strided_slice %178 {offsets = [0, 0], sizes = [8, 128], strides = [1, 1]} : vector<8x384xf32> to vector<8x128xf32>
    %185 = vector.extract_strided_slice %183 {offsets = [0, 0], sizes = [8, 128], strides = [1, 1]} : vector<8x384xf32> to vector<8x128xf32>
    %186 = arith.addf %184, %185 : vector<8x128xf32>
    %187 = arith.negf %186 : vector<8x128xf32>
    %188 = math.exp %187 : vector<8x128xf32>
    %cst_85 = arith.constant 1.000000e+00 : f32
    %189 = vector.broadcast %cst_85 : f32 to vector<8x128xf32>
    %190 = arith.addf %189, %188 : vector<8x128xf32>
    %191 = arith.divf %189, %190 : vector<8x128xf32>
    %192 = vector.extract_strided_slice %178 {offsets = [0, 128], sizes = [8, 128], strides = [1, 1]} : vector<8x384xf32> to vector<8x128xf32>
    %193 = vector.extract_strided_slice %183 {offsets = [0, 128], sizes = [8, 128], strides = [1, 1]} : vector<8x384xf32> to vector<8x128xf32>
    %194 = arith.addf %192, %193 : vector<8x128xf32>
    %195 = arith.negf %194 : vector<8x128xf32>
    %196 = math.exp %195 : vector<8x128xf32>
    %cst_86 = arith.constant 1.000000e+00 : f32
    %197 = vector.broadcast %cst_86 : f32 to vector<8x128xf32>
    %198 = arith.addf %197, %196 : vector<8x128xf32>
    %199 = arith.divf %197, %198 : vector<8x128xf32>
    %200 = vector.extract_strided_slice %178 {offsets = [0, 256], sizes = [8, 128], strides = [1, 1]} : vector<8x384xf32> to vector<8x128xf32>
    %201 = vector.extract_strided_slice %183 {offsets = [0, 256], sizes = [8, 128], strides = [1, 1]} : vector<8x384xf32> to vector<8x128xf32>
    %202 = arith.mulf %191, %201 : vector<8x128xf32>
    %203 = arith.addf %200, %202 : vector<8x128xf32>
    %204 = math.tanh %203 : vector<8x128xf32>
    %cst_87 = arith.constant 1.000000e+00 : f32
    %205 = vector.broadcast %cst_87 : f32 to vector<8x128xf32>
    %206 = arith.subf %205, %199 : vector<8x128xf32>
    %207 = arith.mulf %206, %204 : vector<8x128xf32>
    %208 = arith.mulf %199, %176 : vector<8x128xf32>
    %209 = arith.addf %207, %208 : vector<8x128xf32>
    %c3_88 = arith.constant 3 : index
    %c0_89 = arith.constant 0 : index
    %c0_90 = arith.constant 0 : index
    %210 = vector.load %arg2[%c3_88, %c0_89, %c0_90] : memref<8x8x1xf32, #tpu.memory_space<vmem>>, vector<1x8x1xf32>
    %211 = vector.shape_cast %210 : vector<1x8x1xf32> to vector<8x1xf32>
    %212 = vector.broadcast %211 : vector<8x1xf32> to vector<8x128xf32>
    %213 = arith.mulf %212, %209 : vector<8x128xf32>
    %c0_91 = arith.constant 0 : index
    %c3_92 = arith.constant 3 : index
    %c0_93 = arith.constant 0 : index
    %214 = vector.load %arg14[%c0_91, %c3_92, %c0_93] : memref<8x8x128xf32, #tpu.memory_space<vmem>>, vector<8x1x128xf32>
    %215 = vector.shape_cast %214 : vector<8x1x128xf32> to vector<8x128xf32>
    %216 = vector.shape_cast %213 : vector<8x128xf32> to vector<8x1x128xf32>
    tpu.vector_store %arg14[%c0_91, %c3_92, %c0_93], %216 {strides = array<i32>} : memref<8x8x128xf32, #tpu.memory_space<vmem>>, vector<8x1x128xf32>,
    %cst_94 = arith.constant 1.000000e+00 : f32
    %217 = vector.broadcast %cst_94 : f32 to vector<8x1xf32>
    %218 = arith.subf %217, %211 : vector<8x1xf32>
    %219 = vector.broadcast %218 : vector<8x1xf32> to vector<8x128xf32>
    %220 = arith.mulf %219, %176 : vector<8x128xf32>
    %221 = arith.addf %213, %220 : vector<8x128xf32>
    %c4 = arith.constant 4 : index
    %c0_95 = arith.constant 0 : index
    %c0_96 = arith.constant 0 : index
    %222 = vector.load %arg13[%c4, %c0_95, %c0_96] : memref<8x8x384xf32, #tpu.memory_space<vmem>>, vector<1x8x384xf32>
    %223 = vector.shape_cast %222 : vector<1x8x384xf32> to vector<8x384xf32>
    %c0_97 = arith.constant 0 : index
    %c0_98 = arith.constant 0 : index
    %224 = vector.load %arg8[%c0_97, %c0_98] : memref<128x384xf32, #tpu.memory_space<vmem>>, vector<128x384xf32>
    %cst_99 = arith.constant dense<0.000000e+00> : vector<8x384xf32>
    %225 = tpu.matmul %221, %224, %cst_99 {dimension_numbers = #tpu.dot_dimension_numbers<[1], [0], [0], [1], [0, 0, 1, 1], [], []>} : vector<8x128xf32>, vector<128x384xf32>, vector<8x384xf32> -> vector<8x384xf32>
    %c0_100 = arith.constant 0 : index
    %c0_101 = arith.constant 0 : index
    %226 = vector.load %arg10[%c0_100, %c0_101] : memref<1x384xf32, #tpu.memory_space<vmem>>, vector<1x384xf32>
    %227 = vector.broadcast %226 : vector<1x384xf32> to vector<8x384xf32>
    %228 = arith.addf %225, %227 : vector<8x384xf32>
    %229 = vector.extract_strided_slice %223 {offsets = [0, 0], sizes = [8, 128], strides = [1, 1]} : vector<8x384xf32> to vector<8x128xf32>
    %230 = vector.extract_strided_slice %228 {offsets = [0, 0], sizes = [8, 128], strides = [1, 1]} : vector<8x384xf32> to vector<8x128xf32>
    %231 = arith.addf %229, %230 : vector<8x128xf32>
    %232 = arith.negf %231 : vector<8x128xf32>
    %233 = math.exp %232 : vector<8x128xf32>
    %cst_102 = arith.constant 1.000000e+00 : f32
    %234 = vector.broadcast %cst_102 : f32 to vector<8x128xf32>
    %235 = arith.addf %234, %233 : vector<8x128xf32>
    %236 = arith.divf %234, %235 : vector<8x128xf32>
    %237 = vector.extract_strided_slice %223 {offsets = [0, 128], sizes = [8, 128], strides = [1, 1]} : vector<8x384xf32> to vector<8x128xf32>
    %238 = vector.extract_strided_slice %228 {offsets = [0, 128], sizes = [8, 128], strides = [1, 1]} : vector<8x384xf32> to vector<8x128xf32>
    %239 = arith.addf %237, %238 : vector<8x128xf32>
    %240 = arith.negf %239 : vector<8x128xf32>
    %241 = math.exp %240 : vector<8x128xf32>
    %cst_103 = arith.constant 1.000000e+00 : f32
    %242 = vector.broadcast %cst_103 : f32 to vector<8x128xf32>
    %243 = arith.addf %242, %241 : vector<8x128xf32>
    %244 = arith.divf %242, %243 : vector<8x128xf32>
    %245 = vector.extract_strided_slice %223 {offsets = [0, 256], sizes = [8, 128], strides = [1, 1]} : vector<8x384xf32> to vector<8x128xf32>
    %246 = vector.extract_strided_slice %228 {offsets = [0, 256], sizes = [8, 128], strides = [1, 1]} : vector<8x384xf32> to vector<8x128xf32>
    %247 = arith.mulf %236, %246 : vector<8x128xf32>
    %248 = arith.addf %245, %247 : vector<8x128xf32>
    %249 = math.tanh %248 : vector<8x128xf32>
    %cst_104 = arith.constant 1.000000e+00 : f32
    %250 = vector.broadcast %cst_104 : f32 to vector<8x128xf32>
    %251 = arith.subf %250, %244 : vector<8x128xf32>
    %252 = arith.mulf %251, %249 : vector<8x128xf32>
    %253 = arith.mulf %244, %221 : vector<8x128xf32>
    %254 = arith.addf %252, %253 : vector<8x128xf32>
    %c4_105 = arith.constant 4 : index
    %c0_106 = arith.constant 0 : index
    %c0_107 = arith.constant 0 : index
    %255 = vector.load %arg2[%c4_105, %c0_106, %c0_107] : memref<8x8x1xf32, #tpu.memory_space<vmem>>, vector<1x8x1xf32>
    %256 = vector.shape_cast %255 : vector<1x8x1xf32> to vector<8x1xf32>
    %257 = vector.broadcast %256 : vector<8x1xf32> to vector<8x128xf32>
    %258 = arith.mulf %257, %254 : vector<8x128xf32>
    %c0_108 = arith.constant 0 : index
    %c4_109 = arith.constant 4 : index
    %c0_110 = arith.constant 0 : index
    %259 = vector.load %arg14[%c0_108, %c4_109, %c0_110] : memref<8x8x128xf32, #tpu.memory_space<vmem>>, vector<8x1x128xf32>
    %260 = vector.shape_cast %259 : vector<8x1x128xf32> to vector<8x128xf32>
    %261 = vector.shape_cast %258 : vector<8x128xf32> to vector<8x1x128xf32>
    tpu.vector_store %arg14[%c0_108, %c4_109, %c0_110], %261 {strides = array<i32>} : memref<8x8x128xf32, #tpu.memory_space<vmem>>, vector<8x1x128xf32>,
    %cst_111 = arith.constant 1.000000e+00 : f32
    %262 = vector.broadcast %cst_111 : f32 to vector<8x1xf32>
    %263 = arith.subf %262, %256 : vector<8x1xf32>
    %264 = vector.broadcast %263 : vector<8x1xf32> to vector<8x128xf32>
    %265 = arith.mulf %264, %221 : vector<8x128xf32>
    %266 = arith.addf %258, %265 : vector<8x128xf32>
    %c5 = arith.constant 5 : index
    %c0_112 = arith.constant 0 : index
    %c0_113 = arith.constant 0 : index
    %267 = vector.load %arg13[%c5, %c0_112, %c0_113] : memref<8x8x384xf32, #tpu.memory_space<vmem>>, vector<1x8x384xf32>
    %268 = vector.shape_cast %267 : vector<1x8x384xf32> to vector<8x384xf32>
    %c0_114 = arith.constant 0 : index
    %c0_115 = arith.constant 0 : index
    %269 = vector.load %arg8[%c0_114, %c0_115] : memref<128x384xf32, #tpu.memory_space<vmem>>, vector<128x384xf32>
    %cst_116 = arith.constant dense<0.000000e+00> : vector<8x384xf32>
    %270 = tpu.matmul %266, %269, %cst_116 {dimension_numbers = #tpu.dot_dimension_numbers<[1], [0], [0], [1], [0, 0, 1, 1], [], []>} : vector<8x128xf32>, vector<128x384xf32>, vector<8x384xf32> -> vector<8x384xf32>
    %c0_117 = arith.constant 0 : index
    %c0_118 = arith.constant 0 : index
    %271 = vector.load %arg10[%c0_117, %c0_118] : memref<1x384xf32, #tpu.memory_space<vmem>>, vector<1x384xf32>
    %272 = vector.broadcast %271 : vector<1x384xf32> to vector<8x384xf32>
    %273 = arith.addf %270, %272 : vector<8x384xf32>
    %274 = vector.extract_strided_slice %268 {offsets = [0, 0], sizes = [8, 128], strides = [1, 1]} : vector<8x384xf32> to vector<8x128xf32>
    %275 = vector.extract_strided_slice %273 {offsets = [0, 0], sizes = [8, 128], strides = [1, 1]} : vector<8x384xf32> to vector<8x128xf32>
    %276 = arith.addf %274, %275 : vector<8x128xf32>
    %277 = arith.negf %276 : vector<8x128xf32>
    %278 = math.exp %277 : vector<8x128xf32>
    %cst_119 = arith.constant 1.000000e+00 : f32
    %279 = vector.broadcast %cst_119 : f32 to vector<8x128xf32>
    %280 = arith.addf %279, %278 : vector<8x128xf32>
    %281 = arith.divf %279, %280 : vector<8x128xf32>
    %282 = vector.extract_strided_slice %268 {offsets = [0, 128], sizes = [8, 128], strides = [1, 1]} : vector<8x384xf32> to vector<8x128xf32>
    %283 = vector.extract_strided_slice %273 {offsets = [0, 128], sizes = [8, 128], strides = [1, 1]} : vector<8x384xf32> to vector<8x128xf32>
    %284 = arith.addf %282, %283 : vector<8x128xf32>
    %285 = arith.negf %284 : vector<8x128xf32>
    %286 = math.exp %285 : vector<8x128xf32>
    %cst_120 = arith.constant 1.000000e+00 : f32
    %287 = vector.broadcast %cst_120 : f32 to vector<8x128xf32>
    %288 = arith.addf %287, %286 : vector<8x128xf32>
    %289 = arith.divf %287, %288 : vector<8x128xf32>
    %290 = vector.extract_strided_slice %268 {offsets = [0, 256], sizes = [8, 128], strides = [1, 1]} : vector<8x384xf32> to vector<8x128xf32>
    %291 = vector.extract_strided_slice %273 {offsets = [0, 256], sizes = [8, 128], strides = [1, 1]} : vector<8x384xf32> to vector<8x128xf32>
    %292 = arith.mulf %281, %291 : vector<8x128xf32>
    %293 = arith.addf %290, %292 : vector<8x128xf32>
    %294 = math.tanh %293 : vector<8x128xf32>
    %cst_121 = arith.constant 1.000000e+00 : f32
    %295 = vector.broadcast %cst_121 : f32 to vector<8x128xf32>
    %296 = arith.subf %295, %289 : vector<8x128xf32>
    %297 = arith.mulf %296, %294 : vector<8x128xf32>
    %298 = arith.mulf %289, %266 : vector<8x128xf32>
    %299 = arith.addf %297, %298 : vector<8x128xf32>
    %c5_122 = arith.constant 5 : index
    %c0_123 = arith.constant 0 : index
    %c0_124 = arith.constant 0 : index
    %300 = vector.load %arg2[%c5_122, %c0_123, %c0_124] : memref<8x8x1xf32, #tpu.memory_space<vmem>>, vector<1x8x1xf32>
    %301 = vector.shape_cast %300 : vector<1x8x1xf32> to vector<8x1xf32>
    %302 = vector.broadcast %301 : vector<8x1xf32> to vector<8x128xf32>
    %303 = arith.mulf %302, %299 : vector<8x128xf32>
    %c0_125 = arith.constant 0 : index
    %c5_126 = arith.constant 5 : index
    %c0_127 = arith.constant 0 : index
    %304 = vector.load %arg14[%c0_125, %c5_126, %c0_127] : memref<8x8x128xf32, #tpu.memory_space<vmem>>, vector<8x1x128xf32>
    %305 = vector.shape_cast %304 : vector<8x1x128xf32> to vector<8x128xf32>
    %306 = vector.shape_cast %303 : vector<8x128xf32> to vector<8x1x128xf32>
    tpu.vector_store %arg14[%c0_125, %c5_126, %c0_127], %306 {strides = array<i32>} : memref<8x8x128xf32, #tpu.memory_space<vmem>>, vector<8x1x128xf32>,
    %cst_128 = arith.constant 1.000000e+00 : f32
    %307 = vector.broadcast %cst_128 : f32 to vector<8x1xf32>
    %308 = arith.subf %307, %301 : vector<8x1xf32>
    %309 = vector.broadcast %308 : vector<8x1xf32> to vector<8x128xf32>
    %310 = arith.mulf %309, %266 : vector<8x128xf32>
    %311 = arith.addf %303, %310 : vector<8x128xf32>
    %c6 = arith.constant 6 : index
    %c0_129 = arith.constant 0 : index
    %c0_130 = arith.constant 0 : index
    %312 = vector.load %arg13[%c6, %c0_129, %c0_130] : memref<8x8x384xf32, #tpu.memory_space<vmem>>, vector<1x8x384xf32>
    %313 = vector.shape_cast %312 : vector<1x8x384xf32> to vector<8x384xf32>
    %c0_131 = arith.constant 0 : index
    %c0_132 = arith.constant 0 : index
    %314 = vector.load %arg8[%c0_131, %c0_132] : memref<128x384xf32, #tpu.memory_space<vmem>>, vector<128x384xf32>
    %cst_133 = arith.constant dense<0.000000e+00> : vector<8x384xf32>
    %315 = tpu.matmul %311, %314, %cst_133 {dimension_numbers = #tpu.dot_dimension_numbers<[1], [0], [0], [1], [0, 0, 1, 1], [], []>} : vector<8x128xf32>, vector<128x384xf32>, vector<8x384xf32> -> vector<8x384xf32>
    %c0_134 = arith.constant 0 : index
    %c0_135 = arith.constant 0 : index
    %316 = vector.load %arg10[%c0_134, %c0_135] : memref<1x384xf32, #tpu.memory_space<vmem>>, vector<1x384xf32>
    %317 = vector.broadcast %316 : vector<1x384xf32> to vector<8x384xf32>
    %318 = arith.addf %315, %317 : vector<8x384xf32>
    %319 = vector.extract_strided_slice %313 {offsets = [0, 0], sizes = [8, 128], strides = [1, 1]} : vector<8x384xf32> to vector<8x128xf32>
    %320 = vector.extract_strided_slice %318 {offsets = [0, 0], sizes = [8, 128], strides = [1, 1]} : vector<8x384xf32> to vector<8x128xf32>
    %321 = arith.addf %319, %320 : vector<8x128xf32>
    %322 = arith.negf %321 : vector<8x128xf32>
    %323 = math.exp %322 : vector<8x128xf32>
    %cst_136 = arith.constant 1.000000e+00 : f32
    %324 = vector.broadcast %cst_136 : f32 to vector<8x128xf32>
    %325 = arith.addf %324, %323 : vector<8x128xf32>
    %326 = arith.divf %324, %325 : vector<8x128xf32>
    %327 = vector.extract_strided_slice %313 {offsets = [0, 128], sizes = [8, 128], strides = [1, 1]} : vector<8x384xf32> to vector<8x128xf32>
    %328 = vector.extract_strided_slice %318 {offsets = [0, 128], sizes = [8, 128], strides = [1, 1]} : vector<8x384xf32> to vector<8x128xf32>
    %329 = arith.addf %327, %328 : vector<8x128xf32>
    %330 = arith.negf %329 : vector<8x128xf32>
    %331 = math.exp %330 : vector<8x128xf32>
    %cst_137 = arith.constant 1.000000e+00 : f32
    %332 = vector.broadcast %cst_137 : f32 to vector<8x128xf32>
    %333 = arith.addf %332, %331 : vector<8x128xf32>
    %334 = arith.divf %332, %333 : vector<8x128xf32>
    %335 = vector.extract_strided_slice %313 {offsets = [0, 256], sizes = [8, 128], strides = [1, 1]} : vector<8x384xf32> to vector<8x128xf32>
    %336 = vector.extract_strided_slice %318 {offsets = [0, 256], sizes = [8, 128], strides = [1, 1]} : vector<8x384xf32> to vector<8x128xf32>
    %337 = arith.mulf %326, %336 : vector<8x128xf32>
    %338 = arith.addf %335, %337 : vector<8x128xf32>
    %339 = math.tanh %338 : vector<8x128xf32>
    %cst_138 = arith.constant 1.000000e+00 : f32
    %340 = vector.broadcast %cst_138 : f32 to vector<8x128xf32>
    %341 = arith.subf %340, %334 : vector<8x128xf32>
    %342 = arith.mulf %341, %339 : vector<8x128xf32>
    %343 = arith.mulf %334, %311 : vector<8x128xf32>
    %344 = arith.addf %342, %343 : vector<8x128xf32>
    %c6_139 = arith.constant 6 : index
    %c0_140 = arith.constant 0 : index
    %c0_141 = arith.constant 0 : index
    %345 = vector.load %arg2[%c6_139, %c0_140, %c0_141] : memref<8x8x1xf32, #tpu.memory_space<vmem>>, vector<1x8x1xf32>
    %346 = vector.shape_cast %345 : vector<1x8x1xf32> to vector<8x1xf32>
    %347 = vector.broadcast %346 : vector<8x1xf32> to vector<8x128xf32>
    %348 = arith.mulf %347, %344 : vector<8x128xf32>
    %c0_142 = arith.constant 0 : index
    %c6_143 = arith.constant 6 : index
    %c0_144 = arith.constant 0 : index
    %349 = vector.load %arg14[%c0_142, %c6_143, %c0_144] : memref<8x8x128xf32, #tpu.memory_space<vmem>>, vector<8x1x128xf32>
    %350 = vector.shape_cast %349 : vector<8x1x128xf32> to vector<8x128xf32>
    %351 = vector.shape_cast %348 : vector<8x128xf32> to vector<8x1x128xf32>
    tpu.vector_store %arg14[%c0_142, %c6_143, %c0_144], %351 {strides = array<i32>} : memref<8x8x128xf32, #tpu.memory_space<vmem>>, vector<8x1x128xf32>,
    %cst_145 = arith.constant 1.000000e+00 : f32
    %352 = vector.broadcast %cst_145 : f32 to vector<8x1xf32>
    %353 = arith.subf %352, %346 : vector<8x1xf32>
    %354 = vector.broadcast %353 : vector<8x1xf32> to vector<8x128xf32>
    %355 = arith.mulf %354, %311 : vector<8x128xf32>
    %356 = arith.addf %348, %355 : vector<8x128xf32>
    %c7 = arith.constant 7 : index
    %c0_146 = arith.constant 0 : index
    %c0_147 = arith.constant 0 : index
    %357 = vector.load %arg13[%c7, %c0_146, %c0_147] : memref<8x8x384xf32, #tpu.memory_space<vmem>>, vector<1x8x384xf32>
    %358 = vector.shape_cast %357 : vector<1x8x384xf32> to vector<8x384xf32>
    %c0_148 = arith.constant 0 : index
    %c0_149 = arith.constant 0 : index
    %359 = vector.load %arg8[%c0_148, %c0_149] : memref<128x384xf32, #tpu.memory_space<vmem>>, vector<128x384xf32>
    %cst_150 = arith.constant dense<0.000000e+00> : vector<8x384xf32>
    %360 = tpu.matmul %356, %359, %cst_150 {dimension_numbers = #tpu.dot_dimension_numbers<[1], [0], [0], [1], [0, 0, 1, 1], [], []>} : vector<8x128xf32>, vector<128x384xf32>, vector<8x384xf32> -> vector<8x384xf32>
    %c0_151 = arith.constant 0 : index
    %c0_152 = arith.constant 0 : index
    %361 = vector.load %arg10[%c0_151, %c0_152] : memref<1x384xf32, #tpu.memory_space<vmem>>, vector<1x384xf32>
    %362 = vector.broadcast %361 : vector<1x384xf32> to vector<8x384xf32>
    %363 = arith.addf %360, %362 : vector<8x384xf32>
    %364 = vector.extract_strided_slice %358 {offsets = [0, 0], sizes = [8, 128], strides = [1, 1]} : vector<8x384xf32> to vector<8x128xf32>
    %365 = vector.extract_strided_slice %363 {offsets = [0, 0], sizes = [8, 128], strides = [1, 1]} : vector<8x384xf32> to vector<8x128xf32>
    %366 = arith.addf %364, %365 : vector<8x128xf32>
    %367 = arith.negf %366 : vector<8x128xf32>
    %368 = math.exp %367 : vector<8x128xf32>
    %cst_153 = arith.constant 1.000000e+00 : f32
    %369 = vector.broadcast %cst_153 : f32 to vector<8x128xf32>
    %370 = arith.addf %369, %368 : vector<8x128xf32>
    %371 = arith.divf %369, %370 : vector<8x128xf32>
    %372 = vector.extract_strided_slice %358 {offsets = [0, 128], sizes = [8, 128], strides = [1, 1]} : vector<8x384xf32> to vector<8x128xf32>
    %373 = vector.extract_strided_slice %363 {offsets = [0, 128], sizes = [8, 128], strides = [1, 1]} : vector<8x384xf32> to vector<8x128xf32>
    %374 = arith.addf %372, %373 : vector<8x128xf32>
    %375 = arith.negf %374 : vector<8x128xf32>
    %376 = math.exp %375 : vector<8x128xf32>
    %cst_154 = arith.constant 1.000000e+00 : f32
    %377 = vector.broadcast %cst_154 : f32 to vector<8x128xf32>
    %378 = arith.addf %377, %376 : vector<8x128xf32>
    %379 = arith.divf %377, %378 : vector<8x128xf32>
    %380 = vector.extract_strided_slice %358 {offsets = [0, 256], sizes = [8, 128], strides = [1, 1]} : vector<8x384xf32> to vector<8x128xf32>
    %381 = vector.extract_strided_slice %363 {offsets = [0, 256], sizes = [8, 128], strides = [1, 1]} : vector<8x384xf32> to vector<8x128xf32>
    %382 = arith.mulf %371, %381 : vector<8x128xf32>
    %383 = arith.addf %380, %382 : vector<8x128xf32>
    %384 = math.tanh %383 : vector<8x128xf32>
    %cst_155 = arith.constant 1.000000e+00 : f32
    %385 = vector.broadcast %cst_155 : f32 to vector<8x128xf32>
    %386 = arith.subf %385, %379 : vector<8x128xf32>
    %387 = arith.mulf %386, %384 : vector<8x128xf32>
    %388 = arith.mulf %379, %356 : vector<8x128xf32>
    %389 = arith.addf %387, %388 : vector<8x128xf32>
    %c7_156 = arith.constant 7 : index
    %c0_157 = arith.constant 0 : index
    %c0_158 = arith.constant 0 : index
    %390 = vector.load %arg2[%c7_156, %c0_157, %c0_158] : memref<8x8x1xf32, #tpu.memory_space<vmem>>, vector<1x8x1xf32>
    %391 = vector.shape_cast %390 : vector<1x8x1xf32> to vector<8x1xf32>
    %392 = vector.broadcast %391 : vector<8x1xf32> to vector<8x128xf32>
    %393 = arith.mulf %392, %389 : vector<8x128xf32>
    %c0_159 = arith.constant 0 : index
    %c7_160 = arith.constant 7 : index
    %c0_161 = arith.constant 0 : index
    %394 = vector.load %arg14[%c0_159, %c7_160, %c0_161] : memref<8x8x128xf32, #tpu.memory_space<vmem>>, vector<8x1x128xf32>
    %395 = vector.shape_cast %394 : vector<8x1x128xf32> to vector<8x128xf32>
    %396 = vector.shape_cast %393 : vector<8x128xf32> to vector<8x1x128xf32>
    tpu.vector_store %arg14[%c0_159, %c7_160, %c0_161], %396 {strides = array<i32>} : memref<8x8x128xf32, #tpu.memory_space<vmem>>, vector<8x1x128xf32>,
    %c0_162 = arith.constant 0 : index
    %c0_163 = arith.constant 0 : index
    %c0_164 = arith.constant 0 : index
    %397 = vector.load %arg14[%c0_162, %c0_163, %c0_164] : memref<8x8x128xf32, #tpu.memory_space<vmem>>, vector<8x8x128xf32>
    %398 = vector.shape_cast %397 : vector<8x8x128xf32> to vector<64x128xf32>
    %c0_165 = arith.constant 0 : index
    %c0_166 = arith.constant 0 : index
    %399 = vector.load %arg11[%c0_165, %c0_166] : memref<128x128xf32, #tpu.memory_space<vmem>>, vector<128x128xf32>
    %cst_167 = arith.constant dense<0.000000e+00> : vector<64x128xf32>
    %400 = tpu.matmul %398, %399, %cst_167 {dimension_numbers = #tpu.dot_dimension_numbers<[1], [0], [0], [1], [0, 0, 1, 1], [], []>} : vector<64x128xf32>, vector<128x128xf32>, vector<64x128xf32> -> vector<64x128xf32>
    %401 = vector.shape_cast %400 : vector<64x128xf32> to vector<8x8x128xf32>
    %cst_168 = arith.constant dense<0.000000e+00> : vector<8x8x8xf32>
    %402 = tpu.matmul %401, %397, %cst_168 {dimension_numbers = #tpu.dot_dimension_numbers<[2], [2], [1], [1], [0, 0, 0, 1, 1, 1], [0], [0]>} : vector<8x8x128xf32>, vector<8x8x128xf32>, vector<8x8x8xf32> -> vector<8x8x8xf32>
    %403 = tpu.iota {dimensions = array<i32: 1>} : vector<8x8x8xi32>
    %404 = tpu.iota {dimensions = array<i32: 2>} : vector<8x8x8xi32>
    %405 = arith.cmpi slt, %404, %403 : vector<8x8x8xi32>
    %cst_169 = arith.constant -1.000000e+30 : f32
    %406 = vector.broadcast %cst_169 : f32 to vector<8x8x8xf32>
    %407 = arith.select %405, %402, %406 : vector<8x8x8xi1>, vector<8x8x8xf32>
    %cst_170 = arith.constant dense<0xFF800000> : vector<8x8xf32>
    %408 = vector.multi_reduction <maximumf>, %407, %cst_170 [2] : vector<8x8x8xf32> to vector<8x8xf32>
    %409 = vector.shape_cast %408 : vector<8x8xf32> to vector<8x8x1xf32>
    %410 = vector.broadcast %409 : vector<8x8x1xf32> to vector<8x8x8xf32>
    %411 = arith.subf %407, %410 : vector<8x8x8xf32>
    %412 = math.exp %411 : vector<8x8x8xf32>
    %cst_171 = arith.constant 0.000000e+00 : f32
    %413 = vector.broadcast %cst_171 : f32 to vector<8x8x8xf32>
    %414 = arith.select %405, %412, %413 : vector<8x8x8xi1>, vector<8x8x8xf32>
    %cst_172 = arith.constant dense<0.000000e+00> : vector<8x8xf32>
    %415 = vector.multi_reduction <add>, %414, %cst_172 [2] : vector<8x8x8xf32> to vector<8x8xf32>
    %416 = vector.shape_cast %415 : vector<8x8xf32> to vector<8x8x1xf32>
    %cst_173 = arith.constant 0.000000e+00 : f32
    %417 = vector.broadcast %cst_173 : f32 to vector<8x8x1xf32>
    %418 = arith.cmpf ogt, %416, %417 : vector<8x8x1xf32>
    %cst_174 = arith.constant 1.000000e+00 : f32
    %419 = vector.broadcast %cst_174 : f32 to vector<8x8x1xf32>
    %420 = arith.select %418, %416, %419 : vector<8x8x1xi1>, vector<8x8x1xf32>
    %421 = tpu.reciprocal %420 {approx = true} : vector<8x8x1xf32> -> vector<8x8x1xf32>
    %422 = vector.broadcast %421 : vector<8x8x1xf32> to vector<8x8x8xf32>
    %423 = arith.mulf %414, %422 : vector<8x8x8xf32>
    %cst_175 = arith.constant dense<0.000000e+00> : vector<8x8x128xf32>
    %424 = tpu.matmul %423, %397, %cst_175 {dimension_numbers = #tpu.dot_dimension_numbers<[2], [1], [1], [2], [0, 0, 0, 1, 1, 2], [0], [0]>} : vector<8x8x8xf32>, vector<8x8x128xf32>, vector<8x8x128xf32> -> vector<8x8x128xf32>
    %425 = tpu.concatenate %397, %424 in 2 : vector<8x8x128xf32>, vector<8x8x128xf32> -> vector<8x8x256xf32>
    %426 = vector.shape_cast %425 : vector<8x8x256xf32> to vector<64x256xf32>
    %427 = arith.truncf %426 : vector<64x256xf32> to vector<64x256xbf16>
    %c0_176 = arith.constant 0 : index
    %c0_177 = arith.constant 0 : index
    %428 = vector.load %arg12[%c0_176, %c0_177] : memref<64x256xbf16, #tpu.memory_space<vmem>>, vector<64x256xbf16>
    tpu.vector_store %arg12[%c0_176, %c0_177], %427 {strides = array<i32>} : memref<64x256xbf16, #tpu.memory_space<vmem>>, vector<64x256xbf16>,
    return
  }
}

</mosaic_0001>

<bundles_post_ra>
// kernel: tpu_custom_call.1
= control target key start
LH: loop header
LB: loop body
LE: loop exit
PB: predicated region body
PF: predicated region fallthrough
CT: control target
= control target key end

     0   :  { %17 = vsyncpa [#allocation5], 0  ;;  %s7151_s0 = inlined_call_operand.vmem [shape: f32[8,128], index: 0, kind: input, shape index: {}]   ;;  %s7152_s1 = inlined_call_operand.vmem [shape: f32[7,8,128], index: 1, kind: input, shape index: {}]   ;;  %s7153_s2 = inlined_call_operand.vmem [shape: f32[8,8,1], index: 2, kind: input, shape index: {}]   ;;  %s7154_s3 = inlined_call_operand.hbm [shape: f32[128,128], index: 3, kind: input, shape index: {}]   ;;  %s7155_s4 = inlined_call_operand.vmem [shape: f32[1,128], index: 4, kind: input, shape index: {}]   ;;  %s7156_s5 = inlined_call_operand.vmem [shape: f32[1,128], index: 5, kind: input, shape index: {}]   ;;  %s7157_s6 = inlined_call_operand.vmem [shape: f32[1,128], index: 6, kind: input, shape index: {}]   ;;  %s7158_s7 = inlined_call_operand.hbm [shape: f32[128,384], index: 7, kind: input, shape index: {}]   ;;  %s7159_s8 = inlined_call_operand.hbm [shape: f32[128,384], index: 8, kind: input, shape index: {}]   ;;  %s7160_s9 = inlined_call_operand.vmem [shape: f32[1,384], index: 9, kind: input, shape index: {}]   ;;  %s7161_s10 = inlined_call_operand.vmem [shape: f32[1,384], index: 10, kind: input, shape index: {}]   ;;  %s7162_s11 = inlined_call_operand.hbm [shape: f32[128,128], index: 11, kind: input, shape index: {}]   ;;  %s7163_s12 = inlined_call_operand.hbm [shape: bf16[64,256], index: 12, kind: output, shape index: {}]  }
   0x1   :  { %18 = vsyncpa [#allocation8], 0 }
   0x2   :  { %19 = vsyncpa [#allocation11], 0 }
   0x3   :  { %20 = vsyncpa [#allocation6], 0  ;;  %s6171_s21 = smov [#allocation7]   ;;  %s6053_s25 = scalar_lea.hbm %s7158_s7, 6144 }
   0x4   :  { %s50_s22 = sshll.u32 %s6171_s21, 4  ;;  %p6054_p0 = scmp.ne.s32.totalorder %s7158_s7, %s6053_s25  ;;  %s51_s22 = int_to_ptr.vmem [resolvable:$true] %s50_s22 }
   0x5   :  { %p6057_p1 = scmp.lt.u32.totalorder %s6053_s25, %s7158_s7 }
   0x7   :  { %p6059_p2 = pnand %p6057_p1, %p6054_p0 }
   0x9   :  { %6062 = shalt.err (!%p6059_p2)
}
   0xa   :  { %s6063_s30 = scalar_lea.vmem %s51_s22, 6144  ;;  %p6068_p4 = scmp.lt.s32.totalorder %s51_s22, %s51_s22 }
   0xb   :  { %p6064_p3 = scmp.ne.s32.totalorder %s51_s22, %s6063_s30  ;;  %p6069_p5 = scmp.lt.s32.totalorder %s6063_s30, %s6063_s30 }
   0xd   :  { %p6070_p6 = por %p6069_p5, %p6068_p4 }
   0xf   :  { %p6071_p7 = pnand %p6070_p6, %p6064_p3 }
  0x11   :  { %6074 = shalt.err (!%p6071_p7)
}
  0x12   :  { %s6172_s13 = smov 384   ;;  %s6173_s14 = smov 24  }
  0x13   :  { %56 = dma.hbm_to_vmem [thread:$0]  %s7158_s7, 6144, %s51_s22, [#allocation8], %s6172_s13, %s6172_s13, %s6173_s14  }
  0x14   :  { %s6174_s17 = smov [#allocation4]   ;;  %s6075_s21 = scalar_lea.hbm %s7154_s3, 2048 }
  0x15   :  { %s32_s18 = sshll.u32 %s6174_s17, 4  ;;  %p6076_p8 = scmp.ne.s32.totalorder %s7154_s3, %s6075_s21  ;;  %s33_s18 = int_to_ptr.vmem [resolvable:$true] %s32_s18 }
  0x16   :  { %p6079_p9 = scmp.lt.u32.totalorder %s6075_s21, %s7154_s3 }
  0x18   :  { %p6081_p10 = pnand %p6079_p9, %p6076_p8 }
  0x1a   :  { %6084 = shalt.err (!%p6081_p10)
}
  0x1b   :  { %s6085_s27 = scalar_lea.vmem %s33_s18, 2048  ;;  %p6090_p12 = scmp.lt.s32.totalorder %s33_s18, %s33_s18 }
  0x1c   :  { %p6086_p11 = scmp.ne.s32.totalorder %s33_s18, %s6085_s27  ;;  %p6091_p13 = scmp.lt.s32.totalorder %s6085_s27, %s6085_s27 }
  0x1e   :  { %p6092_p0 = por %p6091_p13, %p6090_p12 }
  0x20   :  { %p6093_p1 = pnand %p6092_p0, %p6086_p11 }
  0x22   :  { %6096 = shalt.err (!%p6093_p1)
}
  0x23   :  { %s6175_s7 = smov 128   ;;  %s6176_s22 = smov 8  }
  0x24   :  { %38 = dma.hbm_to_vmem [thread:$0]  %s7154_s3, 2048, %s33_s18, [#allocation5], %s6175_s7, %s6175_s7, %s6176_s22  }
  0x25   :  { %s6177_s30 = smov [#allocation9]   ;;  %s6178_s16 = smov [#allocation10]  }
  0x26   :  { %s62_s15 = sshll.u32 %s6177_s30, 4  ;;  %s78_s17 = sshll.u32 %s6178_s16, 4  ;;  %s63_s15 = int_to_ptr.vmem [resolvable:$true] %s62_s15  ;;  %s6280_s17 = int_to_ptr.vmem [resolvable:$true] %s78_s17 }
  0x27   :  { %s6097_s21 = scalar_lea.hbm %s7159_s8, 6144 }
  0x28   :  { %p6098_p2 = scmp.ne.s32.totalorder %s7159_s8, %s6097_s21  ;;  %p6101_p3 = scmp.lt.u32.totalorder %s6097_s21, %s7159_s8 }
  0x2a   :  { %p6103_p4 = pnand %p6101_p3, %p6098_p2 }
  0x2c   :  { %6106 = shalt.err (!%p6103_p4)
}
  0x2d   :  { %s6107_s3 = scalar_lea.vmem %s63_s15, 6144  ;;  %p6112_p6 = scmp.lt.s32.totalorder %s63_s15, %s63_s15 }
  0x2e   :  { %p6108_p5 = scmp.ne.s32.totalorder %s63_s15, %s6107_s3  ;;  %p6113_p7 = scmp.lt.s32.totalorder %s6107_s3, %s6107_s3 }
  0x30   :  { %p6114_p8 = por %p6113_p7, %p6112_p6 }
  0x32   :  { %p6115_p9 = pnand %p6114_p8, %p6108_p5 }
  0x34   :  { %6118 = shalt.err (!%p6115_p9)
}
  0x35   :  { %68 = dma.hbm_to_vmem [thread:$0]  %s7159_s8, 6144, %s63_s15, [#allocation8], %s6172_s13, %s6172_s13, %s6173_s14  }
  0x36   :  { %s6119_s30 = scalar_lea.hbm %s7162_s11, 2048 }
  0x37   :  { %p6120_p10 = scmp.ne.s32.totalorder %s7162_s11, %s6119_s30  ;;  %p6123_p11 = scmp.lt.u32.totalorder %s6119_s30, %s7162_s11 }
  0x39   :  { %p6125_p12 = pnand %p6123_p11, %p6120_p10 }
  0x3b   :  { %6128 = shalt.err (!%p6125_p12)
}
  0x3c   :  { %s6129_s23 = scalar_lea.vmem %s6280_s17, 2048  ;;  %p6134_p0 = scmp.lt.s32.totalorder %s6280_s17, %s6280_s17 }
  0x3d   :  { %p6130_p13 = scmp.ne.s32.totalorder %s6280_s17, %s6129_s23  ;;  %p6135_p1 = scmp.lt.s32.totalorder %s6129_s23, %s6129_s23 }
  0x3f   :  { %p6136_p2 = por %p6135_p1, %p6134_p0 }
  0x41   :  { %p6137_p3 = pnand %p6136_p2, %p6130_p13 }
  0x43   :  { %6140 = shalt.err (!%p6137_p3)
}
  0x44   :  { %84 = dma.hbm_to_vmem [thread:$0]  %s7162_s11, 2048, %s6280_s17, [#allocation11], %s6175_s7, %s6175_s7, %s6176_s22  }
  0x45   :  { %6163 = dma.done.wait [#allocation5], 2048  }
  0x46   :  { %6164 = vsyncadd [#allocation5], 4294965248 }
  0x47   :  { %6165 = dma.done.wait [#allocation8], 12288  }
  0x48   :  { %6166 = vsyncadd [#allocation8], 4294955008 }
  0x49   :  { %6167 = dma.done.wait [#allocation11], 2048  }
  0x4a   :  { %6168 = vsyncadd [#allocation11], 4294965248  ;;  %v6179_v0 = vmov 0.0|0.0   ;;  %vm6180_vm0 = vmmov 0   ;;  %v6181_v1 = vmov 0.0   ;;  %v98_v2 = vld [vmem:[#allocation4] sm:$0xff] }
  0x4b   :  { %5307 = vmatprep.subr.bf16.mxu0 %v6179_v0  ;;  %4856 = vmatprep.mubr.msk.f32.mxu0 %vm6180_vm0, %v6181_v1  ;;  %v99_v3 = vld [vmem:[#allocation4 + $0x8] sm:$0xff]  ;;  %v100_v4 = vld [vmem:[#allocation4 + $0x10] sm:$0xff]  ;;  %v101_v6 = vld [vmem:[#allocation4 + $0x18] sm:$0xff]  ;;  %vm3737_vm2 = vcmask 64512  }
  0x4c   :  { %363 = vmatprep.mubr.f32.mxu1 %v6181_v1  ;;  %v5308_v5 = vpack.c.bf16 %v99_v3, %v98_v2  ;;  %v5311_v7 = vpack.c.bf16 %v101_v6, %v100_v4  ;;  %v102_v8 = vld [vmem:[#allocation4 + $0x20] sm:$0xff]  ;;  %v103_v9 = vld [vmem:[#allocation4 + $0x28] sm:$0xff]  ;;  %v104_v11 = vld [vmem:[#allocation4 + $0x30] sm:$0xff] }
  0x4d   :  { %v5314_v10 = vpack.c.bf16 %v103_v9, %v102_v8  ;;  %v105_v12 = vld [vmem:[#allocation4 + $0x38] sm:$0xff]  ;;  %v106_v14 = vld [vmem:[#allocation4 + $0x40] sm:$0xff]  ;;  %v107_v15 = vld [vmem:[#allocation4 + $0x48] sm:$0xff] }
  0x4e   :  { %5309 = vmatpush3.bf16.msra.mxu0 %v5308_v5  ;;  %v5317_v13 = vpack.c.bf16 %v105_v12, %v104_v11  ;;  %v5320_v16 = vpack.c.bf16 %v107_v15, %v106_v14  ;;  %v108_v17 = vld [vmem:[#allocation4 + $0x50] sm:$0xff]  ;;  %v109_v18 = vld [vmem:[#allocation4 + $0x58] sm:$0xff]  ;;  %v110_v20 = vld [vmem:[#allocation4 + $0x60] sm:$0xff] }
  0x4f   :  { %5310 = vmatprep.subr.bf16.mxu0 %v6179_v0  ;;  %v5323_v19 = vpack.c.bf16 %v109_v18, %v108_v17  ;;  %v111_v21 = vld [vmem:[#allocation4 + $0x68] sm:$0xff]  ;;  %v112_v23 = vld [vmem:[#allocation4 + $0x70] sm:$0xff]  ;;  %v113_v24 = vld [vmem:[#allocation4 + $0x78] sm:$0xff] }
  0x50   :  { %v5326_v22 = vpack.c.bf16 %v111_v21, %v110_v20  ;;  %v5329_v25 = vpack.c.bf16 %v113_v24, %v112_v23  ;;  %v97_v26 = vld [vmem:[%s7151_s0] sm:$0xff]  ;;  %v235_v27 = vld [vmem:[#allocation7 + $0x8] sm:$0xff]  ;;  %v237_v31 = vld [vmem:[#allocation7 + $0x18] sm:$0xff] }
  0x51   :  { %v238_v28 = vld [vmem:[#allocation7 + $0x20] sm:$0xff]  ;;  %v241_v33 = vld [vmem:[#allocation7 + $0x38] sm:$0xff]  ;;  %v244_v34 = vld [vmem:[#allocation7 + $0x50] sm:$0xff] }
  0x52   :  { %5312 = vmatpush3.bf16.msra.mxu0 %v5311_v7  ;;  %v5331_v29 = vpack.c.bf16 %v238_v28, %v235_v27  ;;  %v234_v30 = vld [vmem:[#allocation7] sm:$0xff]  ;;  %v5335_v35 = vpack.c.bf16 %v244_v34, %v241_v33  ;;  %v240_v36 = vld [vmem:[#allocation7 + $0x30] sm:$0xff]  ;;  %v243_v37 = vld [vmem:[#allocation7 + $0x48] sm:$0xff] }
  0x53   :  { %5313 = vmatprep.subr.bf16.mxu0 %v6179_v0  ;;  %v5333_v32 = vpack.c.bf16 %v237_v31, %v234_v30  ;;  %v5337_v38 = vpack.c.bf16 %v243_v37, %v240_v36  ;;  %v247_v39 = vld [vmem:[#allocation7 + $0x68] sm:$0xff]  ;;  %v250_v40 = vld [vmem:[#allocation7 + $0x80] sm:$0xff]  ;;  %v249_v43 = vld [vmem:[#allocation7 + $0x78] sm:$0xff] }
  0x54   :  { %5332 = vmatprep.subr.bf16.mxu1 %v5331_v29  ;;  %v5339_v41 = vpack.c.bf16 %v250_v40, %v247_v39  ;;  %v246_v42 = vld [vmem:[#allocation7 + $0x60] sm:$0xff]  ;;  %v253_v45 = vld [vmem:[#allocation7 + $0x98] sm:$0xff]  ;;  %v256_v46 = vld [vmem:[#allocation7 + $0xb0] sm:$0xff]  ;;  %v6182_v40 = vmov 0  }
  0x55   :  { %5334 = vmatpush1.bf16.msra.mxu1 %v5333_v32  ;;  %v5341_v44 = vpack.c.bf16 %v249_v43, %v246_v42  ;;  %v5343_v47 = vpack.c.bf16 %v256_v46, %v253_v45  ;;  %v252_v48 = vld [vmem:[#allocation7 + $0x90] sm:$0xff]  ;;  %v255_v49 = vld [vmem:[#allocation7 + $0xa8] sm:$0xff]  ;;  %v262_v52 = vld [vmem:[#allocation7 + $0xe0] sm:$0xff]  ;;  %5937 = vset.pattern.permute.xlu0 %v6182_v40 }
  0x56   :  { %5315 = vmatpush3.bf16.msra.mxu0 %v5314_v10  ;;  %5336 = vmatprep.subr.bf16.mxu1 %v5335_v35  ;;  %v5345_v50 = vpack.c.bf16 %v255_v49, %v252_v48  ;;  %v259_v51 = vld [vmem:[#allocation7 + $0xc8] sm:$0xff]  ;;  %v258_v54 = vld [vmem:[#allocation7 + $0xc0] sm:$0xff]  ;;  %v261_v55 = vld [vmem:[#allocation7 + $0xd8] sm:$0xff] }
  0x57   :  { %5316 = vmatprep.subr.bf16.mxu0 %v6179_v0  ;;  %v5347_v53 = vpack.c.bf16 %v262_v52, %v259_v51  ;;  %v5349_v56 = vpack.c.bf16 %v261_v55, %v258_v54  ;;  %v265_v57 = vld [vmem:[#allocation7 + $0xf8] sm:$0xff]  ;;  %v268_v58 = vld [vmem:[#allocation7 + $0x110] sm:$0xff]  ;;  %v267_v61 = vld [vmem:[#allocation7 + $0x108] sm:$0xff]  ;;  %5938 = vset.pattern.permute.xlu1 %v6182_v40 }
  0x58   :  { %v264_v59 = vld [vmem:[#allocation7 + $0xf0] sm:$0xff]  ;;  %v5351_v60 = vpack.c.bf16 %v268_v58, %v265_v57  ;;  %v271_v62 = vld [vmem:[#allocation7 + $0x128] sm:$0xff]  ;;  %v274_v63 = vld [vmem:[#allocation7 + $0x140] sm:$0xff] }
  0x59   :  { %5338 = vmatpush1.bf16.msra.mxu1 %v5337_v38  ;;  %v5353_v2 = vpack.c.bf16 %v267_v61, %v264_v59  ;;  %v5355_v3 = vpack.c.bf16 %v274_v63, %v271_v62  ;;  %v270_v4 = vld [vmem:[#allocation7 + $0x120] sm:$0xff]  ;;  %v273_v5 = vld [vmem:[#allocation7 + $0x138] sm:$0xff]  ;;  %v236_v6 = vld [vmem:[#allocation7 + $0x10] sm:$0xff] }
  0x5a   :  { %5318 = vmatpush3.bf16.msra.mxu0 %v5317_v13  ;;  %5340 = vmatprep.subr.bf16.mxu1 %v5339_v41  ;;  %v239_v7 = vld [vmem:[#allocation7 + $0x28] sm:$0xff]  ;;  %v277_v8 = vld [vmem:[#allocation7 + $0x158] sm:$0xff]  ;;  %v280_v9 = vld [vmem:[#allocation7 + $0x170] sm:$0xff]  ;;  %v5357_v10 = vpack.c.bf16 %v273_v5, %v270_v4 }
  0x5b   :  { %5319 = vmatprep.subr.bf16.mxu0 %v6179_v0  ;;  %v5363_v11 = vpack.c.bf16 %v239_v7, %v236_v6  ;;  %v242_v12 = vld [vmem:[#allocation7 + $0x40] sm:$0xff]  ;;  %v5359_v13 = vpack.c.bf16 %v280_v9, %v277_v8  ;;  %v276_v14 = vld [vmem:[#allocation7 + $0x150] sm:$0xff]  ;;  %v279_v15 = vld [vmem:[#allocation7 + $0x168] sm:$0xff] }
  0x5c   :  { %v545_v18 = vld [vmem:[#allocation9 + $0x8] sm:$0xff]  ;;  %v5361_v20 = vpack.c.bf16 %v279_v15, %v276_v14  ;;  %v260_v28 = vld [vmem:[#allocation7 + $0xd0] sm:$0xff]  ;;  %v266_v31 = vld [vmem:[#allocation7 + $0x100] sm:$0xff] }
  0x5d   :  { %5342 = vmatpush1.bf16.msra.mxu1 %v5341_v44  ;;  %v251_v23 = vld [vmem:[#allocation7 + $0x88] sm:$0xff]  ;;  %v269_v32 = vld [vmem:[#allocation7 + $0x118] sm:$0xff]  ;;  %v272_v34 = vld [vmem:[#allocation7 + $0x130] sm:$0xff] }
  0x5e   :  { %5321 = vmatpush3.bf16.msra.mxu0 %v5320_v16  ;;  %5344 = vmatprep.subr.bf16.mxu1 %v5343_v47  ;;  %v245_v16 = vld [vmem:[#allocation7 + $0x58] sm:$0xff]  ;;  %v263_v29 = vld [vmem:[#allocation7 + $0xe8] sm:$0xff]  ;;  %v5383_v33 = vpack.c.bf16 %v269_v32, %v266_v31  ;;  %v278_v37 = vld [vmem:[#allocation7 + $0x160] sm:$0xff] }
  0x5f   :  { %5322 = vmatprep.subr.bf16.mxu0 %v6179_v0  ;;  %v5367_v17 = vpack.c.bf16 %v245_v16, %v242_v12  ;;  %v5379_v30 = vpack.c.bf16 %v263_v29, %v260_v28  ;;  %v275_v35 = vld [vmem:[#allocation7 + $0x148] sm:$0xff]  ;;  %v281_v38 = vld [vmem:[#allocation7 + $0x178] sm:$0xff]  ;;  %v771_v41 = vld [vmem:[%s7153_s2] sm:$0xff] }
  0x60   :  { %v5387_v36 = vpack.c.bf16 %v275_v35, %v272_v34  ;;  %v5391_v39 = vpack.c.bf16 %v281_v38, %v278_v37  ;;  %774 = vperm.xlu0 %5937, %v771_v41   ;;  %v844_v42 = vsub.f32 1.0, %v771_v41  ;;  %v4520_v43 = vld [vmem:[%s7153_s2 + $0x8] sm:$0xff]  ;;  %v4527_v45 = vld [vmem:[%s7153_s2 + $0x10] sm:$0xff]  ;;  %v4534_v47 = vld [vmem:[%s7153_s2 + $0x18] sm:$0xff] }
  0x61   :  { %5346 = vmatpush1.bf16.msra.mxu1 %v5345_v50  ;;  %1087 = vperm.xlu1 %5938, %v4520_v43   ;;  %v1157_v44 = vsub.f32 1.0, %v4520_v43  ;;  %v1470_v46 = vsub.f32 1.0, %v4527_v45  ;;  %v1783_v48 = vsub.f32 1.0, %v4534_v47  ;;  %v4541_v49 = vld [vmem:[%s7153_s2 + $0x20] sm:$0xff]  ;;  %v4548_v51 = vld [vmem:[%s7153_s2 + $0x28] sm:$0xff]  ;;  %v4562_v55 = vld [vmem:[%s7153_s2 + $0x38] sm:$0xff] }
  0x62   :  { %5324 = vmatpush3.bf16.msra.mxu0 %v5323_v19  ;;  %5348 = vmatprep.subr.bf16.mxu1 %v5347_v53  ;;  %v548_v19 = vld [vmem:[#allocation9 + $0x20] sm:$0xff]  ;;  %v2096_v50 = vsub.f32 1.0, %v4541_v49  ;;  %v2409_v52 = vsub.f32 1.0, %v4548_v51  ;;  %v4555_v53 = vld [vmem:[%s7153_s2 + $0x30] sm:$0xff]  ;;  %v553_v31 = vld [vmem:[#allocation9 + $0x48] sm:$0xff] }
  0x63   :  { %5325 = vmatprep.subr.bf16.mxu0 %v6179_v0  ;;  %v6331_v21 = vpack.c.bf16 %v548_v19, %v545_v18  ;;  %v2722_v54 = vsub.f32 1.0, %v4555_v53  ;;  %v4510_v15 = vld [vmem:[%s7156_s5] ss:$0 sm:$0xff]  ;;  %v547_v18 = vld [vmem:[#allocation9 + $0x18] sm:$0xff]  ;;  %v557_v32 = vld [vmem:[#allocation9 + $0x68] sm:$0xff] }
  0x64   :  { %847 = vperm.xlu0 %5937, %v844_v42   ;;  %v552_v35 = vld [vmem:[#allocation9 + $0x40] sm:$0xff]  ;;  %v228_v40 = vld [vmem:[%s7152_s1 + $0x8] sm:$0xff]  ;;  %v559_v42 = vld [vmem:[#allocation9 + $0x78] sm:$0xff] }
  0x65   :  { %5350 = vmatpush1.bf16.msra.mxu1 %v5349_v56  ;;  %1160 = vperm.xlu1 %5938, %v1157_v44   ;;  %v4509_v56 = vld [vmem:[%s7155_s4] ss:$0 sm:$0xff]  ;;  %v563_v43 = vld [vmem:[#allocation9 + $0x98] sm:$0xff]  ;;  %v566_v44 = vld [vmem:[#allocation9 + $0xb0] sm:$0xff] }
  0x66   :  { %5327 = vmatpush3.bf16.msra.mxu0 %v5326_v22  ;;  %5352 = vmatprep.subr.bf16.mxu1 %v5351_v60  ;;  %v248_v22 = vld [vmem:[#allocation7 + $0x70] sm:$0xff]  ;;  %v227_v37 = vld [vmem:[%s7152_s1] sm:$0xff] }
  0x67   :  { %5328 = vmatprep.subr.bf16.mxu0 %v6179_v0  ;;  %v5371_v24 = vpack.c.bf16 %v251_v23, %v248_v22  ;;  %v551_v22 = vld [vmem:[#allocation9 + $0x38] sm:$0xff]  ;;  %v554_v23 = vld [vmem:[#allocation9 + $0x50] sm:$0xff]  ;;  %v556_v41 = vld [vmem:[#allocation9 + $0x60] sm:$0xff] }
  0x68   :  { %1400 = vperm.xlu0 %5937, %v4527_v45   ;;  %v6370_v29 = vpack.c.bf16 %v554_v23, %v551_v22  ;;  %v583_v22 = vld [vmem:[#allocation9 + $0x138] sm:$0xff] }
  0x69   :  { %5354 = vmatpush1.bf16.msra.mxu1 %v5353_v2  ;;  %1473 = vperm.xlu1 %5938, %v1470_v46   ;;  %v558_v46 = vld [vmem:[#allocation9 + $0x70] sm:$0xff]  ;;  %v587_v23 = vld [vmem:[#allocation9 + $0x158] sm:$0xff] }
  0x6a   :  { %5330 = vmatpush3.bf16.msra.mxu0 %v5329_v25  ;;  %5356 = vmatprep.subr.bf16.mxu1 %v5355_v3  ;;  %v254_v25 = vld [vmem:[#allocation7 + $0xa0] sm:$0xff] }
  0x6b   :  { %5364 = vmatprep.subr.bf16.mxu0 %v5363_v11 }
  0x6c   :  { %1713 = vperm.xlu0 %5937, %v4534_v47   ;;  %v561_v47 = vld [vmem:[#allocation9 + $0x88] sm:$0xff] }
  0x6d   :  { %4857 = vmatmul.mubr.f32.vlgmr.msra.gmra.mrb[0].mxu0 %v97_v26  ;;  %5358 = vmatpush1.bf16.msra.mxu1 %v5357_v10  ;;  %v257_v26 = vld [vmem:[#allocation7 + $0xb8] sm:$0xff] }
  0x6e   :  { %5366 = vmatpush3.bf16.msra.mxu0 %v5363_v11  ;;  %5360 = vmatprep.subr.bf16.mxu1 %v5359_v13  ;;  %v5375_v27 = vpack.c.bf16 %v257_v26, %v254_v25  ;;  %v546_v25 = vld [vmem:[#allocation9 + $0x10] sm:$0xff]  ;;  %v549_v26 = vld [vmem:[#allocation9 + $0x28] sm:$0xff] }
  0x6f   :  { %5368 = vmatprep.subr.bf16.mxu0 %v5367_v17  ;;  %1786 = vperm.xlu1 %5938, %v1783_v48   ;;  %v6372_v34 = vpack.c.bf16 %v549_v26, %v546_v25  ;;  %v6393_v48 = vpack.c.bf16 %v559_v42, %v556_v41  ;;  %v582_v26 = vld [vmem:[#allocation9 + $0x130] sm:$0xff]  ;;  %v284_v42 = vlaneseq }
  0x70   :  { %2026 = vperm.xlu0 %5937, %v4541_v49   ;;  %v229_v49 = vld [vmem:[%s7152_s1 + $0x10] sm:$0xff] }
  0x71   :  { %5362 = vmatpush1.bf16.msra.mxu1 %v5361_v20  ;;  %v4511_v20 = vld [vmem:[%s7157_s6] ss:$0 sm:$0xff] }
  0x72   :  { %5370 = vmatpush3.bf16.msra.mxu0 %v5367_v17  ;;  %5396 = vmatprep.subr.bf16.mxu1 %v6331_v21  ;;  %v544_v17 = vld [vmem:[#allocation9] sm:$0xff] }
  0x73   :  { %5372 = vmatprep.subr.bf16.mxu0 %v5371_v24  ;;  %2099 = vperm.xlu1 %5938, %v2096_v50   ;;  %v6399_v50 = vpack.c.bf16 %v566_v44, %v563_v43  ;;  %v6515_v43 = vshrl.u32 %v284_v42, 7 }
  0x74   :  { %2339 = vperm.xlu0 %5937, %v4548_v51   ;;  %v562_v51 = vld [vmem:[#allocation9 + $0x90] sm:$0xff] }
  0x75   :  { %v6518_v44 = vsub.s32 2, %v6515_v43 }
  0x76   :  { %5374 = vmatpush3.bf16.msra.mxu0 %v5371_v24 }
  0x77   :  { %5376 = vmatprep.subr.bf16.mxu0 %v5375_v27  ;;  %2412 = vperm.xlu1 %5938, %v2409_v52   ;;  %v565_v52 = vld [vmem:[#allocation9 + $0xa8] sm:$0xff] }
  0x78   :  { %2652 = vperm.xlu0 %5937, %v4555_v53   ;;  %v230_v53 = vld [vmem:[%s7152_s1 + $0x18] sm:$0xff] }
  0x7a   :  { %5378 = vmatpush3.bf16.msra.mxu0 %v5375_v27  ;;  %v6368_v27 = vpack.c.bf16 %v547_v18, %v544_v17  ;;  %v579_v17 = vld [vmem:[#allocation9 + $0x118] sm:$0xff] }
  0x7b   :  { %5380 = vmatprep.subr.bf16.mxu0 %v5379_v30  ;;  %2725 = vperm.xlu1 %5938, %v2722_v54   ;;  %v569_v54 = vld [vmem:[#allocation9 + $0xc8] sm:$0xff] }
  0x7c   :  { %2965 = vperm.xlu0 %5937, %v4562_v55   ;;  %v572_v55 = vld [vmem:[#allocation9 + $0xe0] sm:$0xff] }
  0x7e   :  { %5382 = vmatpush3.bf16.msra.mxu0 %v5379_v30  ;;  %v550_v30 = vld [vmem:[#allocation9 + $0x30] sm:$0xff] }
  0x7f   :  { %5384 = vmatprep.subr.bf16.mxu0 %v5383_v33  ;;  %v6379_v38 = vpack.c.bf16 %v553_v31, %v550_v30 }
  0x82   :  { %5386 = vmatpush3.bf16.msra.mxu0 %v5383_v33  ;;  %v560_v33 = vld [vmem:[#allocation9 + $0x80] sm:$0xff] }
  0x83   :  { %5388 = vmatprep.subr.bf16.mxu0 %v5387_v36 }
  0x86   :  { %5390 = vmatpush3.bf16.msra.mxu0 %v5387_v36  ;;  %v555_v36 = vld [vmem:[#allocation9 + $0x58] sm:$0xff] }
  0x87   :  { %5392 = vmatprep.subr.bf16.mxu0 %v5391_v39  ;;  %v6388_v45 = vpack.c.bf16 %v555_v36, %v552_v35  ;;  %v588_v36 = vld [vmem:[#allocation9 + $0x160] sm:$0xff] }
  0x8a   :  { %5394 = vmatpush3.bf16.msra.mxu0 %v5391_v39  ;;  %v6382_v39 = vpack.c.bf16 %v560_v33, %v557_v32  ;;  %v586_v32 = vld [vmem:[#allocation9 + $0x150] sm:$0xff]  ;;  %v589_v33 = vld [vmem:[#allocation9 + $0x168] sm:$0xff] }
  0x8b   :  { %5427 = vmatprep.subr.bf16.mxu0 %v6179_v0 }
 0x140   :  { %v187_v57 = vpop.f32.mrb[0].mxu0 }
 0x141   :  { %v188_v58 = vadd.f32 %v4509_v56, %v187_v57  ;;  %v4858_v59 = vpop.f32.mrb[1].mxu0  ;;  %v6405_v56 = vpack.c.bf16 %v561_v47, %v558_v46  ;;  %v564_v57 = vld [vmem:[#allocation9 + $0xa0] sm:$0xff] }
 0x142   :  { %v6410_v59 = vpack.c.bf16 %v565_v52, %v562_v51  ;;  %v282_v46 = vld [vmem:[%s7160_s9] sm:$0x7] }
 0x143   :  { %v191_v60 = vrot.slane %v188_v58, 4  ;;  %v295_v47 = vrot.slane %v282_v46, %v6518_v44 }
 0x145   :  { %v192_v61 = vadd.f32 %v191_v60, %v188_v58  ;;  %v231_v60 = vld [vmem:[%s7152_s1 + $0x20] sm:$0xff] }
 0x147   :  { %v193_v62 = vrot.slane %v192_v61, 2 }
 0x149   :  { %v194_v63 = vadd.f32 %v193_v62, %v192_v61  ;;  %v6416_v61 = vpack.c.bf16 %v572_v55, %v569_v54  ;;  %v568_v62 = vld [vmem:[#allocation9 + $0xc0] sm:$0xff] }
 0x14b   :  { %v195_v2 = vrot.slane %v194_v63, 1 }
 0x14d   :  { %v196_v3 = vadd.f32 %v195_v2, %v194_v63  ;;  %v571_v63 = vld [vmem:[#allocation9 + $0xd8] sm:$0xff]  ;;  %v232_v2 = vld [vmem:[%s7152_s1 + $0x28] sm:$0xff] }
 0x14f   :  { %v198_v4 = vmul.f32 0.125, %v196_v3  ;;  %v575_v3 = vld [vmem:[#allocation9 + $0xf8] sm:$0xff] }
 0x151   :  { %v199_v5 = vsub.f32 %v188_v58, %v198_v4  ;;  %v567_v58 = vld [vmem:[#allocation9 + $0xb8] sm:$0xff]  ;;  %v578_v4 = vld [vmem:[#allocation9 + $0x110] sm:$0xff] }
 0x153   :  { %v200_v6 = vmul.f32 %v199_v5, %v199_v5  ;;  %v215_v16 = vmul.f32 %v4510_v15, %v199_v5  ;;  %v6422_v5 = vpack.c.bf16 %v567_v58, %v564_v57 }
 0x155   :  { %v201_v7 = vrot.slane %v200_v6, 4 }
 0x157   :  { %v202_v8 = vadd.f32 %v201_v7, %v200_v6  ;;  %v570_v6 = vld [vmem:[#allocation9 + $0xd0] sm:$0xff]  ;;  %v573_v7 = vld [vmem:[#allocation9 + $0xe8] sm:$0xff] }
 0x158   :  { %v6436_v15 = vpack.c.bf16 %v573_v7, %v570_v6  ;;  %v6539_v6 = vsub.s32 0, %v6515_v43  ;;  %v592_v7 = vld [vmem:[%s7161_s10] sm:$0x7] }
 0x159   :  { %v203_v9 = vrot.slane %v202_v8, 2 }
 0x15b   :  { %v204_v10 = vadd.f32 %v203_v9, %v202_v8  ;;  %v6427_v8 = vpack.c.bf16 %v571_v63, %v568_v62  ;;  %v233_v9 = vld [vmem:[%s7152_s1 + $0x30] sm:$0xff] }
 0x15d   :  { %v205_v11 = vrot.slane %v204_v10, 1 }
 0x15f   :  { %v206_v12 = vadd.f32 %v205_v11, %v204_v10  ;;  %v6433_v10 = vpack.c.bf16 %v578_v4, %v575_v3  ;;  %v574_v11 = vld [vmem:[#allocation9 + $0xf0] sm:$0xff] }
 0x161   :  { %v207_v13 = vmul.f32 0.125, %v206_v12  ;;  %v577_v12 = vld [vmem:[#allocation9 + $0x108] sm:$0xff] }
 0x162   :  { %v6443_v18 = vpack.c.bf16 %v577_v12, %v574_v11  ;;  %v6548_v11 = vrot.slane %v282_v46, %v6539_v6  ;;  %v597_v12 = vrot.slane %v592_v7, %v6539_v6 }
 0x163   :  { %v216_v14 = vadd.f32 1e-05, %v207_v13  ;;  %v581_v13 = vld [vmem:[#allocation9 + $0x128] sm:$0xff] }
 0x165   :  { %5939 = vrsqrt.f32 %v216_v14  ;;  %v584_v14 = vld [vmem:[#allocation9 + $0x140] sm:$0xff] }
 0x16f   :  { %v5940_v19 = vpop.eup %5939 }
 0x170   :  { %v218_v24 = vmul.f32 %v5940_v19, %v215_v16  ;;  %v576_v16 = vld [vmem:[#allocation9 + $0x100] sm:$0xff]  ;;  %v6446_v19 = vpack.c.bf16 %v584_v14, %v581_v13 }
 0x171   :  { %v6449_v25 = vpack.c.bf16 %v579_v17, %v576_v16  ;;  %v5875_v16 = vadd.f32 %v597_v12, %v6548_v11  ;;  %v6183_v12 = vmov 1966171168  }
 0x172   :  { %v226_v28 = vadd.f32 %v4511_v20, %v218_v24  ;;  %v580_v20 = vld [vmem:[#allocation9 + $0x120] sm:$0xff]  ;;  %v590_v24 = vld [vmem:[#allocation9 + $0x170] sm:$0xff] }
 0x173   :  { %v6454_v30 = vpack.c.bf16 %v583_v22, %v580_v20  ;;  %v6457_v31 = vpack.c.bf16 %v590_v24, %v587_v23 }
 0x174   :  { %364 = vmatmul.mubr.f32.vlgmr.msra.gmra.mrb[0].mxu1 %v226_v28  ;;  %4891 = vmatprep.mubr.f32.mxu0 %v226_v28  ;;  %v585_v28 = vld [vmem:[#allocation9 + $0x148] sm:$0xff] }
 0x175   :  { %5398 = vmatpush1.bf16.msra.mxu1 %v6368_v27  ;;  %369 = vmatprep.mubr.f32.mxu1 %v6181_v1  ;;  %v6460_v35 = vpack.c.bf16 %v585_v28, %v582_v26 }
 0x176   :  { %5400 = vmatprep.subr.bf16.mxu1 %v6370_v29  ;;  %4892 = vmatmul.mubr.f32.vlgmr.msra.gmra.mrb[2].mxu0 %v227_v37 }
 0x177   :  { %5429 = vmatpush3.bf16.msra.mxu0 %v6372_v34  ;;  %4894 = vmatprep.mubr.f32.mxu0 %v228_v40 }
 0x178   :  { %370 = vmatmul.mubr.f32.gmra.mrb[2].mxu1 %v227_v37  ;;  %5430 = vmatprep.subr.bf16.mxu0 %v6179_v0  ;;  %v591_v37 = vld [vmem:[#allocation9 + $0x178] sm:$0xff] }
 0x179   :  { %5402 = vmatpush1.bf16.msra.mxu1 %v6379_v38  ;;  %375 = vmatprep.mubr.f32.mxu1 %v6181_v1  ;;  %v6469_v41 = vpack.c.bf16 %v591_v37, %v588_v36 }
 0x17a   :  { %5404 = vmatprep.subr.bf16.mxu1 %v6382_v39  ;;  %4895 = vmatmul.mubr.f32.gmra.mrb[4].mxu0 %v229_v49 }
 0x17b   :  { %5432 = vmatpush3.bf16.msra.mxu0 %v6388_v45  ;;  %4897 = vmatprep.mubr.f32.mxu0 %v230_v53 }
 0x17c   :  { %376 = vmatmul.mubr.f32.gmra.mrb[4].mxu1 %v228_v40  ;;  %5433 = vmatprep.subr.bf16.mxu0 %v6179_v0  ;;  %v6465_v40 = vpack.c.bf16 %v589_v33, %v586_v32 }
 0x17d   :  { %5406 = vmatpush1.bf16.msra.mxu1 %v6393_v48  ;;  %381 = vmatprep.mubr.f32.mxu1 %v6181_v1 }
 0x17e   :  { %5408 = vmatprep.subr.bf16.mxu1 %v6399_v50  ;;  %4898 = vmatmul.mubr.f32.gmra.mrb[6].mxu0 %v231_v60 }
 0x17f   :  { %5435 = vmatpush3.bf16.msra.mxu0 %v6405_v56  ;;  %4900 = vmatprep.mubr.f32.mxu0 %v232_v2 }
 0x180   :  { %382 = vmatmul.mubr.f32.gmra.mrb[6].mxu1 %v229_v49  ;;  %5436 = vmatprep.subr.bf16.mxu0 %v6179_v0 }
 0x181   :  { %5410 = vmatpush1.bf16.msra.mxu1 %v6410_v59  ;;  %387 = vmatprep.mubr.f32.mxu1 %v6181_v1 }
 0x182   :  { %5412 = vmatprep.subr.bf16.mxu1 %v6416_v61  ;;  %4901 = vmatmul.mubr.f32.gmra.mrb[8].mxu0 %v233_v9 }
 0x183   :  { %5438 = vmatpush3.bf16.msra.mxu0 %v6422_v5  ;;  %4935 = vmatprep.mubr.msk.f32.mxu0 %vm6180_vm0, %v6181_v1 }
 0x184   :  { %388 = vmatmul.mubr.f32.gmra.mrb[8].mxu1 %v230_v53  ;;  %5439 = vmatprep.subr.bf16.mxu0 %v6179_v0 }
 0x185   :  { %5414 = vmatpush1.bf16.msra.mxu1 %v6427_v8  ;;  %393 = vmatprep.mubr.f32.mxu1 %v6181_v1 }
 0x186   :  { %5416 = vmatprep.subr.bf16.mxu1 %v6433_v10 }
 0x187   :  { %5441 = vmatpush3.bf16.msra.mxu0 %v6436_v15 }
 0x188   :  { %394 = vmatmul.mubr.f32.gmra.mrb[10].mxu1 %v231_v60  ;;  %5442 = vmatprep.subr.bf16.mxu0 %v6179_v0 }
 0x189   :  { %5418 = vmatpush1.bf16.msra.mxu1 %v6443_v18  ;;  %399 = vmatprep.mubr.f32.mxu1 %v6181_v1 }
 0x18a   :  { %5420 = vmatprep.subr.bf16.mxu1 %v6446_v19 }
 0x18b   :  { %5444 = vmatpush3.bf16.msra.mxu0 %v6449_v25 }
 0x18c   :  { %400 = vmatmul.mubr.f32.gmra.mrb[12].mxu1 %v232_v2  ;;  %5445 = vmatprep.subr.bf16.mxu0 %v6179_v0 }
 0x18d   :  { %5422 = vmatpush1.bf16.msra.mxu1 %v6454_v30  ;;  %405 = vmatprep.mubr.f32.mxu1 %v6181_v1 }
 0x18e   :  { %5424 = vmatprep.subr.bf16.mxu1 %v6457_v31 }
 0x18f   :  { %5447 = vmatpush3.bf16.msra.mxu0 %v6460_v35 }
 0x190   :  { %406 = vmatmul.mubr.f32.gmra.mrb[14].mxu1 %v233_v9  ;;  %5448 = vmatprep.subr.bf16.mxu0 %v6179_v0  ;;  %v6545_v9 = vsub.s32 1, %v6515_v43 }
 0x191   :  { %5426 = vmatpush1.bf16.msra.mxu1 %v6465_v40  ;;  %673 = vmatprep.mubr.f32.mxu1 %v6181_v1 }
 0x192   :  { %5452 = vmatprep.subr.bf16.mxu1 %v6331_v21  ;;  %v6552_v13 = vrot.slane %v282_v46, %v6545_v9  ;;  %v601_v14 = vrot.slane %v592_v7, %v6545_v9  ;;  %v605_v46 = vrot.slane %v592_v7, %v6518_v44 }
 0x193   :  { %5450 = vmatpush3.bf16.msra.mxu0 %v6469_v41 }
 0x194   :  { %674 = vmatmul.mubr.f32.vlgmr.msra.gmra.mrb[0].mxu1 %v6181_v1  ;;  %5483 = vmatprep.subr.bf16.mxu0 %v6179_v0  ;;  %v5877_v20 = vadd.f32 %v601_v14, %v6552_v13  ;;  %v781_v14 = vunpack.c.l.s4 %v6183_v12 }
 0x195   :  { %5454 = vmatpush1.bf16.msra.mxu1 %v6368_v27  ;;  %985 = vmatprep.mubr.f32.mxu1 %v6181_v1 }
 0x196   :  { %4936 = vmatmul.mubr.f32.vlgmr.msra.gmra.mrb[10].mxu0 %v6181_v1  ;;  %5456 = vmatprep.subr.bf16.mxu1 %v6370_v29 }
 0x197   :  { %5485 = vmatpush3.bf16.msra.mxu0 %v6372_v34  ;;  %4970 = vmatprep.mubr.msk.f32.mxu0 %vm6180_vm0, %v6181_v1 }
 0x198   :  { %5486 = vmatprep.subr.bf16.mxu0 %v6179_v0 }
 0x199   :  { %5458 = vmatpush1.bf16.msra.mxu1 %v6379_v38 }
 0x19a   :  { %5460 = vmatprep.subr.bf16.mxu1 %v6382_v39 }
 0x19b   :  { %5488 = vmatpush3.bf16.msra.mxu0 %v6388_v45 }
 0x19c   :  { %5489 = vmatprep.subr.bf16.mxu0 %v6179_v0 }
 0x19d   :  { %5462 = vmatpush1.bf16.msra.mxu1 %v6393_v48 }
 0x19e   :  { %5464 = vmatprep.subr.bf16.mxu1 %v6399_v50 }
 0x19f   :  { %5491 = vmatpush3.bf16.msra.mxu0 %v6405_v56 }
 0x1a0   :  { %5492 = vmatprep.subr.bf16.mxu0 %v6179_v0 }
 0x1a1   :  { %5466 = vmatpush1.bf16.msra.mxu1 %v6410_v59 }
 0x1a2   :  { %5468 = vmatprep.subr.bf16.mxu1 %v6416_v61 }
 0x1a3   :  { %5494 = vmatpush3.bf16.msra.mxu0 %v6422_v5 }
 0x1a4   :  { %5495 = vmatprep.subr.bf16.mxu0 %v6179_v0 }
 0x1a5   :  { %5470 = vmatpush1.bf16.msra.mxu1 %v6427_v8 }
 0x1a6   :  { %5472 = vmatprep.subr.bf16.mxu1 %v6433_v10 }
 0x1a7   :  { %5497 = vmatpush3.bf16.msra.mxu0 %v6436_v15 }
 0x1a8   :  { %5498 = vmatprep.subr.bf16.mxu0 %v6179_v0 }
 0x1a9   :  { %5474 = vmatpush1.bf16.msra.mxu1 %v6443_v18 }
 0x1aa   :  { %5476 = vmatprep.subr.bf16.mxu1 %v6446_v19 }
 0x1ab   :  { %5500 = vmatpush3.bf16.msra.mxu0 %v6449_v25 }
 0x1ac   :  { %5501 = vmatprep.subr.bf16.mxu0 %v6179_v0 }
 0x1ad   :  { %5478 = vmatpush1.bf16.msra.mxu1 %v6454_v30 }
 0x1ae   :  { %5480 = vmatprep.subr.bf16.mxu1 %v6457_v31 }
 0x1af   :  { %5503 = vmatpush3.bf16.msra.mxu0 %v6460_v35 }
 0x1b0   :  { %5504 = vmatprep.subr.bf16.mxu0 %v6179_v0 }
 0x1b1   :  { %5482 = vmatpush1.bf16.msra.mxu1 %v6465_v40 }
 0x1b2   :  { %5508 = vmatprep.subr.bf16.mxu1 %v6331_v21 }
 0x1b3   :  { %5506 = vmatpush3.bf16.msra.mxu0 %v6469_v41 }
 0x1b4   :  { %5539 = vmatprep.subr.bf16.mxu0 %v6179_v0 }
 0x249   :  { %v4893_v49 = vpop.f32.mrb[2].mxu0 }
 0x24a   :  { %v6524_v51 = vadd.f32 %v4893_v49, %v295_v47  ;;  %v478_v21 = vpop.f32.mrb[3].mxu0 }
 0x24d   :  { %v4896_v52 = vpop.f32.mrb[4].mxu0 }
 0x24e   :  { %v6526_v53 = vadd.f32 %v4896_v52, %v295_v47  ;;  %v488_v54 = vpop.f32.mrb[5].mxu0 }
 0x24f   :  { %v6528_v55 = vadd.f32 %v488_v54, %v295_v47 }
 0x251   :  { %v4899_v57 = vpop.f32.mrb[6].mxu0 }
 0x252   :  { %v6530_v58 = vadd.f32 %v4899_v57, %v295_v47  ;;  %v498_v60 = vpop.f32.mrb[7].mxu0 }
 0x253   :  { %v6532_v62 = vadd.f32 %v498_v60, %v295_v47  ;;  %v479_v60 = vadd.f32 %v478_v21, %v295_v47 }
 0x255   :  { %v4902_v63 = vpop.f32.mrb[8].mxu0 }
 0x256   :  { %v6534_v2 = vadd.f32 %v4902_v63, %v295_v47  ;;  %v508_v3 = vpop.f32.mrb[9].mxu0 }
 0x257   :  { %v6536_v4 = vadd.f32 %v508_v3, %v295_v47 }
 0x267   :  { %v675_v17 = vpop.f32.mrb[0].mxu1 }
 0x268   :  { %v5876_v22 = vadd.f32 %v5875_v16, %v675_v17  ;;  %v677_v23 = vpop.f32.mrb[1].mxu1  ;;  %v775_v17 = vpop.permute.xlu0 %774 }
 0x269   :  { %v746_v24 = vpop.f32.mrb[10].mxu0  ;;  %v5878_v32 = vadd.f32 %v5877_v20, %v677_v23  ;;  %v782_v20 = vunpack.c.0.s8 %v781_v14 }
 0x26a   :  { %v4512_v26 = vmul.f32 -1.442695, %v5876_v22  ;;  %v4937_v28 = vpop.f32.mrb[11].mxu0  ;;  %v747_v54 = vadd.f32 %v746_v24, %v605_v46 }
 0x26b   :  { %v4513_v33 = vmul.f32 -1.442695, %v5878_v32  ;;  %v6559_v7 = vsub.s32 %v782_v20, %v6515_v43 }
 0x26c   :  { %5941 = vpow2.f32 %v4512_v26  ;;  %v848_v24 = vpop.permute.xlu0 %847 }
 0x26d   :  { %5943 = vpow2.f32 %v4513_v33  ;;  %v850_v33 = vmul.f32 0.0, %v848_v24 }
 0x276   :  { %v5942_v36 = vpop.eup %5941 }
 0x277   :  { %v754_v37 = vadd.f32 1.0, %v5942_v36  ;;  %v5944_v49 = vpop.eup %5943 }
 0x278   :  { %v761_v52 = vadd.f32 1.0, %v5944_v49 }
 0x279   :  { %5945 = vrcp.f32 %v754_v37 }
 0x27a   :  { %5947 = vrcp.f32 %v761_v52 }
 0x283   :  { %v5946_v57 = vpop.eup %5945 }
 0x284   :  { %v764_v63 = vmul.f32 %v5946_v57, %v747_v54  ;;  %v5948_v16 = vpop.eup %5947 }
 0x285   :  { %v767_v22 = vsub.f32 1.0, %v5948_v16  ;;  %v769_v26 = vmul.f32 0.0, %v5948_v16 }
 0x286   :  { %v765_v3 = vadd.f32 %v764_v63, %v479_v60 }
 0x288   :  { %5949 = vtanh.f32 %v765_v3 }
 0x292   :  { %v5950_v23 = vpop.eup %5949 }
 0x293   :  { %v768_v28 = vmul.f32 %v5950_v23, %v767_v22 }
 0x295   :  { %v770_v32 = vadd.f32 %v769_v26, %v768_v28  ;;  %v1088_v28 = vpop.permute.xlu1 %1087 }
 0x297   :  { %v777_v47 = vmul.f32 %v775_v17, %v770_v32 }
 0x299   :  { %v779_v21 = vcombine.high %v777_v47, %v777_v47  ;;  %v786_v36 = vrot.slane %v777_v47, %v6559_v7  ;;  %v6562_v37 = vadd.f32 %v850_v33, %v777_v47 }
 0x29b   :  { %v793_v46 = vrot.slane %v779_v21, %v6559_v7  ;;  %v794_v49 = vcombine.high %v786_v36, %v786_v36  ;;  %v802_v52 = vrot.slane %v786_v36, %v6559_v7  ;;  %4514 = vst.sshfl [vmem:[#allocation3] sm:$0x1 pattern:$0x73625140] %v786_v36  ;;  %986 = vmatmul.mubr.f32.vlgmr.msra.gmra.mrb[2].mxu1 %v6562_v37  ;;  %v1161_v21 = vpop.permute.xlu1 %1160 }
 0x29c   :  { %4971 = vmatmul.mubr.f32.vlgmr.msra.gmra.mrb[12].mxu0 %v6562_v37  ;;  %5510 = vmatpush1.bf16.msra.mxu1 %v6368_v27 }
 0x29d   :  { %v795_v54 = vcombine.high %v793_v46, %v793_v46  ;;  %v809_v57 = vrot.slane %v793_v46, %v6559_v7  ;;  %v816_v60 = vrot.slane %v794_v49, %v6559_v7  ;;  %v824_v63 = vcombine.high %v802_v52, %v802_v52  ;;  %4515 = vst.sshfl [vmem:[#allocation3 + $0x8] sm:$0x1 pattern:$0x73625140] %v794_v49 }
 0x29e   :  { %4516 = vst.sshfl [vmem:[#allocation3 + $0x20] sm:$0x1 pattern:$0x73625140] %v793_v46  ;;  %5541 = vmatpush3.bf16.msra.mxu0 %v6372_v34  ;;  %5512 = vmatprep.subr.bf16.mxu1 %v6370_v29  ;;  %v904_v29 = vld [vmem:[%s7161_s10] sm:$0x7]  ;;  %v1163_v46 = vmul.f32 %v1161_v21, %v6562_v37 }
 0x29f   :  { %5542 = vmatprep.subr.bf16.mxu0 %v6179_v0  ;;  %v823_v3 = vrot.slane %v795_v54, %v6559_v7  ;;  %v825_v12 = vcombine.high %v809_v57, %v809_v57  ;;  %v826_v14 = vcombine.high %v816_v60, %v816_v60  ;;  %838 = vst [vmem:[#allocation3 + $0x10] sm:$0x1] %v824_v63  ;;  %4517 = vst.sshfl [vmem:[#allocation3 + $0x28] sm:$0x1 pattern:$0x73625140] %v795_v54 }
 0x2a0   :  { %1298 = vmatprep.mubr.f32.mxu1 %v6181_v1  ;;  %5005 = vmatprep.mubr.msk.f32.mxu0 %vm6180_vm0, %v6181_v1  ;;  %v1516_v21 = vld [vmem:[#allocation9 + $0x110] sm:$0xff] }
 0x2a1   :  { %5514 = vmatpush1.bf16.msra.mxu1 %v6379_v38  ;;  %v827_v27 = vcombine.high %v823_v3, %v823_v3  ;;  %839 = vst [vmem:[#allocation3 + $0x18] sm:$0x1] %v826_v14  ;;  %842 = vst [vmem:[#allocation3 + $0x30] sm:$0x1] %v825_v12  ;;  %v909_v38 = vrot.slane %v904_v29, %v6539_v6 }
 0x2a2   :  { %5544 = vmatpush3.bf16.msra.mxu0 %v6388_v45  ;;  %5516 = vmatprep.subr.bf16.mxu1 %v6382_v39  ;;  %v913_v39 = vrot.slane %v904_v29, %v6545_v9 }
 0x2a3   :  { %5545 = vmatprep.subr.bf16.mxu0 %v6179_v0  ;;  %843 = vst [vmem:[#allocation3 + $0x38] sm:$0x1] %v827_v27 }
 0x2a5   :  { %5518 = vmatpush1.bf16.msra.mxu1 %v6393_v48  ;;  %v5879_v48 = vadd.f32 %v909_v38, %v6548_v11 }
 0x2a6   :  { %5547 = vmatpush3.bf16.msra.mxu0 %v6405_v56  ;;  %5520 = vmatprep.subr.bf16.mxu1 %v6399_v50 }
 0x2a7   :  { %5548 = vmatprep.subr.bf16.mxu0 %v6179_v0 }
 0x2a9   :  { %5522 = vmatpush1.bf16.msra.mxu1 %v6410_v59  ;;  %v5881_v59 = vadd.f32 %v913_v39, %v6552_v13 }
 0x2aa   :  { %5550 = vmatpush3.bf16.msra.mxu0 %v6422_v5  ;;  %5524 = vmatprep.subr.bf16.mxu1 %v6416_v61 }
 0x2ab   :  { %5551 = vmatprep.subr.bf16.mxu0 %v6179_v0 }
 0x2ad   :  { %5526 = vmatpush1.bf16.msra.mxu1 %v6427_v8 }
 0x2ae   :  { %5553 = vmatpush3.bf16.msra.mxu0 %v6436_v15  ;;  %5528 = vmatprep.subr.bf16.mxu1 %v6433_v10 }
 0x2af   :  { %5554 = vmatprep.subr.bf16.mxu0 %v6179_v0 }
 0x2b1   :  { %5530 = vmatpush1.bf16.msra.mxu1 %v6443_v18 }
 0x2b2   :  { %5556 = vmatpush3.bf16.msra.mxu0 %v6449_v25  ;;  %5532 = vmatprep.subr.bf16.mxu1 %v6446_v19 }
 0x2b3   :  { %5557 = vmatprep.subr.bf16.mxu0 %v6179_v0 }
 0x2b5   :  { %5534 = vmatpush1.bf16.msra.mxu1 %v6454_v30 }
 0x2b6   :  { %5559 = vmatpush3.bf16.msra.mxu0 %v6460_v35  ;;  %5536 = vmatprep.subr.bf16.mxu1 %v6457_v31 }
 0x2b7   :  { %5560 = vmatprep.subr.bf16.mxu0 %v6179_v0 }
 0x2b9   :  { %5538 = vmatpush1.bf16.msra.mxu1 %v6465_v40 }
 0x2ba   :  { %5562 = vmatpush3.bf16.msra.mxu0 %v6469_v41  ;;  %v917_v41 = vrot.slane %v904_v29, %v6518_v44 }
 0x2bb   :  { %5595 = vmatprep.subr.bf16.mxu0 %v6179_v0 }
 0x36e   :  { %v987_v50 = vpop.f32.mrb[2].mxu1 }
 0x36f   :  { %v5880_v61 = vadd.f32 %v5879_v48, %v987_v50  ;;  %v1058_v8 = vpop.f32.mrb[12].mxu0  ;;  %v989_v10 = vpop.f32.mrb[3].mxu1  ;;  %v1486_v48 = vld [vmem:[#allocation9 + $0x20] sm:$0xff] }
 0x370   :  { %v4972_v18 = vpop.f32.mrb[13].mxu0  ;;  %v5882_v25 = vadd.f32 %v5881_v59, %v989_v10  ;;  %v1059_v17 = vadd.f32 %v1058_v8, %v917_v41  ;;  %v1485_v59 = vld [vmem:[#allocation9 + $0x18] sm:$0xff]  ;;  %v1488_v10 = vld [vmem:[#allocation9 + $0x30] sm:$0xff] }
 0x371   :  { %v4518_v19 = vmul.f32 -1.442695, %v5880_v61  ;;  %v1501_v41 = vld [vmem:[#allocation9 + $0x98] sm:$0xff] }
 0x372   :  { %v4519_v30 = vmul.f32 -1.442695, %v5882_v25  ;;  %v1498_v25 = vld [vmem:[#allocation9 + $0x80] sm:$0xff] }
 0x373   :  { %5951 = vpow2.f32 %v4518_v19  ;;  %v1495_v19 = vld [vmem:[#allocation9 + $0x68] sm:$0xff] }
 0x374   :  { %5953 = vpow2.f32 %v4519_v30  ;;  %v6651_v30 = vpack.c.bf16 %v1498_v25, %v1495_v19 }
 0x37d   :  { %v5952_v31 = vpop.eup %5951 }
 0x37e   :  { %v1066_v35 = vadd.f32 1.0, %v5952_v31  ;;  %v5954_v40 = vpop.eup %5953  ;;  %v1494_v31 = vld [vmem:[#allocation9 + $0x60] sm:$0xff] }
 0x37f   :  { %v1073_v16 = vadd.f32 1.0, %v5954_v40 }
 0x380   :  { %5955 = vrcp.f32 %v1066_v35  ;;  %v1497_v35 = vld [vmem:[#allocation9 + $0x78] sm:$0xff] }
 0x381   :  { %5957 = vrcp.f32 %v1073_v16  ;;  %v6653_v40 = vpack.c.bf16 %v1497_v35, %v1494_v31  ;;  %v1504_v16 = vld [vmem:[#allocation9 + $0xb0] sm:$0xff]  ;;  %v1217_v31 = vld [vmem:[%s7161_s10] sm:$0x7] }
 0x382   :  { %v1222_v35 = vrot.slane %v1217_v31, %v6539_v6 }
 0x38a   :  { %v5956_v20 = vpop.eup %5955 }
 0x38b   :  { %v1076_v22 = vmul.f32 %v5956_v20, %v1059_v17  ;;  %v5958_v26 = vpop.eup %5957  ;;  %v6657_v17 = vpack.c.bf16 %v1504_v16, %v1501_v41  ;;  %v1500_v20 = vld [vmem:[#allocation9 + $0x90] sm:$0xff]  ;;  %v1226_v41 = vrot.slane %v1217_v31, %v6545_v9  ;;  %v5883_v16 = vadd.f32 %v1222_v35, %v6548_v11  ;;  %v1401_v35 = vpop.permute.xlu0 %1400 }
 0x38c   :  { %v1079_v32 = vsub.f32 1.0, %v5958_v26  ;;  %v1081_v33 = vmul.f32 %v5958_v26, %v6562_v37  ;;  %v1507_v26 = vld [vmem:[#allocation9 + $0xc8] sm:$0xff] }
 0x38d   :  { %v1077_v23 = vadd.f32 %v1076_v22, %v6524_v51  ;;  %v1503_v22 = vld [vmem:[#allocation9 + $0xa8] sm:$0xff] }
 0x38f   :  { %5959 = vtanh.f32 %v1077_v23  ;;  %v6659_v23 = vpack.c.bf16 %v1503_v22, %v1500_v20  ;;  %v5885_v22 = vadd.f32 %v1226_v41, %v6552_v13  ;;  %v1474_v41 = vpop.permute.xlu1 %1473 }
 0x399   :  { %v5960_v24 = vpop.eup %5959 }
 0x39a   :  { %v1080_v47 = vmul.f32 %v5960_v24, %v1079_v32  ;;  %v1506_v32 = vld [vmem:[#allocation9 + $0xc0] sm:$0xff] }
 0x39c   :  { %v1082_v36 = vadd.f32 %v1081_v33, %v1080_v47  ;;  %v1509_v33 = vld [vmem:[#allocation9 + $0xd8] sm:$0xff] }
 0x39d   :  { %v1513_v47 = vld [vmem:[#allocation9 + $0xf8] sm:$0xff] }
 0x39e   :  { %v1090_v49 = vmul.f32 %v1088_v28, %v1082_v36  ;;  %v1510_v28 = vld [vmem:[#allocation9 + $0xe0] sm:$0xff]  ;;  %v6665_v36 = vpack.c.bf16 %v1509_v33, %v1506_v32 }
 0x39f   :  { %v6663_v24 = vpack.c.bf16 %v1510_v28, %v1507_v26 }
 0x3a0   :  { %v1092_v52 = vcombine.high %v1090_v49, %v1090_v49  ;;  %v1099_v54 = vrot.slane %v1090_v49, %v6559_v7  ;;  %v6617_v57 = vadd.f32 %v1163_v46, %v1090_v49  ;;  %v6667_v46 = vpack.c.bf16 %v1516_v21, %v1513_v47  ;;  %v1512_v49 = vld [vmem:[#allocation9 + $0xf0] sm:$0xff] }
 0x3a2   :  { %v1106_v51 = vrot.slane %v1092_v52, %v6559_v7  ;;  %v1107_v60 = vcombine.high %v1099_v54, %v1099_v54  ;;  %v1115_v63 = vrot.slane %v1099_v54, %v6559_v7  ;;  %4521 = vst.sshfl [vmem:[#allocation3 + $0x1] sm:$0x1 pattern:$0x73625140] %v1099_v54  ;;  %1299 = vmatmul.mubr.f32.vlgmr.msra.gmra.mrb[4].mxu1 %v6617_v57  ;;  %v1515_v52 = vld [vmem:[#allocation9 + $0x108] sm:$0xff]  ;;  %v1514_v54 = vld [vmem:[#allocation9 + $0x100] sm:$0xff] }
 0x3a3   :  { %5006 = vmatmul.mubr.f32.vlgmr.msra.gmra.mrb[14].mxu0 %v6617_v57  ;;  %1611 = vmatprep.mubr.f32.mxu1 %v6181_v1 }
 0x3a4   :  { %v1108_v3 = vcombine.high %v1106_v51, %v1106_v51  ;;  %v1122_v37 = vrot.slane %v1106_v51, %v6559_v7  ;;  %v1129_v12 = vrot.slane %v1107_v60, %v6559_v7  ;;  %v1137_v14 = vcombine.high %v1115_v63, %v1115_v63  ;;  %4522 = vst.sshfl [vmem:[#allocation3 + $0x9] sm:$0x1 pattern:$0x73625140] %v1107_v60  ;;  %v1519_v60 = vld [vmem:[#allocation9 + $0x128] sm:$0xff]  ;;  %v1522_v63 = vld [vmem:[#allocation9 + $0x140] sm:$0xff] }
 0x3a5   :  { %4523 = vst.sshfl [vmem:[#allocation3 + $0x21] sm:$0x1 pattern:$0x73625140] %v1106_v51  ;;  %5597 = vmatpush3.bf16.msra.mxu0 %v6372_v34  ;;  %5040 = vmatprep.mubr.msk.f32.mxu0 %vm6180_vm0, %v6181_v1  ;;  %v1483_v34 = vld [vmem:[#allocation9 + $0x8] sm:$0xff]  ;;  %v1517_v51 = vld [vmem:[#allocation9 + $0x118] sm:$0xff] }
 0x3a6   :  { %5598 = vmatprep.subr.bf16.mxu0 %v6179_v0  ;;  %v1136_v27 = vrot.slane %v1108_v3, %v6559_v7  ;;  %v1138_v29 = vcombine.high %v1122_v37, %v1122_v37  ;;  %v1139_v38 = vcombine.high %v1129_v12, %v1129_v12  ;;  %1151 = vst [vmem:[#allocation3 + $0x11] sm:$0x1] %v1137_v14  ;;  %4524 = vst.sshfl [vmem:[#allocation3 + $0x29] sm:$0x1 pattern:$0x73625140] %v1108_v3 }
 0x3a7   :  { %v6639_v50 = vpack.c.bf16 %v1486_v48, %v1483_v34  ;;  %v6670_v3 = vpack.c.bf16 %v1517_v51, %v1514_v54  ;;  %v1520_v37 = vld [vmem:[#allocation9 + $0x130] sm:$0xff]  ;;  %v6673_v12 = vpack.c.bf16 %v1515_v52, %v1512_v49  ;;  %v1523_v14 = vld [vmem:[#allocation9 + $0x148] sm:$0xff]  ;;  %v1525_v34 = vld [vmem:[#allocation9 + $0x158] sm:$0xff] }
 0x3a8   :  { %v1140_v39 = vcombine.high %v1136_v27, %v1136_v27  ;;  %1152 = vst [vmem:[#allocation3 + $0x19] sm:$0x1] %v1139_v38  ;;  %1155 = vst [vmem:[#allocation3 + $0x31] sm:$0x1] %v1138_v29  ;;  %v6677_v27 = vpack.c.bf16 %v1522_v63, %v1519_v60  ;;  %v1518_v29 = vld [vmem:[#allocation9 + $0x120] sm:$0xff]  ;;  %v1521_v38 = vld [vmem:[#allocation9 + $0x138] sm:$0xff]  ;;  %v1230_v60 = vrot.slane %v1217_v31, %v6518_v44 }
 0x3a9   :  { %5600 = vmatpush3.bf16.msra.mxu0 %v6388_v45  ;;  %v1482_v45 = vld [vmem:[#allocation9] sm:$0xff]  ;;  %5564 = vmatprep.subr.bf16.mxu1 %v6639_v50  ;;  %v1528_v48 = vld [vmem:[#allocation9 + $0x170] sm:$0xff] }
 0x3aa   :  { %5601 = vmatprep.subr.bf16.mxu0 %v6179_v0  ;;  %1156 = vst [vmem:[#allocation3 + $0x39] sm:$0x1] %v1140_v39  ;;  %v6641_v61 = vpack.c.bf16 %v1485_v59, %v1482_v45  ;;  %v6679_v39 = vpack.c.bf16 %v1523_v14, %v1520_v37  ;;  %v1526_v45 = vld [vmem:[#allocation9 + $0x160] sm:$0xff]  ;;  %v1529_v59 = vld [vmem:[#allocation9 + $0x178] sm:$0xff] }
 0x3ab   :  { %v6689_v19 = vpack.c.bf16 %v1529_v59, %v1526_v45 }
 0x3ac   :  { %5566 = vmatpush1.bf16.msra.mxu1 %v6641_v61 }
 0x3ad   :  { %5603 = vmatpush3.bf16.msra.mxu0 %v6405_v56  ;;  %v1489_v56 = vld [vmem:[#allocation9 + $0x38] sm:$0xff] }
 0x3ae   :  { %5604 = vmatprep.subr.bf16.mxu0 %v6179_v0 }
 0x3b1   :  { %5606 = vmatpush3.bf16.msra.mxu0 %v6422_v5  ;;  %v1492_v5 = vld [vmem:[#allocation9 + $0x50] sm:$0xff] }
 0x3b2   :  { %5607 = vmatprep.subr.bf16.mxu0 %v6179_v0  ;;  %v6645_v8 = vpack.c.bf16 %v1492_v5, %v1489_v56  ;;  %v6683_v56 = vpack.c.bf16 %v1521_v38, %v1518_v29  ;;  %v6687_v5 = vpack.c.bf16 %v1528_v48, %v1525_v34 }
 0x3b4   :  { %5568 = vmatprep.subr.bf16.mxu1 %v6645_v8 }
 0x3b5   :  { %5609 = vmatpush3.bf16.msra.mxu0 %v6436_v15  ;;  %v1491_v15 = vld [vmem:[#allocation9 + $0x48] sm:$0xff] }
 0x3b6   :  { %5610 = vmatprep.subr.bf16.mxu0 %v6179_v0  ;;  %v6647_v18 = vpack.c.bf16 %v1491_v15, %v1488_v10  ;;  %v1524_v10 = vld [vmem:[#allocation9 + $0x150] sm:$0xff]  ;;  %v1527_v15 = vld [vmem:[#allocation9 + $0x168] sm:$0xff] }
 0x3b7   :  { %v6693_v25 = vpack.c.bf16 %v1527_v15, %v1524_v10 }
 0x3b8   :  { %5570 = vmatpush1.bf16.msra.mxu1 %v6647_v18 }
 0x3b9   :  { %5572 = vmatprep.subr.bf16.mxu1 %v6651_v30  ;;  %5612 = vmatpush3.bf16.msra.mxu0 %v6670_v3 }
 0x3ba   :  { %5613 = vmatprep.subr.bf16.mxu0 %v6179_v0 }
 0x3bc   :  { %5574 = vmatpush1.bf16.msra.mxu1 %v6653_v40 }
 0x3bd   :  { %5576 = vmatprep.subr.bf16.mxu1 %v6657_v17  ;;  %5615 = vmatpush3.bf16.msra.mxu0 %v6679_v39 }
 0x3be   :  { %5616 = vmatprep.subr.bf16.mxu0 %v6179_v0 }
 0x3c0   :  { %5578 = vmatpush1.bf16.msra.mxu1 %v6659_v23 }
 0x3c1   :  { %5580 = vmatprep.subr.bf16.mxu1 %v6663_v24  ;;  %5618 = vmatpush3.bf16.msra.mxu0 %v6689_v19 }
 0x3c2   :  { %5651 = vmatprep.subr.bf16.mxu0 %v6179_v0 }
 0x3c4   :  { %5582 = vmatpush1.bf16.msra.mxu1 %v6665_v36 }
 0x3c5   :  { %5584 = vmatprep.subr.bf16.mxu1 %v6667_v46 }
 0x3c8   :  { %5586 = vmatpush1.bf16.msra.mxu1 %v6673_v12 }
 0x3c9   :  { %5588 = vmatprep.subr.bf16.mxu1 %v6677_v27 }
 0x3cc   :  { %5590 = vmatpush1.bf16.msra.mxu1 %v6683_v56 }
 0x3cd   :  { %5592 = vmatprep.subr.bf16.mxu1 %v6687_v5 }
 0x3d0   :  { %5594 = vmatpush1.bf16.msra.mxu1 %v6693_v25 }
 0x3d1   :  { %5620 = vmatprep.subr.bf16.mxu1 %v6639_v50 }
 0x475   :  { %v1300_v20 = vpop.f32.mrb[4].mxu1 }
 0x476   :  { %v5884_v26 = vadd.f32 %v5883_v16, %v1300_v20  ;;  %v1371_v28 = vpop.f32.mrb[14].mxu0  ;;  %v1302_v32 = vpop.f32.mrb[5].mxu1  ;;  %v1476_v16 = vmul.f32 %v1474_v41, %v6617_v57  ;;  %v1824_v41 = vld [vmem:[#allocation9 + $0xe8] sm:$0xff] }
 0x477   :  { %v5007_v33 = vpop.f32.mrb[15].mxu0  ;;  %v5886_v21 = vadd.f32 %v5885_v22, %v1302_v32  ;;  %v1372_v37 = vadd.f32 %v1371_v28, %v1230_v60  ;;  %v1797_v60 = vld [vmem:[#allocation9 + $0x10] sm:$0xff] }
 0x478   :  { %v4525_v47 = vmul.f32 -1.442695, %v5884_v26 }
 0x479   :  { %v4526_v49 = vmul.f32 -1.442695, %v5886_v21 }
 0x47a   :  { %5961 = vpow2.f32 %v4525_v47 }
 0x47b   :  { %5963 = vpow2.f32 %v4526_v49 }
 0x484   :  { %v5962_v52 = vpop.eup %5961 }
 0x485   :  { %v1379_v54 = vadd.f32 1.0, %v5962_v52  ;;  %v5964_v51 = vpop.eup %5963 }
 0x486   :  { %v1386_v63 = vadd.f32 1.0, %v5964_v51 }
 0x487   :  { %5965 = vrcp.f32 %v1379_v54 }
 0x488   :  { %5967 = vrcp.f32 %v1386_v63  ;;  %v1800_v63 = vld [vmem:[#allocation9 + $0x28] sm:$0xff] }
 0x491   :  { %v5966_v14 = vpop.eup %5965 }
 0x492   :  { %v1389_v29 = vmul.f32 %v5966_v14, %v1372_v37  ;;  %v5968_v34 = vpop.eup %5967  ;;  %v6740_v37 = vpack.c.bf16 %v1800_v63, %v1797_v60  ;;  %v1803_v14 = vld [vmem:[#allocation9 + $0x40] sm:$0xff] }
 0x493   :  { %v1392_v48 = vsub.f32 1.0, %v5968_v34  ;;  %v1394_v59 = vmul.f32 %v5968_v34, %v6617_v57  ;;  %v1809_v34 = vld [vmem:[#allocation9 + $0x70] sm:$0xff] }
 0x494   :  { %v1390_v38 = vadd.f32 %v1389_v29, %v6528_v55  ;;  %v1806_v29 = vld [vmem:[#allocation9 + $0x58] sm:$0xff] }
 0x496   :  { %5969 = vtanh.f32 %v1390_v38  ;;  %v6744_v38 = vpack.c.bf16 %v1806_v29, %v1803_v14 }
 0x4a0   :  { %v5970_v45 = vpop.eup %5969 }
 0x4a1   :  { %v1393_v10 = vmul.f32 %v5970_v45, %v1392_v48  ;;  %v1812_v48 = vld [vmem:[#allocation9 + $0x88] sm:$0xff] }
 0x4a2   :  { %v6748_v45 = vpack.c.bf16 %v1812_v48, %v1809_v34 }
 0x4a3   :  { %v1395_v15 = vadd.f32 %v1394_v59, %v1393_v10  ;;  %v1815_v59 = vld [vmem:[#allocation9 + $0xa0] sm:$0xff]  ;;  %v1818_v10 = vld [vmem:[#allocation9 + $0xb8] sm:$0xff] }
 0x4a5   :  { %v1403_v31 = vmul.f32 %v1401_v35, %v1395_v15  ;;  %v6752_v15 = vpack.c.bf16 %v1818_v10, %v1815_v59  ;;  %v1821_v35 = vld [vmem:[#allocation9 + $0xd0] sm:$0xff] }
 0x4a7   :  { %v1405_v20 = vcombine.high %v1403_v31, %v1403_v31  ;;  %v1412_v22 = vrot.slane %v1403_v31, %v6559_v7  ;;  %v6712_v26 = vadd.f32 %v1476_v16, %v1403_v31  ;;  %v6755_v16 = vpack.c.bf16 %v1824_v41, %v1821_v35  ;;  %v1530_v31 = vld [vmem:[%s7161_s10] sm:$0x7] }
 0x4a8   :  { %v1543_v14 = vrot.slane %v1530_v31, %v6518_v44 }
 0x4a9   :  { %v1419_v55 = vrot.slane %v1405_v20, %v6559_v7  ;;  %v1420_v28 = vcombine.high %v1412_v22, %v1412_v22  ;;  %v1428_v32 = vrot.slane %v1412_v22, %v6559_v7  ;;  %4528 = vst.sshfl [vmem:[#allocation3 + $0x2] sm:$0x1 pattern:$0x73625140] %v1412_v22  ;;  %1612 = vmatmul.mubr.f32.vlgmr.msra.gmra.mrb[6].mxu1 %v6712_v26 }
 0x4aa   :  { %5041 = vmatmul.mubr.f32.vlgmr.msra.gmra.mrb[16].mxu0 %v6712_v26  ;;  %5622 = vmatpush1.bf16.msra.mxu1 %v6641_v61  ;;  %v1535_v20 = vrot.slane %v1530_v31, %v6539_v6  ;;  %v1539_v22 = vrot.slane %v1530_v31, %v6545_v9 }
 0x4ab   :  { %1924 = vmatprep.mubr.f32.mxu1 %v6181_v1  ;;  %v1421_v57 = vcombine.high %v1419_v55, %v1419_v55  ;;  %v1435_v33 = vrot.slane %v1419_v55, %v6559_v7  ;;  %v1442_v47 = vrot.slane %v1420_v28, %v6559_v7  ;;  %v1450_v21 = vcombine.high %v1428_v32, %v1428_v32 }
 0x4ac   :  { %4529 = vst.sshfl [vmem:[#allocation3 + $0xa] sm:$0x1 pattern:$0x73625140] %v1420_v28  ;;  %5624 = vmatprep.subr.bf16.mxu1 %v6645_v8  ;;  %5075 = vmatprep.mubr.msk.f32.mxu0 %vm6180_vm0, %v6181_v1 }
 0x4ad   :  { %4530 = vst.sshfl [vmem:[#allocation3 + $0x22] sm:$0x1 pattern:$0x73625140] %v1419_v55  ;;  %v1449_v49 = vrot.slane %v1421_v57, %v6559_v7  ;;  %v1451_v52 = vcombine.high %v1435_v33, %v1435_v33  ;;  %v1452_v54 = vcombine.high %v1442_v47, %v1442_v47  ;;  %1464 = vst [vmem:[#allocation3 + $0x12] sm:$0x1] %v1450_v21  ;;  %5653 = vmatpush3.bf16.msra.mxu0 %v6740_v37 }
 0x4ae   :  { %4531 = vst.sshfl [vmem:[#allocation3 + $0x2a] sm:$0x1 pattern:$0x73625140] %v1421_v57  ;;  %5626 = vmatpush1.bf16.msra.mxu1 %v6647_v18  ;;  %5654 = vmatprep.subr.bf16.mxu0 %v6179_v0  ;;  %v5887_v55 = vadd.f32 %v1535_v20, %v6548_v11  ;;  %v5889_v57 = vadd.f32 %v1539_v22, %v6552_v13 }
 0x4af   :  { %v1453_v51 = vcombine.high %v1449_v49, %v1449_v49  ;;  %1465 = vst [vmem:[#allocation3 + $0x1a] sm:$0x1] %v1452_v54  ;;  %1468 = vst [vmem:[#allocation3 + $0x32] sm:$0x1] %v1451_v52  ;;  %5628 = vmatprep.subr.bf16.mxu1 %v6651_v30 }
 0x4b1   :  { %1469 = vst [vmem:[#allocation3 + $0x3a] sm:$0x1] %v1453_v51  ;;  %5656 = vmatpush3.bf16.msra.mxu0 %v6744_v38 }
 0x4b2   :  { %5630 = vmatpush1.bf16.msra.mxu1 %v6653_v40  ;;  %5657 = vmatprep.subr.bf16.mxu0 %v6179_v0 }
 0x4b3   :  { %5632 = vmatprep.subr.bf16.mxu1 %v6657_v17 }
 0x4b5   :  { %5659 = vmatpush3.bf16.msra.mxu0 %v6748_v45 }
 0x4b6   :  { %5634 = vmatpush1.bf16.msra.mxu1 %v6659_v23  ;;  %5660 = vmatprep.subr.bf16.mxu0 %v6179_v0 }
 0x4b7   :  { %5636 = vmatprep.subr.bf16.mxu1 %v6663_v24 }
 0x4b9   :  { %5662 = vmatpush3.bf16.msra.mxu0 %v6752_v15 }
 0x4ba   :  { %5638 = vmatpush1.bf16.msra.mxu1 %v6665_v36  ;;  %5663 = vmatprep.subr.bf16.mxu0 %v6179_v0 }
 0x4bb   :  { %5640 = vmatprep.subr.bf16.mxu1 %v6667_v46 }
 0x4bd   :  { %5665 = vmatpush3.bf16.msra.mxu0 %v6755_v16 }
 0x4be   :  { %5642 = vmatpush1.bf16.msra.mxu1 %v6673_v12  ;;  %5666 = vmatprep.subr.bf16.mxu0 %v6179_v0 }
 0x4bf   :  { %5644 = vmatprep.subr.bf16.mxu1 %v6677_v27 }
 0x4c1   :  { %5668 = vmatpush3.bf16.msra.mxu0 %v6670_v3 }
 0x4c2   :  { %5646 = vmatpush1.bf16.msra.mxu1 %v6683_v56  ;;  %5669 = vmatprep.subr.bf16.mxu0 %v6179_v0 }
 0x4c3   :  { %5648 = vmatprep.subr.bf16.mxu1 %v6687_v5 }
 0x4c5   :  { %5671 = vmatpush3.bf16.msra.mxu0 %v6679_v39 }
 0x4c6   :  { %5650 = vmatpush1.bf16.msra.mxu1 %v6693_v25  ;;  %5672 = vmatprep.subr.bf16.mxu0 %v6179_v0 }
 0x4c7   :  { %5676 = vmatprep.subr.bf16.mxu1 %v6639_v50 }
 0x4c9   :  { %5674 = vmatpush3.bf16.msra.mxu0 %v6689_v19 }
 0x4ca   :  { %5707 = vmatprep.subr.bf16.mxu0 %v6179_v0 }
 0x57c   :  { %v1613_v28 = vpop.f32.mrb[6].mxu1 }
 0x57d   :  { %v1684_v32 = vpop.f32.mrb[16].mxu0  ;;  %v5888_v33 = vadd.f32 %v5887_v55, %v1613_v28  ;;  %v1615_v47 = vpop.f32.mrb[7].mxu1 }
 0x57e   :  { %v5042_v21 = vpop.f32.mrb[17].mxu0  ;;  %v5890_v52 = vadd.f32 %v5889_v57, %v1615_v47  ;;  %v1685_v34 = vadd.f32 %v1684_v32, %v1543_v14  ;;  %v1714_v57 = vpop.permute.xlu0 %1713 }
 0x57f   :  { %v4532_v49 = vmul.f32 -1.442695, %v5888_v33  ;;  %v1787_v33 = vpop.permute.xlu1 %1786 }
 0x580   :  { %v4533_v54 = vmul.f32 -1.442695, %v5890_v52  ;;  %v1789_v31 = vmul.f32 %v1787_v33, %v6712_v26 }
 0x581   :  { %5971 = vpow2.f32 %v4532_v49 }
 0x582   :  { %5973 = vpow2.f32 %v4533_v54 }
 0x58b   :  { %v5972_v51 = vpop.eup %5971 }
 0x58c   :  { %v1692_v60 = vadd.f32 1.0, %v5972_v51  ;;  %v5974_v63 = vpop.eup %5973 }
 0x58d   :  { %v1699_v29 = vadd.f32 1.0, %v5974_v63 }
 0x58e   :  { %5975 = vrcp.f32 %v1692_v60 }
 0x58f   :  { %5977 = vrcp.f32 %v1699_v29 }
 0x598   :  { %v5976_v48 = vpop.eup %5975 }
 0x599   :  { %v1702_v59 = vmul.f32 %v5976_v48, %v1685_v34  ;;  %v5978_v35 = vpop.eup %5977 }
 0x59a   :  { %v1705_v41 = vsub.f32 1.0, %v5978_v35  ;;  %v1707_v22 = vmul.f32 %v5978_v35, %v6712_v26 }
 0x59b   :  { %v1703_v10 = vadd.f32 %v1702_v59, %v6526_v53  ;;  %v1843_v59 = vld [vmem:[%s7161_s10] sm:$0x7] }
 0x59c   :  { %v1852_v35 = vrot.slane %v1843_v59, %v6545_v9 }
 0x59d   :  { %5979 = vtanh.f32 %v1703_v10  ;;  %v1848_v10 = vrot.slane %v1843_v59, %v6539_v6 }
 0x5a7   :  { %v5980_v20 = vpop.eup %5979 }
 0x5a8   :  { %v1706_v55 = vmul.f32 %v5980_v20, %v1705_v41  ;;  %v5891_v41 = vadd.f32 %v1848_v10, %v6548_v11 }
 0x5aa   :  { %v1708_v28 = vadd.f32 %v1707_v22, %v1706_v55  ;;  %v5893_v55 = vadd.f32 %v1852_v35, %v6552_v13 }
 0x5ac   :  { %v1716_v47 = vmul.f32 %v1714_v57, %v1708_v28 }
 0x5ae   :  { %v1718_v21 = vcombine.high %v1716_v47, %v1716_v47  ;;  %v1725_v32 = vrot.slane %v1716_v47, %v6559_v7  ;;  %v6778_v49 = vadd.f32 %v1789_v31, %v1716_v47 }
 0x5b0   :  { %v1732_v53 = vrot.slane %v1718_v21, %v6559_v7  ;;  %v1733_v52 = vcombine.high %v1725_v32, %v1725_v32  ;;  %v1741_v54 = vrot.slane %v1725_v32, %v6559_v7  ;;  %4535 = vst.sshfl [vmem:[#allocation3 + $0x3] sm:$0x1 pattern:$0x73625140] %v1725_v32  ;;  %1925 = vmatmul.mubr.f32.vlgmr.msra.gmra.mrb[8].mxu1 %v6778_v49 }
 0x5b1   :  { %5076 = vmatmul.mubr.f32.vlgmr.msra.gmra.mrb[18].mxu0 %v6778_v49  ;;  %5678 = vmatpush1.bf16.msra.mxu1 %v6641_v61 }
 0x5b2   :  { %5709 = vmatpush3.bf16.msra.mxu0 %v6740_v37  ;;  %v1734_v26 = vcombine.high %v1732_v53, %v1732_v53  ;;  %v1748_v51 = vrot.slane %v1732_v53, %v6559_v7  ;;  %v1755_v60 = vrot.slane %v1733_v52, %v6559_v7  ;;  %v1763_v63 = vcombine.high %v1741_v54, %v1741_v54 }
 0x5b3   :  { %4536 = vst.sshfl [vmem:[#allocation3 + $0xb] sm:$0x1 pattern:$0x73625140] %v1733_v52  ;;  %5680 = vmatprep.subr.bf16.mxu1 %v6645_v8  ;;  %5710 = vmatprep.subr.bf16.mxu0 %v6179_v0  ;;  %v1856_v52 = vrot.slane %v1843_v59, %v6518_v44 }
 0x5b4   :  { %4537 = vst.sshfl [vmem:[#allocation3 + $0x23] sm:$0x1 pattern:$0x73625140] %v1732_v53  ;;  %2237 = vmatprep.mubr.f32.mxu1 %v6181_v1  ;;  %v1762_v14 = vrot.slane %v1734_v26, %v6559_v7  ;;  %v1764_v29 = vcombine.high %v1748_v51, %v1748_v51  ;;  %v1765_v34 = vcombine.high %v1755_v60, %v1755_v60  ;;  %1777 = vst [vmem:[#allocation3 + $0x13] sm:$0x1] %v1763_v63 }
 0x5b5   :  { %4538 = vst.sshfl [vmem:[#allocation3 + $0x2b] sm:$0x1 pattern:$0x73625140] %v1734_v26  ;;  %5110 = vmatprep.mubr.msk.f32.mxu0 %vm6180_vm0, %v6181_v1  ;;  %5682 = vmatpush1.bf16.msra.mxu1 %v6647_v18 }
 0x5b6   :  { %5712 = vmatpush3.bf16.msra.mxu0 %v6744_v38  ;;  %v1766_v48 = vcombine.high %v1762_v14, %v1762_v14  ;;  %1778 = vst [vmem:[#allocation3 + $0x1b] sm:$0x1] %v1765_v34  ;;  %1781 = vst [vmem:[#allocation3 + $0x33] sm:$0x1] %v1764_v29  ;;  %5684 = vmatprep.subr.bf16.mxu1 %v6651_v30 }
 0x5b7   :  { %5713 = vmatprep.subr.bf16.mxu0 %v6179_v0 }
 0x5b8   :  { %1782 = vst [vmem:[#allocation3 + $0x3b] sm:$0x1] %v1766_v48 }
 0x5b9   :  { %5686 = vmatpush1.bf16.msra.mxu1 %v6653_v40 }
 0x5ba   :  { %5715 = vmatpush3.bf16.msra.mxu0 %v6748_v45  ;;  %5688 = vmatprep.subr.bf16.mxu1 %v6657_v17 }
 0x5bb   :  { %5716 = vmatprep.subr.bf16.mxu0 %v6179_v0 }
 0x5bd   :  { %5690 = vmatpush1.bf16.msra.mxu1 %v6659_v23 }
 0x5be   :  { %5718 = vmatpush3.bf16.msra.mxu0 %v6752_v15  ;;  %5692 = vmatprep.subr.bf16.mxu1 %v6663_v24 }
 0x5bf   :  { %5719 = vmatprep.subr.bf16.mxu0 %v6179_v0 }
 0x5c1   :  { %5694 = vmatpush1.bf16.msra.mxu1 %v6665_v36 }
 0x5c2   :  { %5721 = vmatpush3.bf16.msra.mxu0 %v6755_v16  ;;  %5696 = vmatprep.subr.bf16.mxu1 %v6667_v46 }
 0x5c3   :  { %5722 = vmatprep.subr.bf16.mxu0 %v6179_v0 }
 0x5c5   :  { %5698 = vmatpush1.bf16.msra.mxu1 %v6673_v12 }
 0x5c6   :  { %5724 = vmatpush3.bf16.msra.mxu0 %v6670_v3  ;;  %5700 = vmatprep.subr.bf16.mxu1 %v6677_v27 }
 0x5c7   :  { %5725 = vmatprep.subr.bf16.mxu0 %v6179_v0 }
 0x5c9   :  { %5702 = vmatpush1.bf16.msra.mxu1 %v6683_v56 }
 0x5ca   :  { %5727 = vmatpush3.bf16.msra.mxu0 %v6679_v39  ;;  %5704 = vmatprep.subr.bf16.mxu1 %v6687_v5 }
 0x5cb   :  { %5728 = vmatprep.subr.bf16.mxu0 %v6179_v0 }
 0x5cd   :  { %5706 = vmatpush1.bf16.msra.mxu1 %v6693_v25 }
 0x5ce   :  { %5730 = vmatpush3.bf16.msra.mxu0 %v6689_v19  ;;  %5732 = vmatprep.subr.bf16.mxu1 %v6639_v50 }
 0x5cf   :  { %5763 = vmatprep.subr.bf16.mxu0 %v6179_v0 }
 0x683   :  { %v1926_v20 = vpop.f32.mrb[8].mxu1 }
 0x684   :  { %v1997_v22 = vpop.f32.mrb[18].mxu0  ;;  %v5892_v28 = vadd.f32 %v5891_v41, %v1926_v20  ;;  %v1928_v57 = vpop.f32.mrb[9].mxu1 }
 0x685   :  { %v5077_v33 = vpop.f32.mrb[19].mxu0  ;;  %v5894_v47 = vadd.f32 %v5893_v55, %v1928_v57  ;;  %v1998_v26 = vadd.f32 %v1997_v22, %v1856_v52  ;;  %v2027_v41 = vpop.permute.xlu0 %2026 }
 0x686   :  { %v4539_v50 = vmul.f32 -1.442695, %v5892_v28  ;;  %v2100_v20 = vpop.permute.xlu1 %2099 }
 0x687   :  { %v4540_v31 = vmul.f32 -1.442695, %v5894_v47  ;;  %v2102_v59 = vmul.f32 %v2100_v20, %v6778_v49 }
 0x688   :  { %5981 = vpow2.f32 %v4539_v50 }
 0x689   :  { %5983 = vpow2.f32 %v4540_v31 }
 0x68a   :  { %v2413_v20 = vpop.permute.xlu1 %2412 }
 0x692   :  { %v5982_v21 = vpop.eup %5981 }
 0x693   :  { %v2005_v32 = vadd.f32 1.0, %v5982_v21  ;;  %v5984_v53 = vpop.eup %5983 }
 0x694   :  { %v2012_v54 = vadd.f32 1.0, %v5984_v53 }
 0x695   :  { %5985 = vrcp.f32 %v2005_v32 }
 0x696   :  { %5987 = vrcp.f32 %v2012_v54 }
 0x69f   :  { %v5986_v51 = vpop.eup %5985 }
 0x6a0   :  { %v2015_v60 = vmul.f32 %v5986_v51, %v1998_v26  ;;  %v5988_v14 = vpop.eup %5987 }
 0x6a1   :  { %v2018_v29 = vsub.f32 1.0, %v5988_v14  ;;  %v2020_v48 = vmul.f32 %v5988_v14, %v6778_v49 }
 0x6a2   :  { %v2016_v63 = vadd.f32 %v2015_v60, %v6532_v62 }
 0x6a4   :  { %5989 = vtanh.f32 %v2016_v63 }
 0x6ae   :  { %v5990_v34 = vpop.eup %5989 }
 0x6af   :  { %v2019_v10 = vmul.f32 %v5990_v34, %v2018_v29 }
 0x6b1   :  { %v2021_v35 = vadd.f32 %v2020_v48, %v2019_v10 }
 0x6b3   :  { %v2029_v55 = vmul.f32 %v2027_v41, %v2021_v35  ;;  %v2340_v41 = vpop.permute.xlu0 %2339 }
 0x6b5   :  { %v2031_v28 = vcombine.high %v2029_v55, %v2029_v55  ;;  %v2038_v22 = vrot.slane %v2029_v55, %v6559_v7  ;;  %v6834_v57 = vadd.f32 %v2102_v59, %v2029_v55 }
 0x6b7   :  { %v2045_v62 = vrot.slane %v2031_v28, %v6559_v7  ;;  %v2046_v33 = vcombine.high %v2038_v22, %v2038_v22  ;;  %v2054_v50 = vrot.slane %v2038_v22, %v6559_v7  ;;  %4542 = vst.sshfl [vmem:[#allocation3 + $0x4] sm:$0x1 pattern:$0x73625140] %v2038_v22  ;;  %2238 = vmatmul.mubr.f32.vlgmr.msra.gmra.mrb[10].mxu1 %v6834_v57 }
 0x6b8   :  { %5111 = vmatmul.mubr.f32.vlgmr.msra.gmra.mrb[20].mxu0 %v6834_v57  ;;  %5734 = vmatpush1.bf16.msra.mxu1 %v6641_v61  ;;  %v2415_v59 = vmul.f32 %v2413_v20, %v6834_v57  ;;  %v2766_v20 = vld [vmem:[#allocation9 + $0x100] sm:$0xff] }
 0x6b9   :  { %5765 = vmatpush3.bf16.msra.mxu0 %v6740_v37  ;;  %v2047_v49 = vcombine.high %v2045_v62, %v2045_v62  ;;  %v2061_v47 = vrot.slane %v2045_v62, %v6559_v7  ;;  %v2068_v31 = vrot.slane %v2046_v33, %v6559_v7  ;;  %v2076_v21 = vcombine.high %v2054_v50, %v2054_v50 }
 0x6ba   :  { %4543 = vst.sshfl [vmem:[#allocation3 + $0xc] sm:$0x1 pattern:$0x73625140] %v2046_v33  ;;  %5736 = vmatprep.subr.bf16.mxu1 %v6645_v8  ;;  %5766 = vmatprep.subr.bf16.mxu0 %v6179_v0  ;;  %v2156_v8 = vld [vmem:[%s7161_s10] sm:$0x7] }
 0x6bb   :  { %4544 = vst.sshfl [vmem:[#allocation3 + $0x24] sm:$0x1 pattern:$0x73625140] %v2045_v62  ;;  %2550 = vmatprep.mubr.f32.mxu1 %v6181_v1  ;;  %v2075_v32 = vrot.slane %v2047_v49, %v6559_v7  ;;  %v2077_v53 = vcombine.high %v2061_v47, %v2061_v47  ;;  %v2078_v61 = vcombine.high %v2068_v31, %v2068_v31  ;;  %2090 = vst [vmem:[#allocation3 + $0x14] sm:$0x1] %v2076_v21 }
 0x6bc   :  { %4545 = vst.sshfl [vmem:[#allocation3 + $0x2c] sm:$0x1 pattern:$0x73625140] %v2047_v49  ;;  %5145 = vmatprep.mubr.msk.f32.mxu0 %vm6180_vm0, %v6181_v1  ;;  %5738 = vmatpush1.bf16.msra.mxu1 %v6647_v18  ;;  %v2161_v18 = vrot.slane %v2156_v8, %v6539_v6 }
 0x6bd   :  { %5768 = vmatpush3.bf16.msra.mxu0 %v6744_v38  ;;  %v2079_v52 = vcombine.high %v2075_v32, %v2075_v32  ;;  %2091 = vst [vmem:[#allocation3 + $0x1c] sm:$0x1] %v2078_v61  ;;  %2094 = vst [vmem:[#allocation3 + $0x34] sm:$0x1] %v2077_v53  ;;  %5740 = vmatprep.subr.bf16.mxu1 %v6651_v30  ;;  %v2165_v30 = vrot.slane %v2156_v8, %v6545_v9  ;;  %v2735_v61 = vld [vmem:[#allocation9 + $0x8] sm:$0xff] }
 0x6be   :  { %5769 = vmatprep.subr.bf16.mxu0 %v6179_v0 }
 0x6bf   :  { %2095 = vst [vmem:[#allocation3 + $0x3c] sm:$0x1] %v2079_v52 }
 0x6c0   :  { %5742 = vmatpush1.bf16.msra.mxu1 %v6653_v40  ;;  %v5895_v40 = vadd.f32 %v2161_v18, %v6548_v11  ;;  %v2737_v18 = vld [vmem:[#allocation9 + $0x18] sm:$0xff] }
 0x6c1   :  { %5771 = vmatpush3.bf16.msra.mxu0 %v6748_v45  ;;  %5744 = vmatprep.subr.bf16.mxu1 %v6657_v17 }
 0x6c2   :  { %5772 = vmatprep.subr.bf16.mxu0 %v6179_v0 }
 0x6c4   :  { %5746 = vmatpush1.bf16.msra.mxu1 %v6659_v23 }
 0x6c5   :  { %5774 = vmatpush3.bf16.msra.mxu0 %v6752_v15  ;;  %5748 = vmatprep.subr.bf16.mxu1 %v6663_v24  ;;  %v5897_v24 = vadd.f32 %v2165_v30, %v6552_v13 }
 0x6c6   :  { %5775 = vmatprep.subr.bf16.mxu0 %v6179_v0 }
 0x6c8   :  { %5750 = vmatpush1.bf16.msra.mxu1 %v6665_v36 }
 0x6c9   :  { %5777 = vmatpush3.bf16.msra.mxu0 %v6755_v16  ;;  %5752 = vmatprep.subr.bf16.mxu1 %v6667_v46 }
 0x6ca   :  { %5778 = vmatprep.subr.bf16.mxu0 %v6179_v0 }
 0x6cc   :  { %5754 = vmatpush1.bf16.msra.mxu1 %v6673_v12 }
 0x6cd   :  { %5780 = vmatpush3.bf16.msra.mxu0 %v6670_v3  ;;  %5756 = vmatprep.subr.bf16.mxu1 %v6677_v27 }
 0x6ce   :  { %5781 = vmatprep.subr.bf16.mxu0 %v6179_v0 }
 0x6d0   :  { %5758 = vmatpush1.bf16.msra.mxu1 %v6683_v56 }
 0x6d1   :  { %5783 = vmatpush3.bf16.msra.mxu0 %v6679_v39  ;;  %5760 = vmatprep.subr.bf16.mxu1 %v6687_v5 }
 0x6d2   :  { %5784 = vmatprep.subr.bf16.mxu0 %v6179_v0 }
 0x6d4   :  { %5762 = vmatpush1.bf16.msra.mxu1 %v6693_v25  ;;  %v2169_v25 = vrot.slane %v2156_v8, %v6518_v44  ;;  %v2734_v8 = vld [vmem:[#allocation9] sm:$0xff] }
 0x6d5   :  { %5786 = vmatpush3.bf16.msra.mxu0 %v6689_v19  ;;  %v5789_v30 = vpack.c.bf16 %v2737_v18, %v2734_v8  ;;  %v2779_v8 = vld [vmem:[#allocation9 + $0x168] sm:$0xff] }
 0x6d6   :  { %5819 = vmatprep.subr.bf16.mxu0 %v6179_v0 }
 0x78a   :  { %v2239_v17 = vpop.f32.mrb[10].mxu1 }
 0x78b   :  { %v2310_v23 = vpop.f32.mrb[20].mxu0  ;;  %v5896_v36 = vadd.f32 %v5895_v40, %v2239_v17  ;;  %v2241_v46 = vpop.f32.mrb[11].mxu1  ;;  %v2741_v40 = vld [vmem:[#allocation9 + $0x38] sm:$0xff] }
 0x78c   :  { %v5112_v3 = vpop.f32.mrb[21].mxu0  ;;  %v5898_v27 = vadd.f32 %v5897_v24, %v2241_v46  ;;  %v2311_v26 = vadd.f32 %v2310_v23, %v2169_v25  ;;  %v2740_v23 = vld [vmem:[#allocation9 + $0x30] sm:$0xff]  ;;  %v2743_v24 = vld [vmem:[#allocation9 + $0x48] sm:$0xff] }
 0x78d   :  { %v4546_v12 = vmul.f32 -1.442695, %v5896_v36  ;;  %v2747_v36 = vld [vmem:[#allocation9 + $0x68] sm:$0xff]  ;;  %v2746_v3 = vld [vmem:[#allocation9 + $0x60] sm:$0xff] }
 0x78e   :  { %v4547_v39 = vmul.f32 -1.442695, %v5898_v27  ;;  %v2755_v25 = vld [vmem:[#allocation9 + $0xa8] sm:$0xff] }
 0x78f   :  { %5991 = vpow2.f32 %v4546_v12  ;;  %v2749_v12 = vld [vmem:[#allocation9 + $0x78] sm:$0xff] }
 0x790   :  { %5993 = vpow2.f32 %v4547_v39  ;;  %v5797_v27 = vpack.c.bf16 %v2749_v12, %v2746_v3  ;;  %v2753_v39 = vld [vmem:[#allocation9 + $0x98] sm:$0xff] }
 0x799   :  { %v5992_v56 = vpop.eup %5991 }
 0x79a   :  { %v2318_v5 = vadd.f32 1.0, %v5992_v56  ;;  %v5994_v19 = vpop.eup %5993  ;;  %v2756_v56 = vld [vmem:[#allocation9 + $0xb0] sm:$0xff] }
 0x79b   :  { %v2325_v54 = vadd.f32 1.0, %v5994_v19  ;;  %v2752_v19 = vld [vmem:[#allocation9 + $0x90] sm:$0xff] }
 0x79c   :  { %5995 = vrcp.f32 %v2318_v5  ;;  %v5799_v5 = vpack.c.bf16 %v2756_v56, %v2753_v39 }
 0x79d   :  { %5997 = vrcp.f32 %v2325_v54  ;;  %v5801_v54 = vpack.c.bf16 %v2755_v25, %v2752_v19 }
 0x7a6   :  { %v5996_v51 = vpop.eup %5995 }
 0x7a7   :  { %v2328_v60 = vmul.f32 %v5996_v51, %v2311_v26  ;;  %v5998_v14 = vpop.eup %5997  ;;  %v2759_v26 = vld [vmem:[#allocation9 + $0xc8] sm:$0xff]  ;;  %v2762_v51 = vld [vmem:[#allocation9 + $0xe0] sm:$0xff] }
 0x7a8   :  { %v2331_v29 = vsub.f32 1.0, %v5998_v14  ;;  %v2333_v48 = vmul.f32 %v5998_v14, %v6834_v57  ;;  %v2761_v14 = vld [vmem:[#allocation9 + $0xd8] sm:$0xff] }
 0x7a9   :  { %v2329_v63 = vadd.f32 %v2328_v60, %v6530_v58  ;;  %v2758_v60 = vld [vmem:[#allocation9 + $0xc0] sm:$0xff] }
 0x7ab   :  { %5999 = vtanh.f32 %v2329_v63  ;;  %v5803_v63 = vpack.c.bf16 %v2762_v51, %v2759_v26 }
 0x7b5   :  { %v6000_v34 = vpop.eup %5999 }
 0x7b6   :  { %v2332_v10 = vmul.f32 %v6000_v34, %v2331_v29  ;;  %v2765_v29 = vld [vmem:[#allocation9 + $0xf8] sm:$0xff]  ;;  %v2768_v34 = vld [vmem:[#allocation9 + $0x110] sm:$0xff] }
 0x7b8   :  { %v2334_v35 = vadd.f32 %v2333_v48, %v2332_v10  ;;  %v5805_v48 = vpack.c.bf16 %v2761_v14, %v2758_v60  ;;  %v5807_v10 = vpack.c.bf16 %v2768_v34, %v2765_v29 }
 0x7ba   :  { %v2342_v55 = vmul.f32 %v2340_v41, %v2334_v35  ;;  %v2764_v35 = vld [vmem:[#allocation9 + $0xf0] sm:$0xff]  ;;  %v2767_v41 = vld [vmem:[#allocation9 + $0x108] sm:$0xff] }
 0x7bc   :  { %v2344_v28 = vcombine.high %v2342_v55, %v2342_v55  ;;  %v2351_v22 = vrot.slane %v2342_v55, %v6559_v7  ;;  %v6889_v62 = vadd.f32 %v2415_v59, %v2342_v55  ;;  %v2769_v55 = vld [vmem:[#allocation9 + $0x118] sm:$0xff]  ;;  %v2771_v59 = vld [vmem:[#allocation9 + $0x128] sm:$0xff] }
 0x7be   :  { %v2358_v58 = vrot.slane %v2344_v28, %v6559_v7  ;;  %v2359_v33 = vcombine.high %v2351_v22, %v2351_v22  ;;  %v2367_v50 = vrot.slane %v2351_v22, %v6559_v7  ;;  %4549 = vst.sshfl [vmem:[#allocation3 + $0x5] sm:$0x1 pattern:$0x73625140] %v2351_v22  ;;  %2551 = vmatmul.mubr.f32.vlgmr.msra.gmra.mrb[12].mxu1 %v6889_v62  ;;  %v2774_v28 = vld [vmem:[#allocation9 + $0x140] sm:$0xff] }
 0x7bf   :  { %5146 = vmatmul.mubr.f32.vlgmr.msra.gmra.mrb[22].mxu0 %v6889_v62  ;;  %2863 = vmatprep.mubr.f32.mxu1 %v6181_v1  ;;  %v5835_v22 = vpack.c.bf16 %v2769_v55, %v2766_v20 }
 0x7c0   :  { %5821 = vmatpush3.bf16.msra.mxu0 %v6740_v37  ;;  %v2360_v57 = vcombine.high %v2358_v58, %v2358_v58  ;;  %v2374_v49 = vrot.slane %v2358_v58, %v6559_v7  ;;  %v2381_v47 = vrot.slane %v2359_v33, %v6559_v7  ;;  %v2389_v31 = vcombine.high %v2367_v50, %v2367_v50  ;;  %v2775_v50 = vld [vmem:[#allocation9 + $0x148] sm:$0xff] }
 0x7c1   :  { %4550 = vst.sshfl [vmem:[#allocation3 + $0xd] sm:$0x1 pattern:$0x73625140] %v2359_v33  ;;  %5822 = vmatprep.subr.bf16.mxu0 %v6179_v0  ;;  %5180 = vmatprep.mubr.msk.f32.mxu0 %vm6180_vm0, %v6181_v1  ;;  %v5809_v33 = vpack.c.bf16 %v2767_v41, %v2764_v35  ;;  %v2653_v35 = vpop.permute.xlu0 %2652  ;;  %v2726_v41 = vpop.permute.xlu1 %2725 }
 0x7c2   :  { %4551 = vst.sshfl [vmem:[#allocation3 + $0x25] sm:$0x1 pattern:$0x73625140] %v2358_v58  ;;  %v2388_v21 = vrot.slane %v2360_v57, %v6559_v7  ;;  %v2390_v32 = vcombine.high %v2374_v49, %v2374_v49  ;;  %v2391_v53 = vcombine.high %v2381_v47, %v2381_v47  ;;  %2403 = vst [vmem:[#allocation3 + $0x15] sm:$0x1] %v2389_v31 }
 0x7c3   :  { %4552 = vst.sshfl [vmem:[#allocation3 + $0x2d] sm:$0x1 pattern:$0x73625140] %v2360_v57  ;;  %v2772_v58 = vld [vmem:[#allocation9 + $0x130] sm:$0xff]  ;;  %v5811_v57 = vpack.c.bf16 %v2774_v28, %v2771_v59  ;;  %v2770_v49 = vld [vmem:[#allocation9 + $0x120] sm:$0xff]  ;;  %v2728_v55 = vmul.f32 %v2726_v41, %v6889_v62 }
 0x7c4   :  { %5824 = vmatpush3.bf16.msra.mxu0 %v6744_v38  ;;  %v2392_v37 = vcombine.high %v2388_v21, %v2388_v21  ;;  %2404 = vst [vmem:[#allocation3 + $0x1d] sm:$0x1] %v2391_v53  ;;  %2407 = vst [vmem:[#allocation3 + $0x35] sm:$0x1] %v2390_v32  ;;  %v2738_v38 = vld [vmem:[#allocation9 + $0x20] sm:$0xff]  ;;  %v2773_v47 = vld [vmem:[#allocation9 + $0x138] sm:$0xff]  ;;  %v5838_v31 = vpack.c.bf16 %v2775_v50, %v2772_v58 }
 0x7c5   :  { %5825 = vmatprep.subr.bf16.mxu0 %v6179_v0  ;;  %v5787_v52 = vpack.c.bf16 %v2738_v38, %v2735_v61  ;;  %v2777_v21 = vld [vmem:[#allocation9 + $0x158] sm:$0xff]  ;;  %v2780_v32 = vld [vmem:[#allocation9 + $0x170] sm:$0xff]  ;;  %v2778_v53 = vld [vmem:[#allocation9 + $0x160] sm:$0xff]  ;;  %v5813_v61 = vpack.c.bf16 %v2773_v47, %v2770_v49 }
 0x7c6   :  { %2408 = vst [vmem:[#allocation3 + $0x3d] sm:$0x1] %v2392_v37  ;;  %v2781_v37 = vld [vmem:[#allocation9 + $0x178] sm:$0xff]  ;;  %v5815_v38 = vpack.c.bf16 %v2780_v32, %v2777_v21 }
 0x7c7   :  { %5788 = vmatprep.subr.bf16.mxu1 %v5787_v52  ;;  %v2776_v52 = vld [vmem:[#allocation9 + $0x150] sm:$0xff]  ;;  %v5841_v18 = vpack.c.bf16 %v2781_v37, %v2778_v53  ;;  %v3043_v53 = vld [vmem:[#allocation10] sm:$0xff]  ;;  %v3044_v37 = vld [vmem:[#allocation10 + $0x8] sm:$0xff] }
 0x7c8   :  { %5827 = vmatpush3.bf16.msra.mxu0 %v6748_v45  ;;  %5790 = vmatpush1.bf16.msra.mxu1 %v5789_v30  ;;  %v2744_v45 = vld [vmem:[#allocation9 + $0x50] sm:$0xff]  ;;  %v5817_v30 = vpack.c.bf16 %v2779_v8, %v2776_v52  ;;  %v3046_v52 = vld [vmem:[#allocation10 + $0x18] sm:$0xff] }
 0x7c9   :  { %5828 = vmatprep.subr.bf16.mxu0 %v6179_v0  ;;  %v5791_v17 = vpack.c.bf16 %v2744_v45, %v2741_v40  ;;  %v2469_v40 = vld [vmem:[%s7161_s10] sm:$0x7] }
 0x7ca   :  { %v2474_v45 = vrot.slane %v2469_v40, %v6539_v6  ;;  %v2482_v19 = vrot.slane %v2469_v40, %v6518_v44 }
 0x7cb   :  { %5792 = vmatprep.subr.bf16.mxu1 %v5791_v17  ;;  %v2478_v17 = vrot.slane %v2469_v40, %v6545_v9 }
 0x7cc   :  { %5830 = vmatpush3.bf16.msra.mxu0 %v6752_v15  ;;  %v5793_v15 = vpack.c.bf16 %v2743_v24, %v2740_v23  ;;  %v5899_v23 = vadd.f32 %v2474_v45, %v6548_v11  ;;  %v3049_v45 = vld [vmem:[#allocation10 + $0x30] sm:$0xff] }
 0x7cd   :  { %5831 = vmatprep.subr.bf16.mxu0 %v6179_v0 }
 0x7ce   :  { %5794 = vmatpush1.bf16.msra.mxu1 %v5793_v15 }
 0x7d0   :  { %5833 = vmatpush3.bf16.msra.mxu0 %v6755_v16  ;;  %v2750_v16 = vld [vmem:[#allocation9 + $0x80] sm:$0xff] }
 0x7d1   :  { %5834 = vmatprep.subr.bf16.mxu0 %v6179_v0  ;;  %v5795_v46 = vpack.c.bf16 %v2750_v16, %v2747_v36 }
 0x7d3   :  { %5796 = vmatprep.subr.bf16.mxu1 %v5795_v46 }
 0x7d4   :  { %5798 = vmatpush1.bf16.msra.mxu1 %v5797_v27  ;;  %5836 = vmatpush3.bf16.msra.mxu0 %v5835_v22 }
 0x7d5   :  { %5800 = vmatprep.subr.bf16.mxu1 %v5799_v5  ;;  %5837 = vmatprep.subr.bf16.mxu0 %v6179_v0 }
 0x7d8   :  { %5802 = vmatpush1.bf16.msra.mxu1 %v5801_v54  ;;  %5839 = vmatpush3.bf16.msra.mxu0 %v5838_v31 }
 0x7d9   :  { %5804 = vmatprep.subr.bf16.mxu1 %v5803_v63  ;;  %5840 = vmatprep.subr.bf16.mxu0 %v6179_v0  ;;  %v5901_v0 = vadd.f32 %v2478_v17, %v6552_v13  ;;  %v3050_v17 = vld [vmem:[#allocation10 + $0x38] sm:$0xff] }
 0x7dc   :  { %5806 = vmatpush1.bf16.msra.mxu1 %v5805_v48  ;;  %5842 = vmatpush3.bf16.msra.mxu0 %v5841_v18  ;;  %v3047_v18 = vld [vmem:[#allocation10 + $0x20] sm:$0xff] }
 0x7dd   :  { %5808 = vmatprep.subr.bf16.mxu1 %v5807_v10  ;;  %5227 = vmatprep.subr.mxu0 %v6181_v1 }
 0x7e0   :  { %5810 = vmatpush1.bf16.msra.mxu1 %v5809_v33 }
 0x7e1   :  { %5812 = vmatprep.subr.bf16.mxu1 %v5811_v57 }
 0x7e4   :  { %5814 = vmatpush1.bf16.msra.mxu1 %v5813_v61  ;;  %v5843_v61 = vpack.c.bf16 %v3044_v37, %v3043_v53 }
 0x7e5   :  { %5816 = vmatprep.subr.bf16.mxu1 %v5815_v38  ;;  %v3045_v38 = vld [vmem:[#allocation10 + $0x10] sm:$0xff] }
 0x7e6   :  { %v5847_v8 = vpack.c.bf16 %v3046_v52, %v3045_v38 }
 0x7e8   :  { %5818 = vmatpush1.bf16.msra.mxu1 %v5817_v30  ;;  %v3048_v30 = vld [vmem:[#allocation10 + $0x28] sm:$0xff] }
 0x7e9   :  { %5844 = vmatprep.subr.bf16.mxu1 %v5843_v61  ;;  %v5851_v40 = vpack.c.bf16 %v3048_v30, %v3047_v18 }
 0x891   :  { %v2552_v24 = vpop.f32.mrb[12].mxu1 }
 0x892   :  { %v2623_v15 = vpop.f32.mrb[22].mxu0  ;;  %v5900_v36 = vadd.f32 %v5899_v23, %v2552_v24  ;;  %v2554_v16 = vpop.f32.mrb[13].mxu1  ;;  %v5855_v23 = vpack.c.bf16 %v3050_v17, %v3049_v45  ;;  %v3051_v24 = vld [vmem:[#allocation10 + $0x40] sm:$0xff] }
 0x893   :  { %v5147_v46 = vpop.f32.mrb[23].mxu0  ;;  %v5902_v12 = vadd.f32 %v5901_v0, %v2554_v16  ;;  %v2624_v54 = vadd.f32 %v2623_v15, %v2482_v19  ;;  %v3052_v15 = vld [vmem:[#allocation10 + $0x48] sm:$0xff]  ;;  %v3054_v16 = vld [vmem:[#allocation10 + $0x58] sm:$0xff]  ;;  %v2782_v19 = vld [vmem:[%s7161_s10] sm:$0x7]  ;;  %s6184_s10 = smov [#allocation12]  }
 0x894   :  { %v4553_v3 = vmul.f32 -1.442695, %v5900_v36  ;;  %v5859_v0 = vpack.c.bf16 %v3052_v15, %v3051_v24  ;;  %v3053_v36 = vld [vmem:[#allocation10 + $0x50] sm:$0xff]  ;;  %s4495_s17 = sshll.u32 %s6184_s10, 4  ;;  %s4496_s17 = int_to_ptr.vmem [resolvable:$true] %s4495_s17 }
 0x895   :  { %v4554_v27 = vmul.f32 -1.442695, %v5902_v12  ;;  %v5863_v46 = vpack.c.bf16 %v3054_v16, %v3053_v36  ;;  %v3056_v12 = vld [vmem:[#allocation10 + $0x68] sm:$0xff]  ;;  %s6141_s24 = scalar_lea.vmem %s4496_s17, 1024  ;;  %p6146_p5 = scmp.lt.s32.totalorder %s4496_s17, %s4496_s17 }
 0x896   :  { %6001 = vpow2.f32 %v4553_v3  ;;  %v3055_v3 = vld [vmem:[#allocation10 + $0x60] sm:$0xff]  ;;  %p6142_p4 = scmp.ne.s32.totalorder %s4496_s17, %s6141_s24  ;;  %p6147_p6 = scmp.lt.s32.totalorder %s6141_s24, %s6141_s24 }
 0x897   :  { %6003 = vpow2.f32 %v4554_v27  ;;  %v5867_v27 = vpack.c.bf16 %v3056_v12, %v3055_v3 }
 0x898   :  { %p6148_p7 = por %p6147_p6, %p6146_p5 }
 0x89a   :  { %p6149_p8 = pnand %p6148_p7, %p6142_p4 }
 0x8a0   :  { %v6002_v39 = vpop.eup %6001 }
 0x8a1   :  { %v2631_v56 = vadd.f32 1.0, %v6002_v39  ;;  %v6004_v5 = vpop.eup %6003  ;;  %v3057_v39 = vld [vmem:[#allocation10 + $0x70] sm:$0xff] }
 0x8a2   :  { %v2638_v25 = vadd.f32 1.0, %v6004_v5 }
 0x8a3   :  { %6005 = vrcp.f32 %v2631_v56  ;;  %v3058_v56 = vld [vmem:[#allocation10 + $0x78] sm:$0xff] }
 0x8a4   :  { %6007 = vrcp.f32 %v2638_v25  ;;  %v5871_v5 = vpack.c.bf16 %v3058_v56, %v3057_v39  ;;  %v2787_v25 = vrot.slane %v2782_v19, %v6539_v6  ;;  %v3727_v56 = vand.u32 127, %v284_v42 }
 0x8a6   :  { %vm7018_vm1 = vcmp.lt.s32.totalorder %v3727_v56, %v6515_v43 }
 0x8ad   :  { %v6006_v26 = vpop.eup %6005 }
 0x8ae   :  { %v2641_v51 = vmul.f32 %v6006_v26, %v2624_v54  ;;  %v6008_v63 = vpop.eup %6007  ;;  %v2791_v54 = vrot.slane %v2782_v19, %v6545_v9  ;;  %v5903_v26 = vadd.f32 %v2787_v25, %v6548_v11  ;;  %v2795_v9 = vrot.slane %v2782_v19, %v6518_v44 }
 0x8af   :  { %v2644_v14 = vsub.f32 1.0, %v6008_v63  ;;  %v2646_v34 = vmul.f32 %v6008_v63, %v6889_v62 }
 0x8b0   :  { %v2642_v60 = vadd.f32 %v2641_v51, %v6536_v4  ;;  %v5905_v63 = vadd.f32 %v2791_v54, %v6552_v13 }
 0x8b2   :  { %6009 = vtanh.f32 %v2642_v60 }
 0x8bc   :  { %v6010_v29 = vpop.eup %6009 }
 0x8bd   :  { %v2645_v48 = vmul.f32 %v6010_v29, %v2644_v14 }
 0x8bf   :  { %v2647_v10 = vadd.f32 %v2646_v34, %v2645_v48 }
 0x8c1   :  { %v2655_v20 = vmul.f32 %v2653_v35, %v2647_v10 }
 0x8c3   :  { %v2657_v59 = vcombine.high %v2655_v20, %v2655_v20  ;;  %v2664_v28 = vrot.slane %v2655_v20, %v6559_v7  ;;  %v6926_v22 = vadd.f32 %v2728_v55, %v2655_v20 }
 0x8c5   :  { %v2671_v4 = vrot.slane %v2657_v59, %v6559_v7  ;;  %v2672_v58 = vcombine.high %v2664_v28, %v2664_v28  ;;  %v2680_v33 = vrot.slane %v2664_v28, %v6559_v7  ;;  %4556 = vst.sshfl [vmem:[#allocation3 + $0x6] sm:$0x1 pattern:$0x73625140] %v2664_v28  ;;  %2864 = vmatmul.mubr.f32.vlgmr.msra.gmra.mrb[14].mxu1 %v6926_v22 }
 0x8c6   :  { %5181 = vmatmul.mubr.f32.vlgmr.msra.gmra.mrb[24].mxu0 %v6926_v22  ;;  %5846 = vmatpush3.bf16.msra.mxu1 %v5843_v61 }
 0x8c7   :  { %5229 = vmatprep.mubr.msk.f32.mxu0 %vm6180_vm0, %v6181_v1  ;;  %v2673_v50 = vcombine.high %v2671_v4, %v2671_v4  ;;  %v2687_v62 = vrot.slane %v2671_v4, %v6559_v7  ;;  %v2694_v57 = vrot.slane %v2672_v58, %v6559_v7  ;;  %v2702_v49 = vcombine.high %v2680_v33, %v2680_v33 }
 0x8c8   :  { %4557 = vst.sshfl [vmem:[#allocation3 + $0xe] sm:$0x1 pattern:$0x73625140] %v2672_v58  ;;  %5848 = vmatprep.subr.bf16.mxu1 %v5847_v8 }
 0x8c9   :  { %4558 = vst.sshfl [vmem:[#allocation3 + $0x26] sm:$0x1 pattern:$0x73625140] %v2671_v4  ;;  %v2701_v47 = vrot.slane %v2673_v50, %v6559_v7  ;;  %v2703_v31 = vcombine.high %v2687_v62, %v2687_v62  ;;  %v2704_v21 = vcombine.high %v2694_v57, %v2694_v57  ;;  %2716 = vst [vmem:[#allocation3 + $0x16] sm:$0x1] %v2702_v49  ;;  %v2966_v49 = vpop.permute.xlu0 %2965 }
 0x8ca   :  { %4559 = vst.sshfl [vmem:[#allocation3 + $0x2e] sm:$0x1 pattern:$0x73625140] %v2673_v50  ;;  %5850 = vmatpush3.bf16.msra.mxu1 %v5847_v8 }
 0x8cb   :  { %v2705_v32 = vcombine.high %v2701_v47, %v2701_v47  ;;  %2717 = vst [vmem:[#allocation3 + $0x1e] sm:$0x1] %v2704_v21  ;;  %2720 = vst [vmem:[#allocation3 + $0x36] sm:$0x1] %v2703_v31  ;;  %5852 = vmatprep.subr.bf16.mxu1 %v5851_v40 }
 0x8cd   :  { %2721 = vst [vmem:[#allocation3 + $0x3e] sm:$0x1] %v2705_v32 }
 0x8ce   :  { %5854 = vmatpush3.bf16.msra.mxu1 %v5851_v40 }
 0x8cf   :  { %5856 = vmatprep.subr.bf16.mxu1 %v5855_v23 }
 0x8d2   :  { %5858 = vmatpush3.bf16.msra.mxu1 %v5855_v23 }
 0x8d3   :  { %5860 = vmatprep.subr.bf16.mxu1 %v5859_v0 }
 0x8d6   :  { %5862 = vmatpush3.bf16.msra.mxu1 %v5859_v0 }
 0x8d7   :  { %5864 = vmatprep.subr.bf16.mxu1 %v5863_v46 }
 0x8da   :  { %5866 = vmatpush3.bf16.msra.mxu1 %v5863_v46 }
 0x8db   :  { %5868 = vmatprep.subr.bf16.mxu1 %v5867_v27 }
 0x8de   :  { %5870 = vmatpush3.bf16.msra.mxu1 %v5867_v27 }
 0x8df   :  { %5872 = vmatprep.subr.bf16.mxu1 %v5871_v5 }
 0x8e2   :  { %5874 = vmatpush3.bf16.msra.mxu1 %v5871_v5 }
 0x8e3   :  { %5247 = vmatprep.subr.mxu1 %v6181_v1 }
 0x998   :  { %v2865_v51 = vpop.f32.mrb[14].mxu1 }
 0x999   :  { %v2936_v60 = vpop.f32.mrb[24].mxu0  ;;  %v5904_v14 = vadd.f32 %v5903_v26, %v2865_v51  ;;  %v2867_v29 = vpop.f32.mrb[15].mxu1 }
 0x99a   :  { %v5182_v34 = vpop.f32.mrb[25].mxu0  ;;  %v5906_v10 = vadd.f32 %v5905_v63, %v2867_v29  ;;  %v2937_v11 = vadd.f32 %v2936_v60, %v2795_v9 }
 0x99b   :  { %v4560_v48 = vmul.f32 -1.442695, %v5904_v14 }
 0x99c   :  { %v4561_v35 = vmul.f32 -1.442695, %v5906_v10 }
 0x99d   :  { %6011 = vpow2.f32 %v4560_v48 }
 0x99e   :  { %6013 = vpow2.f32 %v4561_v35 }
 0x9a7   :  { %v6012_v41 = vpop.eup %6011 }
 0x9a8   :  { %v2944_v20 = vadd.f32 1.0, %v6012_v41  ;;  %v6014_v6 = vpop.eup %6013 }
 0x9a9   :  { %v2951_v55 = vadd.f32 1.0, %v6014_v6 }
 0x9aa   :  { %6015 = vrcp.f32 %v2944_v20 }
 0x9ab   :  { %6017 = vrcp.f32 %v2951_v55 }
 0x9b4   :  { %v6016_v59 = vpop.eup %6015 }
 0x9b5   :  { %v2954_v28 = vmul.f32 %v6016_v59, %v2937_v11  ;;  %v6018_v4 = vpop.eup %6017 }
 0x9b6   :  { %v2957_v58 = vsub.f32 1.0, %v6018_v4  ;;  %v2959_v62 = vmul.f32 %v6018_v4, %v6926_v22 }
 0x9b7   :  { %v2955_v13 = vadd.f32 %v2954_v28, %v6534_v2 }
 0x9b9   :  { %6019 = vtanh.f32 %v2955_v13 }
 0x9c3   :  { %v6020_v33 = vpop.eup %6019 }
 0x9c4   :  { %v2958_v50 = vmul.f32 %v6020_v33, %v2957_v58 }
 0x9c6   :  { %v2960_v57 = vadd.f32 %v2959_v62, %v2958_v50 }
 0x9c8   :  { %v2968_v47 = vmul.f32 %v2966_v49, %v2960_v57 }
 0x9ca   :  { %v2970_v31 = vcombine.high %v2968_v47, %v2968_v47  ;;  %v2977_v44 = vrot.slane %v2968_v47, %v6559_v7 }
 0x9cc   :  { %v2984_v21 = vrot.slane %v2970_v31, %v6559_v7  ;;  %v2985_v32 = vcombine.high %v2977_v44, %v2977_v44  ;;  %v2993_v53 = vrot.slane %v2977_v44, %v6559_v7  ;;  %4563 = vst.sshfl [vmem:[#allocation3 + $0x7] sm:$0x1 pattern:$0x73625140] %v2977_v44 }
 0x9ce   :  { %v2986_v2 = vcombine.high %v2984_v21, %v2984_v21  ;;  %v3000_v37 = vrot.slane %v2984_v21, %v6559_v7  ;;  %v3007_v61 = vrot.slane %v2985_v32, %v6559_v7  ;;  %v3015_v38 = vcombine.high %v2993_v53, %v2993_v53  ;;  %4564 = vst.sshfl [vmem:[#allocation3 + $0xf] sm:$0x1 pattern:$0x73625140] %v2985_v32 }
 0x9cf   :  { %4565 = vst.sshfl [vmem:[#allocation3 + $0x27] sm:$0x1 pattern:$0x73625140] %v2984_v21 }
 0x9d0   :  { %v3014_v22 = vrot.slane %v2986_v2, %v6559_v7  ;;  %v3016_v52 = vcombine.high %v3000_v37, %v3000_v37  ;;  %v3017_v8 = vcombine.high %v3007_v61, %v3007_v61  ;;  %3029 = vst [vmem:[#allocation3 + $0x17] sm:$0x1] %v3015_v38  ;;  %4566 = vst.sshfl [vmem:[#allocation3 + $0x2f] sm:$0x1 pattern:$0x73625140] %v2986_v2 }
 0x9d2   :  { %v3018_v18 = vcombine.high %v3014_v22, %v3014_v22  ;;  %3030 = vst [vmem:[#allocation3 + $0x1f] sm:$0x1] %v3017_v8  ;;  %3033 = vst [vmem:[#allocation3 + $0x37] sm:$0x1] %v3016_v52 }
 0x9d3   :  { %v6954_v30 = vld [vmem:[#allocation3] sm:$0xff] }
 0x9d4   :  { %3034 = vst [vmem:[#allocation3 + $0x3f] sm:$0x1] %v3018_v18  ;;  %5215 = vmatprep.mubr.f32.mxu1 %v6954_v30  ;;  %5228 = vmatpush3.xpose.msra.mxu0 %v6954_v30 }
 0x9d5   :  { %v6958_v40 = vld [vmem:[#allocation3 + $0x8] sm:$0xff]  ;;  %5232 = vmatprep.subr.mxu0 %v6181_v1 }
 0x9d6   :  { %v6960_v45 = vld [vmem:[#allocation3 + $0x20] sm:$0xff]  ;;  %5216 = vmatmul.mubr.f32.vlgmr.msra.gmra.mrb[16].mxu1 %v6958_v40 }
 0x9d7   :  { %5248 = vmatpush3.xpose.msra.mxu1 %v6960_v45  ;;  %v6965_v7 = vld [vmem:[#allocation3 + $0x10] sm:$0xff]  ;;  %v6973_v23 = vld [vmem:[#allocation3 + $0x28] sm:$0xff] }
 0x9d8   :  { %5218 = vmatprep.mubr.f32.mxu1 %v6965_v7  ;;  %5257 = vmatprep.subr.mxu1 %v6181_v1 }
 0x9d9   :  { %v6969_v17 = vld [vmem:[#allocation3 + $0x18] sm:$0xff]  ;;  %v6976_v24 = vld [vmem:[#allocation3 + $0x30] sm:$0xff] }
 0x9da   :  { %5219 = vmatmul.mubr.f32.gmra.mrb[18].mxu1 %v6969_v17 }
 0x9db   :  { %5221 = vmatprep.mubr.f32.mxu1 %v6960_v45  ;;  %v6979_v15 = vld [vmem:[#allocation3 + $0x38] sm:$0xff] }
 0x9de   :  { %5222 = vmatmul.mubr.f32.gmra.mrb[20].mxu1 %v6973_v23 }
 0x9df   :  { %5224 = vmatprep.mubr.f32.mxu1 %v6976_v24 }
 0x9e2   :  { %5225 = vmatmul.mubr.f32.gmra.mrb[22].mxu1 %v6979_v15 }
 0x9e3   :  { %5249 = vmatprep.mubr.msk.f32.mxu1 %vm6180_vm0, %v6181_v1 }
 0xaa9   :  { %v5217_v0 = vpop.f32.mrb[16].mxu1 }
 0xaaa   :  { %v3125_v36 = vpop.f32.mrb[17].mxu1 }
 0xaab   :  { %5230 = vmatmul.mubr.f32.vlgmr.msra.gmra.mrb[26].mxu0 %v3125_v36 }
 0xaac   :  { %5233 = vmatpush3.xpose.msra.mxu0 %v6958_v40  ;;  %5234 = vmatprep.mubr.msk.f32.mxu0 %vm6180_vm0, %v6181_v1 }
 0xaad   :  { %v5220_v16 = vpop.f32.mrb[18].mxu1  ;;  %5237 = vmatprep.subr.mxu0 %v6181_v1 }
 0xaae   :  { %v3135_v46 = vpop.f32.mrb[19].mxu1 }
 0xaaf   :  { %5235 = vmatmul.mubr.f32.vlgmr.msra.gmra.mrb[28].mxu0 %v5217_v0 }
 0xab0   :  { %5238 = vmatpush3.xpose.msra.mxu0 %v6965_v7  ;;  %5239 = vmatprep.mubr.msk.f32.mxu0 %vm6180_vm0, %v6181_v1 }
 0xab1   :  { %v5223_v3 = vpop.f32.mrb[20].mxu1  ;;  %5242 = vmatprep.subr.mxu0 %v6181_v1 }
 0xab2   :  { %v3145_v12 = vpop.f32.mrb[21].mxu1 }
 0xab3   :  { %5240 = vmatmul.mubr.f32.vlgmr.msra.gmra.mrb[30].mxu0 %v3135_v46  ;;  %5250 = vmatmul.mubr.f32.vlgmr.msra.gmra.mrb[24].mxu1 %v3145_v12 }
 0xab4   :  { %5243 = vmatpush3.xpose.msra.mxu0 %v6969_v17  ;;  %5258 = vmatpush3.xpose.msra.mxu1 %v6976_v24 }
 0xab5   :  { %v5226_v27 = vpop.f32.mrb[22].mxu1  ;;  %5244 = vmatprep.mubr.msk.f32.mxu0 %vm6180_vm0, %v6181_v1  ;;  %5252 = vmatprep.subr.mxu0 %v6181_v1 }
 0xab6   :  { %v3155_v39 = vpop.f32.mrb[23].mxu1  ;;  %5259 = vmatprep.mubr.msk.f32.mxu1 %vm6180_vm0, %v6181_v1  ;;  %5267 = vmatprep.subr.mxu1 %v6181_v1 }
 0xab7   :  { %5245 = vmatmul.mubr.f32.vlgmr.msra.gmra.mrb[32].mxu0 %v5220_v16  ;;  %5260 = vmatmul.mubr.f32.vlgmr.msra.gmra.mrb[26].mxu1 %v3155_v39 }
 0xab8   :  { %5253 = vmatpush3.xpose.msra.mxu0 %v6973_v23  ;;  %5268 = vmatpush3.msra.mxu1 %v6954_v30 }
 0xab9   :  { %5254 = vmatprep.mubr.msk.f32.mxu0 %vm6180_vm0, %v6181_v1  ;;  %5262 = vmatprep.subr.mxu0 %v6181_v1 }
 0xaba   :  { %5269 = vmatprep.mubr.msk.f32.mxu1 %vm6180_vm0, %v6181_v1  ;;  %5277 = vmatprep.subr.mxu1 %v6181_v1 }
 0xabb   :  { %5255 = vmatmul.mubr.f32.vlgmr.msra.gmra.mrb[34].mxu0 %v5223_v3 }
 0xabc   :  { %5263 = vmatpush3.xpose.msra.mxu0 %v6979_v15  ;;  %5264 = vmatprep.mubr.msk.f32.mxu0 %vm6180_vm0, %v6181_v1 }
 0xabd   :  { %5272 = vmatprep.subr.mxu0 %v6181_v1 }
 0xabf   :  { %5265 = vmatmul.mubr.f32.vlgmr.msra.gmra.mrb[36].mxu0 %v5226_v27 }
 0xac0   :  { %5273 = vmatpush3.msra.mxu0 %v6958_v40  ;;  %5274 = vmatprep.mubr.msk.f32.mxu0 %vm6180_vm0, %v6181_v1 }
 0xac1   :  { %5282 = vmatprep.subr.mxu0 %v6181_v1 }
 0xb7e   :  { %v3230_v19 = vpop.f32.mrb[26].mxu0 }
 0xb7f   :  { %v3729_v25 = vsel %vm7018_vm1, %v3230_v19, -1e+30  ;;  %v5231_v54 = vpop.f32.mrb[27].mxu0 }
 0xb80   :  { %v3738_v26 = vsel %vm3737_vm2, %v3729_v25, -inf }
 0xb81   :  { %3739 = vmax.xlane.f32.xlu1 %v3738_v26 }
 0xb82   :  { %v3300_v51 = vpop.f32.mrb[28].mxu0 }
 0xb83   :  { %v3730_v60 = vsel %vm7018_vm1, %v3300_v51, -1e+30  ;;  %v5236_v63 = vpop.f32.mrb[29].mxu0 }
 0xb84   :  { %v3741_v42 = vsel %vm3737_vm2, %v3730_v60, -inf }
 0xb85   :  { %3742 = vmax.xlane.f32.xlu0 %v3741_v42 }
 0xb86   :  { %v3370_v43 = vpop.f32.mrb[30].mxu0  ;;  %v3510_v14 = vpop.f32.mrb[24].mxu1 }
 0xb87   :  { %v3731_v29 = vsel %vm7018_vm1, %v3370_v43, -1e+30  ;;  %v5241_v34 = vpop.f32.mrb[31].mxu0  ;;  %v5251_v48 = vpop.f32.mrb[25].mxu1  ;;  %v3733_v35 = vsel %vm7018_vm1, %v3510_v14, -1e+30 }
 0xb88   :  { %v3744_v10 = vsel %vm3737_vm2, %v3731_v29, -inf  ;;  %v3750_v59 = vsel %vm3737_vm2, %v3733_v35, -inf }
 0xb89   :  { %3745 = vmax.xlane.f32.xlu0 %v3744_v10 }
 0xb8a   :  { %v3440_v41 = vpop.f32.mrb[32].mxu0  ;;  %v3650_v20 = vpop.f32.mrb[26].mxu1 }
 0xb8b   :  { %v3732_v6 = vsel %vm7018_vm1, %v3440_v41, -1e+30  ;;  %v5246_v9 = vpop.f32.mrb[33].mxu0  ;;  %v5261_v55 = vpop.f32.mrb[27].mxu1  ;;  %v3735_v28 = vsel %vm7018_vm1, %v3650_v20, -1e+30 }
 0xb8c   :  { %v3747_v11 = vsel %vm3737_vm2, %v3732_v6, -inf  ;;  %v3756_v50 = vsel %vm3737_vm2, %v3735_v28, -inf }
 0xb8d   :  { %3748 = vmax.xlane.f32.xlu1 %v3747_v11  ;;  %3751 = vmax.xlane.f32.xlu0 %v3750_v59 }
 0xb8e   :  { %v3580_v13 = vpop.f32.mrb[34].mxu0 }
 0xb8f   :  { %v3734_v4 = vsel %vm7018_vm1, %v3580_v13, -1e+30  ;;  %v5256_v58 = vpop.f32.mrb[35].mxu0 }
 0xb90   :  { %v3753_v33 = vsel %vm3737_vm2, %v3734_v4, -inf }
 0xb91   :  { %3754 = vmax.xlane.f32.xlu1 %v3753_v33  ;;  %3757 = vmax.xlane.f32.xlu0 %v3756_v50 }
 0xb92   :  { %v3720_v62 = vpop.f32.mrb[36].mxu0 }
 0xb93   :  { %v3736_v57 = vsel %vm7018_vm1, %v3720_v62, -1e+30  ;;  %v5266_v49 = vpop.f32.mrb[37].mxu0 }
 0xb94   :  { %v3759_v47 = vsel %vm3737_vm2, %v3736_v57, -inf }
 0xb95   :  { %3760 = vmax.xlane.f32.xlu1 %v3759_v47 }
 0xc0e   :  { %v3740_v31 = vpop.xlane.xlu1 %3739 }
 0xc0f   :  { %v3762_v44 = vsub.f32 %v3729_v25, %v3740_v31 }
 0xc11   :  { %v3770_v21 = vmul.f32 1.442695, %v3762_v44 }
 0xc12   :  { %v3743_v32 = vpop.xlane.xlu0 %3742 }
 0xc13   :  { %6021 = vpow2.f32 %v3770_v21  ;;  %v3763_v53 = vsub.f32 %v3730_v60, %v3743_v32 }
 0xc15   :  { %v3772_v2 = vmul.f32 1.442695, %v3763_v53 }
 0xc16   :  { %v3746_v37 = vpop.xlane.xlu0 %3745 }
 0xc17   :  { %6023 = vpow2.f32 %v3772_v2  ;;  %v3764_v61 = vsub.f32 %v3731_v29, %v3746_v37 }
 0xc19   :  { %v3774_v38 = vmul.f32 1.442695, %v3764_v61 }
 0xc1a   :  { %v3749_v22 = vpop.xlane.xlu1 %3748  ;;  %v3752_v52 = vpop.xlane.xlu0 %3751 }
 0xc1b   :  { %6025 = vpow2.f32 %v3774_v38  ;;  %v3765_v8 = vsub.f32 %v3732_v6, %v3749_v22  ;;  %v3766_v18 = vsub.f32 %v3733_v35, %v3752_v52 }
 0xc1d   :  { %v6022_v0 = vpop.eup %6021  ;;  %v3776_v36 = vmul.f32 1.442695, %v3765_v8  ;;  %v3778_v16 = vmul.f32 1.442695, %v3766_v18 }
 0xc1e   :  { %v3755_v46 = vpop.xlane.xlu1 %3754  ;;  %v3758_v3 = vpop.xlane.xlu0 %3757  ;;  %v3786_v12 = vsel %vm7018_vm1, %v6022_v0, 0.0 }
 0xc1f   :  { %6027 = vpow2.f32 %v3776_v36  ;;  %v3767_v27 = vsub.f32 %v3734_v4, %v3755_v46  ;;  %v3768_v39 = vsub.f32 %v3735_v28, %v3758_v3  ;;  %v3794_v56 = vsel %vm3737_vm2, %v3786_v12, 0.0 }
 0xc20   :  { %6029 = vpow2.f32 %v3778_v16  ;;  %3795 = vadd.xlane.f32.xlu0 %v3794_v56 }
 0xc21   :  { %v6024_v19 = vpop.eup %6023  ;;  %v3780_v25 = vmul.f32 1.442695, %v3767_v27  ;;  %v3782_v54 = vmul.f32 1.442695, %v3768_v39 }
 0xc22   :  { %v3761_v26 = vpop.xlane.xlu1 %3760  ;;  %v7051_v51 = vsel %vm7018_vm1, %v6024_v19, 0.0 }
 0xc23   :  { %6031 = vpow2.f32 %v3780_v25  ;;  %v3769_v60 = vsub.f32 %v3736_v57, %v3761_v26  ;;  %v3797_v63 = vsel %vm3737_vm2, %v7051_v51, 0.0 }
 0xc24   :  { %6033 = vpow2.f32 %v3782_v54  ;;  %3798 = vadd.xlane.f32.xlu1 %v3797_v63 }
 0xc25   :  { %v6026_v42 = vpop.eup %6025  ;;  %v3784_v43 = vmul.f32 1.442695, %v3769_v60 }
 0xc26   :  { %v7057_v14 = vsel %vm7018_vm1, %v6026_v42, 0.0 }
 0xc27   :  { %6035 = vpow2.f32 %v3784_v43  ;;  %v3800_v29 = vsel %vm3737_vm2, %v7057_v14, 0.0 }
 0xc28   :  { %3801 = vadd.xlane.f32.xlu0 %v3800_v29 }
 0xc29   :  { %v6028_v34 = vpop.eup %6027 }
 0xc2a   :  { %v6030_v48 = vpop.eup %6029  ;;  %v7063_v10 = vsel %vm7018_vm1, %v6028_v34, 0.0 }
 0xc2b   :  { %v3803_v35 = vsel %vm3737_vm2, %v7063_v10, 0.0  ;;  %v7069_v41 = vsel %vm7018_vm1, %v6030_v48, 0.0 }
 0xc2c   :  { %3804 = vadd.xlane.f32.xlu1 %v3803_v35  ;;  %v3806_v20 = vsel %vm3737_vm2, %v7069_v41, 0.0 }
 0xc2d   :  { %v6032_v6 = vpop.eup %6031  ;;  %3807 = vadd.xlane.f32.xlu0 %v3806_v20 }
 0xc2e   :  { %v6034_v9 = vpop.eup %6033  ;;  %v7075_v55 = vsel %vm7018_vm1, %v6032_v6, 0.0 }
 0xc2f   :  { %v3809_v11 = vsel %vm3737_vm2, %v7075_v55, 0.0  ;;  %v7081_v59 = vsel %vm7018_vm1, %v6034_v9, 0.0 }
 0xc30   :  { %3810 = vadd.xlane.f32.xlu1 %v3809_v11  ;;  %v3812_v28 = vsel %vm3737_vm2, %v7081_v59, 0.0 }
 0xc31   :  { %v6036_v13 = vpop.eup %6035  ;;  %3813 = vadd.xlane.f32.xlu0 %v3812_v28 }
 0xc32   :  { %v7087_v4 = vsel %vm7018_vm1, %v6036_v13, 0.0 }
 0xc33   :  { %v3815_v58 = vsel %vm3737_vm2, %v7087_v4, 0.0 }
 0xc34   :  { %3816 = vadd.xlane.f32.xlu1 %v3815_v58 }
 0xcad   :  { %v3796_v33 = vpop.xlane.xlu0 %3795 }
 0xcae   :  { %vm3818_vm3 = vcmp.gt.f32.partialorder %v3796_v33, 0.0 }
 0xcaf   :  { %v3826_v50 = vsel %vm3818_vm3, %v3796_v33, 1.0 }
 0xcb0   :  { %6037 = vrcp.f32 %v3826_v50 }
 0xcb1   :  { %v3799_v62 = vpop.xlane.xlu1 %3798 }
 0xcb2   :  { %vm3819_vm4 = vcmp.gt.f32.partialorder %v3799_v62, 0.0 }
 0xcb3   :  { %v3827_v57 = vsel %vm3819_vm4, %v3799_v62, 1.0 }
 0xcb4   :  { %6039 = vrcp.f32 %v3827_v57 }
 0xcb5   :  { %v3802_v49 = vpop.xlane.xlu0 %3801 }
 0xcb6   :  { %vm3820_vm5 = vcmp.gt.f32.partialorder %v3802_v49, 0.0 }
 0xcb7   :  { %v3828_v47 = vsel %vm3820_vm5, %v3802_v49, 1.0 }
 0xcb8   :  { %6041 = vrcp.f32 %v3828_v47 }
 0xcb9   :  { %v3805_v31 = vpop.xlane.xlu1 %3804 }
 0xcba   :  { %v6038_v5 = vpop.eup %6037  ;;  %vm3821_vm6 = vcmp.gt.f32.partialorder %v3805_v31, 0.0  ;;  %v3808_v44 = vpop.xlane.xlu0 %3807 }
 0xcbb   :  { %v3829_v21 = vsel %vm3821_vm6, %v3805_v31, 1.0  ;;  %vm3822_vm7 = vcmp.gt.f32.partialorder %v3808_v44, 0.0  ;;  %v3842_v32 = vmul.f32 %v6038_v5, %v3786_v12 }
 0xcbc   :  { %6043 = vrcp.f32 %v3829_v21  ;;  %v3830_v53 = vsel %vm3822_vm7, %v3808_v44, 1.0 }
 0xcbd   :  { %6045 = vrcp.f32 %v3830_v53  ;;  %v3811_v2 = vpop.xlane.xlu1 %3810  ;;  %5270 = vmatmul.mubr.msk.f32.vlgmr.msra.gmra.mrb[28].mxu1 %vm3737_vm2, %v3842_v32 }
 0xcbe   :  { %v6040_v37 = vpop.eup %6039  ;;  %vm3823_vm8 = vcmp.gt.f32.partialorder %v3811_v2, 0.0  ;;  %5278 = vmatpush3.msra.mxu1 %v6965_v7  ;;  %v3814_v61 = vpop.xlane.xlu0 %3813  ;;  %5279 = vmatprep.mubr.msk.f32.mxu1 %vm6180_vm0, %v6181_v1 }
 0xcbf   :  { %v3831_v38 = vsel %vm3823_vm8, %v3811_v2, 1.0  ;;  %vm3824_vm9 = vcmp.gt.f32.partialorder %v3814_v61, 0.0  ;;  %v3843_v22 = vmul.f32 %v6040_v37, %v7051_v51  ;;  %5287 = vmatprep.subr.mxu1 %v6181_v1 }
 0xcc0   :  { %6047 = vrcp.f32 %v3831_v38  ;;  %v3832_v52 = vsel %vm3824_vm9, %v3814_v61, 1.0 }
 0xcc1   :  { %6049 = vrcp.f32 %v3832_v52  ;;  %5275 = vmatmul.mubr.msk.f32.vlgmr.msra.gmra.mrb[38].mxu0 %vm3737_vm2, %v3843_v22  ;;  %v3817_v8 = vpop.xlane.xlu1 %3816 }
 0xcc2   :  { %v6042_v18 = vpop.eup %6041  ;;  %5283 = vmatpush3.msra.mxu0 %v6969_v17  ;;  %vm3825_vm10 = vcmp.gt.f32.partialorder %v3817_v8, 0.0  ;;  %5284 = vmatprep.mubr.msk.f32.mxu0 %vm6180_vm0, %v6181_v1 }
 0xcc3   :  { %v3833_v0 = vsel %vm3825_vm10, %v3817_v8, 1.0  ;;  %v3844_v36 = vmul.f32 %v6042_v18, %v7057_v14  ;;  %5292 = vmatprep.subr.mxu0 %v6181_v1 }
 0xcc4   :  { %6051 = vrcp.f32 %v3833_v0 }
 0xcc5   :  { %5280 = vmatmul.mubr.msk.f32.vlgmr.msra.gmra.mrb[30].mxu1 %vm3737_vm2, %v3844_v36 }
 0xcc6   :  { %v6044_v16 = vpop.eup %6043  ;;  %5288 = vmatpush3.msra.mxu1 %v6960_v45  ;;  %5289 = vmatprep.mubr.msk.f32.mxu1 %vm6180_vm0, %v6181_v1 }
 0xcc7   :  { %v6046_v46 = vpop.eup %6045  ;;  %5297 = vmatprep.subr.mxu1 %v6181_v1  ;;  %v3845_v3 = vmul.f32 %v6044_v16, %v7063_v10 }
 0xcc8   :  { %v3846_v12 = vmul.f32 %v6046_v46, %v7069_v41 }
 0xcc9   :  { %5285 = vmatmul.mubr.msk.f32.vlgmr.msra.gmra.mrb[40].mxu0 %vm3737_vm2, %v3845_v3 }
 0xcca   :  { %v6048_v27 = vpop.eup %6047  ;;  %5290 = vmatmul.mubr.msk.f32.vlgmr.msra.gmra.mrb[32].mxu1 %vm3737_vm2, %v3846_v12  ;;  %5293 = vmatpush3.msra.mxu0 %v6973_v23 }
 0xccb   :  { %v6050_v39 = vpop.eup %6049  ;;  %5298 = vmatpush3.msra.mxu1 %v6976_v24  ;;  %5294 = vmatprep.mubr.msk.f32.mxu0 %vm6180_vm0, %v6181_v1  ;;  %v3847_v56 = vmul.f32 %v6048_v27, %v7075_v55 }
 0xccc   :  { %v3848_v19 = vmul.f32 %v6050_v39, %v7081_v59  ;;  %5299 = vmatprep.mubr.msk.f32.mxu1 %vm6180_vm0, %v6181_v1  ;;  %5302 = vmatprep.subr.mxu0 %v6181_v1 }
 0xccd   :  { %5295 = vmatmul.mubr.msk.f32.vlgmr.msra.gmra.mrb[42].mxu0 %vm3737_vm2, %v3847_v56 }
 0xcce   :  { %v6052_v25 = vpop.eup %6051  ;;  %5300 = vmatmul.mubr.msk.f32.vlgmr.msra.gmra.mrb[34].mxu1 %vm3737_vm2, %v3848_v19  ;;  %5303 = vmatpush3.msra.mxu0 %v6979_v15 }
 0xccf   :  { %v3849_v54 = vmul.f32 %v6052_v25, %v7087_v4  ;;  %5304 = vmatprep.mubr.msk.f32.mxu0 %vm6180_vm0, %v6181_v1 }
 0xcd1   :  { %5305 = vmatmul.mubr.msk.f32.vlgmr.msra.gmra.mrb[44].mxu0 %vm3737_vm2, %v3849_v54 }
 0xd90   :  { %v3919_v26 = vpop.f32.mrb[28].mxu1 }
 0xd91   :  { %v4583_v51 = vpack.c.bf16 %v3919_v26, %v6954_v30  ;;  %v5271_v60 = vpop.f32.mrb[29].mxu1 }
 0xd93   :  { %4482 = vst [vmem:[#allocation12] sm:$0xff] %v4583_v51 }
 0xd94   :  { %v3992_v63 = vpop.f32.mrb[38].mxu0 }
 0xd95   :  { %v4584_v42 = vpack.c.bf16 %v3992_v63, %v6958_v40  ;;  %v5276_v43 = vpop.f32.mrb[39].mxu0 }
 0xd97   :  { %4483 = vst [vmem:[#allocation12 + $0x8] sm:$0xff] %v4584_v42 }
 0xd98   :  { %v4065_v14 = vpop.f32.mrb[30].mxu1 }
 0xd99   :  { %v4585_v29 = vpack.c.bf16 %v4065_v14, %v6965_v7  ;;  %v5281_v34 = vpop.f32.mrb[31].mxu1 }
 0xd9b   :  { %4484 = vst [vmem:[#allocation12 + $0x10] sm:$0xff] %v4585_v29 }
 0xd9c   :  { %v4138_v48 = vpop.f32.mrb[40].mxu0 }
 0xd9d   :  { %v4586_v1 = vpack.c.bf16 %v4138_v48, %v6969_v17  ;;  %v4211_v10 = vpop.f32.mrb[32].mxu1  ;;  %v5286_v35 = vpop.f32.mrb[41].mxu0 }
 0xd9e   :  { %v4587_v41 = vpack.c.bf16 %v4211_v10, %v6960_v45  ;;  %v5291_v30 = vpop.f32.mrb[33].mxu1 }
 0xd9f   :  { %4485 = vst [vmem:[#allocation12 + $0x18] sm:$0xff] %v4586_v1 }
 0xda0   :  { %4486 = vst [vmem:[#allocation12 + $0x20] sm:$0xff] %v4587_v41  ;;  %v4284_v20 = vpop.f32.mrb[42].mxu0 }
 0xda1   :  { %v4588_v40 = vpack.c.bf16 %v4284_v20, %v6973_v23  ;;  %v4357_v6 = vpop.f32.mrb[34].mxu1  ;;  %v5296_v9 = vpop.f32.mrb[43].mxu0 }
 0xda2   :  { %v4589_v55 = vpack.c.bf16 %v4357_v6, %v6976_v24  ;;  %v5301_v7 = vpop.f32.mrb[35].mxu1 }
 0xda3   :  { %4487 = vst [vmem:[#allocation12 + $0x28] sm:$0xff] %v4588_v40 }
 0xda4   :  { %4488 = vst [vmem:[#allocation12 + $0x30] sm:$0xff] %v4589_v55  ;;  %v4430_v17 = vpop.f32.mrb[44].mxu0 }
 0xda5   :  { %v4590_v11 = vpack.c.bf16 %v4430_v17, %v6979_v15  ;;  %v5306_v59 = vpop.f32.mrb[45].mxu0 }
 0xda7   :  { %4489 = vst [vmem:[#allocation12 + $0x38] sm:$0xff] %v4590_v11 }
 0xda8   :  { %6152 = shalt.err (!%p6149_p8)
}
 0xda9   :  { %s6153_s3 = scalar_lea.hbm %s7163_s12, 1024 }
 0xdaa   :  { %p6154_p9 = scmp.ne.s32.totalorder %s7163_s12, %s6153_s3  ;;  %p6157_p10 = scmp.lt.u32.totalorder %s6153_s3, %s7163_s12 }
 0xdac   :  { %p6159_p11 = pnand %p6157_p10, %p6154_p9 }
 0xdae   :  { %6162 = shalt.err (!%p6159_p11)
}
 0xdaf   :  { %4501 = dma.vmem_to_hbm [thread:$0]  %s4496_s17, 1024, %s7163_s12, [#allocation6], %s6175_s7, %s6175_s7, %s6176_s22  }
 0xdb0   :  { %6169 = dma.done.wait [#allocation6], 1024  }
 0xdb1   :  { %6170 = vsyncadd [#allocation6], 4294966272 }
 0xdb2   :  { %4505 = vsyncpa [#allocation5], 1 }
 0xdb3   :  { %4506 = vsyncpa [#allocation8], 1 }
 0xdb4   :  { %4507 = vsyncpa [#allocation11], 1 }
 0xdb5   :  { %4508 = vsyncpa [#allocation6], 1 }

</bundles_post_ra>
